<compile_context>
chip_gen: v7x
topology: tpu7x:2x2x1
jax: 0.10.0
libtpu: 0.0.40
codegen_flags: <defaults>
</compile_context>

<pallas_src>
import functools

import jax
import jax.numpy as jnp
from jax import lax
from jax.experimental import pallas as pl
from jax.experimental.pallas import tpu as pltpu


# ----------------------------------------------------------------------------
# helpers
# ----------------------------------------------------------------------------
_PADW = 16                      # left/right sublane pad (bf16 tile-aligned)
_CONV_VMEM_LIMIT = 48 * 1024 * 1024
_TAIL_VMEM_LIMIT = 48 * 1024 * 1024
_TAIL_STREAM_BUDGET = 24 * 1024 * 1024   # double-buffered streaming tiles


def _round_up(x, m):
    return (x + m - 1) // m * m


def _pick_tile_rows(H, W, Cout, acc_budget_bytes=128 * 1024):
    """Largest even divisor of H whose f32 (TH*W, Cout) result stays small
    (well under the 256 KiB vreg file) so the pooling epilogue never forces
    spills.  No whole-image fallback."""
    assert H % 2 == 0
    best = 2
    th = 2
    while th <= H:
        if H % th == 0 and th * W * Cout * 4 <= acc_budget_bytes:
            best = th
        th += 2
    return best


# ----------------------------------------------------------------------------
# Kernel 1: Impala-style stage = 3x3 conv (SAME) + bias + ReLU + 2x2 max-pool.
# Grid: (B,) -- one image per grid step, batch axis "parallel" (v7x megacore).
# Two bodies: im2col for tiny Cin (first layer), direct 9-tap accumulated
# matmuls for wide-channel stages (no masked im2col stores).
# ----------------------------------------------------------------------------
def _fill_padded_scratch(x_ref, xp_ref, *, H, W, C):
    """bf16 SAME-padding scratch: zero ONLY the halo (rows 0 / H+1 and the two
    16-wide side bands), then copy the image at a 16-aligned sublane offset
    (unmasked stores).  Re-done every grid step so it is correct regardless of
    how the parallel batch axis is split across TensorCores."""
    Wp = W + 2 * _PADW
    xp_ref[0:1, :, :] = jnp.zeros((1, Wp, C), xp_ref.dtype)
    xp_ref[H + 1:H + 2, :, :] = jnp.zeros((1, Wp, C), xp_ref.dtype)
    xp_ref[:, 0:_PADW, :] = jnp.zeros((H + 2, _PADW, C), xp_ref.dtype)
    xp_ref[:, _PADW + W:Wp, :] = jnp.zeros((H + 2, _PADW, C), xp_ref.dtype)
    xp_ref[1:H + 1, _PADW:_PADW + W, :] = x_ref[...].astype(xp_ref.dtype)


def _pool_and_store(acc, o_ref, t, *, TH, W, Cout):
    """2x2/2 max-pool as two maxima of shifted views (pure VALU)."""
    Wo, THo = W // 2, TH // 2
    y = acc.reshape(TH * Wo, 2, Cout)
    y = jnp.maximum(y[:, 0, :], y[:, 1, :])               # pool along W
    y = y.reshape(THo, 2, Wo, Cout)
    pooled = jnp.maximum(y[:, 0, :, :], y[:, 1, :, :])    # pool along H
    o_ref[pl.ds(pl.multiple_of(t * THo, THo), THo), :, :] = (
        pooled.astype(o_ref.dtype))


def _conv_pool_kernel_im2col(x_ref, w_ref, b_ref, o_ref, xp_ref, col_ref, *,
                             H, W, C, TH):
    Cout = w_ref.shape[-1]
    n_tiles = H // TH
    _fill_padded_scratch(x_ref, xp_ref, H=H, W=W, C=C)

    w2d = w_ref[...]                               # (9*C, Cout) bf16, hoisted
    bias = b_ref[...].astype(jnp.float32)          # (1, Cout), hoisted

    def tile_body(t, carry):
        r0 = pl.multiple_of(t * TH, TH)
        # im2col: 9 shifted copies -> one (TH, W, 9*C) tile, ONE MXU push.
        # Only used for the tiny-Cin first layer.
        for dy in range(3):
            for dx in range(3):
                tap = dy * 3 + dx
                col_ref[:, :, tap * C:(tap + 1) * C] = xp_ref[
                    pl.ds(r0 + dy, TH), _PADW - 1 + dx:_PADW - 1 + dx + W, :]
        acc = jnp.dot(col_ref[...].reshape(TH * W, 9 * C), w2d,
                      preferred_element_type=jnp.float32)
        acc = jnp.maximum(acc + bias, 0.0)         # f32 epilogue (v5e-safe)
        _pool_and_store(acc, o_ref, t, TH=TH, W=W, Cout=Cout)
        return carry

    lax.fori_loop(0, n_tiles, tile_body, 0, unroll=min(n_tiles, 4))


def _conv_pool_kernel_direct(x_ref, w_ref, b_ref, o_ref, xp_ref, *,
                             H, W, C, TH):
    Cout = w_ref.shape[-1]
    n_tiles = H // TH
    _fill_padded_scratch(x_ref, xp_ref, H=H, W=W, C=C)

    bias = b_ref[...].astype(jnp.float32)          # (1, Cout), hoisted

    def tile_body(t, carry):
        r0 = pl.multiple_of(t * TH, TH)
        # Direct accumulated tap matmuls straight from the padded scratch:
        # no im2col materialization / masked lane-offset stores.
        acc = jnp.zeros((TH * W, Cout), jnp.float32)
        for dy in range(3):
            for dx in range(3):
                lhs = xp_ref[pl.ds(r0 + dy, TH),
                             _PADW - 1 + dx:_PADW - 1 + dx + W, :]
                acc = acc + jnp.dot(lhs.reshape(TH * W, C),
                                    w_ref[dy * 3 + dx],
                                    preferred_element_type=jnp.float32)
        acc = jnp.maximum(acc + bias, 0.0)
        _pool_and_store(acc, o_ref, t, TH=TH, W=W, Cout=Cout)
        return carry

    lax.fori_loop(0, n_tiles, tile_body, 0, unroll=min(n_tiles, 4))


def conv_pool_stage(x, w, b):
    """x: (B, H, W, Cin) -> (B, H//2, W//2, Cout) bf16.  w: (3,3,Cin,Cout)."""
    x = x.astype(jnp.bfloat16)                     # bf16 activations
    B, H, W, Cin = x.shape
    KH, KW, Cin2, Cout = w.shape
    assert (KH, KW) == (3, 3) and Cin2 == Cin
    assert H % 2 == 0 and W % 2 == 0
    TH = _pick_tile_rows(H, W, Cout)
    assert H % TH == 0 and TH % 2 == 0
    Ho, Wo = H // 2, W // 2
    Wp = W + 2 * _PADW
    use_im2col = Cin < 16                          # only the Cin=3 first layer

    if use_im2col:
        wk = w.reshape(9 * Cin, Cout).astype(jnp.bfloat16)
        w_spec = pl.BlockSpec((9 * Cin, Cout), lambda bi: (0, 0))
        kern = functools.partial(_conv_pool_kernel_im2col,
                                 H=H, W=W, C=Cin, TH=TH)
        scratch = [pltpu.VMEM((H + 2, Wp, Cin), jnp.bfloat16),   # padded input
                   pltpu.VMEM((TH, W, 9 * Cin), jnp.bfloat16)]   # im2col tile
    else:
        wk = w.reshape(9, Cin, Cout).astype(jnp.bfloat16)
        w_spec = pl.BlockSpec((9, Cin, Cout), lambda bi: (0, 0, 0))
        kern = functools.partial(_conv_pool_kernel_direct,
                                 H=H, W=W, C=Cin, TH=TH)
        scratch = [pltpu.VMEM((H + 2, Wp, Cin), jnp.bfloat16)]   # padded input

    return pl.pallas_call(
        kern,
        out_shape=jax.ShapeDtypeStruct((B, Ho, Wo, Cout), jnp.bfloat16),
        grid=(B,),
        in_specs=[
            pl.BlockSpec((pl.Squeezed(), H, W, Cin), lambda bi: (bi, 0, 0, 0)),
            w_spec,
            pl.BlockSpec((1, Cout), lambda bi: (0, 0)),
        ],
        out_specs=pl.BlockSpec((pl.Squeezed(), Ho, Wo, Cout),
                               lambda bi: (bi, 0, 0, 0)),
        scratch_shapes=scratch,
        compiler_params=pltpu.CompilerParams(
            dimension_semantics=("parallel",),            # 2 TCs on v7x
            vmem_limit_bytes=_CONV_VMEM_LIMIT),
    )(x, wk, b)


# ----------------------------------------------------------------------------
# Kernel 2: fused tail.  Grid over K tiles of the (int8) dense weight stream:
#   acc += f[:, k-tile] @ bf16(wd_q[k-tile, :])              (every step)
#   x = relu(acc*scale + bd); h' = tanh(x@Wxh + h@Whh + bh)  (last step only)
#   latent = affine_layernorm(h' @ Wlat + blat)
# ----------------------------------------------------------------------------
def _tail_kernel(f_ref, wd_ref, ws_ref, bd_ref, h_ref, wxh_ref, whh_ref,
                 bh_ref, wlat_ref, blat_ref, lng_ref, lnb_ref,
                 lat_ref, hout_ref, acc_ref):
    k = pl.program_id(0)

    @pl.when(k == 0)
    def _():
        acc_ref[...] = jnp.zeros_like(acc_ref)

    # int8 weight tile -> bf16 for the MXU (storage/bandwidth quantization
    # only; no integer-MXU dependence, so identical on v5e/v6e/v7x).
    w_tile = wd_ref[...].astype(jnp.float32).astype(jnp.bfloat16)
    acc_ref[...] += jnp.dot(f_ref[...], w_tile,
                            preferred_element_type=jnp.float32)

    @pl.when(k == pl.num_programs(0) - 1)
    def _():
        # per-output-column dequant scale folded into the f32 epilogue
        x = jnp.maximum(acc_ref[...] * ws_ref[...] + bd_ref[...], 0.0)
        h = h_ref[...]
        pre = (jnp.dot(x.astype(wxh_ref.dtype), wxh_ref[...],
                       preferred_element_type=jnp.float32)
               + jnp.dot(h.astype(whh_ref.dtype), whh_ref[...],
                         preferred_element_type=jnp.float32)
               + bh_ref[...])
        h_new = jnp.tanh(pre)                                  # f32 (EUP)
        lat = jnp.dot(h_new.astype(wlat_ref.dtype), wlat_ref[...],
                      preferred_element_type=jnp.float32) + blat_ref[...]
        mean = jnp.mean(lat, axis=-1, keepdims=True)
        var = jnp.mean((lat - mean) ** 2, axis=-1, keepdims=True)
        lat = (lat - mean) * lax.rsqrt(var + 1e-5)
        lat = lat * lng_ref[...] + lnb_ref[...]                # affine LN
        lat_ref[...] = lat.astype(lat_ref.dtype)
        hout_ref[...] = h_new.astype(hout_ref.dtype)


def prepare_tail_weights(wd, *, quantize=True):
    """Done ONCE at init: per-column symmetric int8 quantization of the dense
    weight stream (halves the dominant HBM traffic) + zero-pad K to a
    128-multiple so the streaming K-tile always divides it exactly."""
    F, Dh = wd.shape
    wd = wd.astype(jnp.float32)
    if quantize:
        amax = jnp.max(jnp.abs(wd), axis=0, keepdims=True)       # (1, Dh)
        scale = jnp.maximum(amax, 1e-8) / 127.0
        wd_q = jnp.clip(jnp.round(wd / scale), -127, 127).astype(jnp.int8)
    else:
        wd_q = wd.astype(jnp.bfloat16)
        scale = jnp.ones((1, Dh), jnp.float32)
    F_pad = _round_up(F, 1024)
    if F_pad > F:
        wd_q = jnp.pad(wd_q, ((0, F_pad - F), (0, 0)))
    return wd_q, scale


def dense_recurrent_tail(f, h, wd_q, wd_scale, bd, wxh, whh, bh,
                         wlat, blat, ln_g, ln_b, *, tk_max=4096):
    """NOTE: state_in `h` is donated (input_output_aliases) -- callers must
    not reuse the state_in buffer after this call."""
    B, F = f.shape
    F_pad, Dh = wd_q.shape
    Dlat = wlat.shape[1]
    assert F_pad >= F and F_pad % 128 == 0
    if F_pad > F:
        f = jnp.pad(f, ((0, 0), (0, F_pad - F)))       # zero K-pad: exact

    # K-tile: as large as the (v7x-safe) double-buffer budget allows, always
    # a 128-multiple divisor of F_pad (no whole-weight fallback).
    wbytes = wd_q.dtype.itemsize
    fbytes = f.dtype.itemsize
    tk_cap = max(128,
                 (_TAIL_STREAM_BUDGET // (2 * (Dh * wbytes + B * fbytes)))
                 // 128 * 128)
    tk = min(tk_max, F_pad, tk_cap)
    while F_pad % tk:
        tk -= 128
    nk = F_pad // tk

    const = lambda k: (0, 0)
    cost = pl.CostEstimate(
        flops=int(2 * B * F_pad * Dh + 4 * B * Dh * Dh + 2 * B * Dh * Dlat),
        transcendentals=int(B * Dh),
        bytes_accessed=int(wd_q.size * wbytes + f.size * fbytes
                           + (wxh.size + whh.size + wlat.size) * 2
                           + B * (Dh + Dlat) * 4))

    return pl.pallas_call(
        _tail_kernel,
        out_shape=(jax.ShapeDtypeStruct((B, Dlat), jnp.float32),
                   jax.ShapeDtypeStruct((B, Dh), jnp.float32)),
        grid=(nk,),
        in_specs=[
            pl.BlockSpec((B, tk), lambda k: (0, k)),      # f: K-tiled
            pl.BlockSpec((tk, Dh), lambda k: (k, 0)),     # wd_q: K-tiled stream
            pl.BlockSpec((1, Dh), const),                 # dequant scale
            pl.BlockSpec((1, Dh), const),                 # bd
            pl.BlockSpec((B, Dh), const),                 # state_in
            pl.BlockSpec((Dh, Dh), const),                # wxh
            pl.BlockSpec((Dh, Dh), const),                # whh
            pl.BlockSpec((1, Dh), const),                 # bh
            pl.BlockSpec((Dh, Dlat), const),              # wlat
            pl.BlockSpec((1, Dlat), const),               # blat
            pl.BlockSpec((1, Dlat), const),               # ln gamma
            pl.BlockSpec((1, Dlat), const),               # ln beta
        ],
        out_specs=(pl.BlockSpec((B, Dlat), const),
                   pl.BlockSpec((B, Dh), const)),
        scratch_shapes=[pltpu.VMEM((B, Dh), jnp.float32)],
        input_output_aliases={4: 1},                      # state_in -> state_out
        cost_estimate=cost,
        compiler_params=pltpu.CompilerParams(
            dimension_semantics=("arbitrary",),           # K is a reduction
            vmem_limit_bytes=_TAIL_VMEM_LIMIT),
    )(f, wd_q, wd_scale, bd, h, wxh, whh, bh, wlat, blat, ln_g, ln_b)


# ----------------------------------------------------------------------------
# Full VPT-style encoder forward:  (obs, state_in) -> (latent, state_out)
# ----------------------------------------------------------------------------
def vpt_encode(obs, state_in, params):
    x = conv_pool_stage(obs, params["w1"], params["b1"])
    x = conv_pool_stage(x, params["w2"], params["b2"])
    f = x.reshape(x.shape[0], -1)                  # flatten: free relabel
    return dense_recurrent_tail(
        f, state_in, params["wd_q"], params["wd_scale"], params["bd"],
        params["wxh"], params["whh"], params["bh"], params["wlat"],
        params["blat"], params["ln_g"], params["ln_b"])


if __name__ == "__main__":
    key = jax.random.PRNGKey(0)
    ks = jax.random.split(key, 8)

    # Small shapes (real model: 128x128x3 frame, 64/128/128 Impala channels,
    # 1024+ hidsize).  Channel / hidden widths chosen lane-friendly.
    B, H, W, CIN = 2, 16, 16, 3
    C1, C2 = 32, 64
    DH, DLAT = 128, 128

    obs = jax.random.uniform(ks[0], (B, H, W, CIN), jnp.float32)   # NHWC frame
    state_in = jnp.zeros((B, DH), jnp.float32)                     # initial_state

    def init(k, shape, fan_in, dtype=jnp.bfloat16):
        return (jax.random.normal(k, shape, jnp.float32)
                / jnp.sqrt(float(fan_in))).astype(dtype)

    F = (H // 4) * (W // 4) * C2
    wd_full = init(ks[3], (F, DH), F, dtype=jnp.float32)
    wd_q, wd_scale = prepare_tail_weights(wd_full, quantize=True)  # once, at init

    params = dict(
        w1=init(ks[1], (3, 3, CIN, C1), 9 * CIN),      # raw conv kernels
        b1=jnp.zeros((1, C1), jnp.float32),
        w2=init(ks[2], (3, 3, C1, C2), 9 * C1),
        b2=jnp.zeros((1, C2), jnp.float32),
        wd_q=wd_q,                                      # int8 weight stream
        wd_scale=wd_scale,                              # per-column dequant
        bd=jnp.zeros((1, DH), jnp.float32),
        wxh=init(ks[4], (DH, DH), DH),
        whh=init(ks[5], (DH, DH), DH),
        bh=jnp.zeros((1, DH), jnp.float32),
        wlat=init(ks[6], (DH, DLAT), DH),
        blat=jnp.zeros((1, DLAT), jnp.float32),
        ln_g=jnp.ones((1, DLAT), jnp.float32),
        ln_b=jnp.zeros((1, DLAT), jnp.float32),
    )

    latent, state_out = jax.jit(vpt_encode)(obs, state_in, params)
    jax.block_until_ready((latent, state_out))
    assert latent.shape == (B, DLAT) and state_out.shape == (B, DH)
    assert bool(jnp.all(jnp.isfinite(latent)))
    assert bool(jnp.all(jnp.isfinite(state_out)))
    print("KERNEL_OK")
</pallas_src>

<mosaic_0001>
module attributes {stable_mosaic.version = 11 : i64} {
  func.func @_conv_pool_kernel_direct(%arg0: i32, %arg1: memref<1x8x8x32xbf16, #tpu.memory_space<vmem>>, %arg2: memref<9x32x64xbf16, #tpu.memory_space<vmem>>, %arg3: memref<1x64xf32, #tpu.memory_space<vmem>>, %arg4: memref<1x4x4x64xbf16, #tpu.memory_space<vmem>>, %arg5: memref<10x40x32xbf16, #tpu.memory_space<vmem>>) attributes {dimension_semantics = [#tpu.dimension_semantics<parallel>], iteration_bounds = array<i64: 2>, scalar_prefetch = 0 : i64, scratch_operands = 1 : i64, tpu.core_type = #tpu.core_type<tc>, window_params = [{transform_indices = @transform_0, window_bounds = array<i64: 1, 8, 8, 32>}, {pipeline_mode = #tpu.pipeline_mode<synchronous>, transform_indices = @transform_1, window_bounds = array<i64: 9, 32, 64>}, {pipeline_mode = #tpu.pipeline_mode<synchronous>, transform_indices = @transform_2, window_bounds = array<i64: 1, 64>}, {transform_indices = @transform_3, window_bounds = array<i64: 1, 4, 4, 64>}]} {
    %cst = arith.constant 0.000000e+00 : bf16
    %0 = vector.broadcast %cst : bf16 to vector<1x40x32xbf16>
    %c0 = arith.constant 0 : index
    %c0_0 = arith.constant 0 : index
    %c0_1 = arith.constant 0 : index
    %1 = vector.load %arg5[%c0, %c0_0, %c0_1] : memref<10x40x32xbf16, #tpu.memory_space<vmem>>, vector<1x40x32xbf16>
    tpu.vector_store %arg5[%c0, %c0_0, %c0_1], %0 {strides = array<i32>} : memref<10x40x32xbf16, #tpu.memory_space<vmem>>, vector<1x40x32xbf16>,
    %cst_2 = arith.constant 0.000000e+00 : bf16
    %2 = vector.broadcast %cst_2 : bf16 to vector<1x40x32xbf16>
    %c9 = arith.constant 9 : index
    %c0_3 = arith.constant 0 : index
    %c0_4 = arith.constant 0 : index
    %3 = vector.load %arg5[%c9, %c0_3, %c0_4] : memref<10x40x32xbf16, #tpu.memory_space<vmem>>, vector<1x40x32xbf16>
    tpu.vector_store %arg5[%c9, %c0_3, %c0_4], %2 {strides = array<i32>} : memref<10x40x32xbf16, #tpu.memory_space<vmem>>, vector<1x40x32xbf16>,
    %cst_5 = arith.constant 0.000000e+00 : bf16
    %4 = vector.broadcast %cst_5 : bf16 to vector<10x16x32xbf16>
    %c0_6 = arith.constant 0 : index
    %c0_7 = arith.constant 0 : index
    %c0_8 = arith.constant 0 : index
    %5 = vector.load %arg5[%c0_6, %c0_7, %c0_8] : memref<10x40x32xbf16, #tpu.memory_space<vmem>>, vector<10x16x32xbf16>
    tpu.vector_store %arg5[%c0_6, %c0_7, %c0_8], %4 {strides = array<i32>} : memref<10x40x32xbf16, #tpu.memory_space<vmem>>, vector<10x16x32xbf16>,
    %cst_9 = arith.constant 0.000000e+00 : bf16
    %6 = vector.broadcast %cst_9 : bf16 to vector<10x16x32xbf16>
    %c0_10 = arith.constant 0 : index
    %c24 = arith.constant 24 : index
    %c0_11 = arith.constant 0 : index
    %7 = vector.load %arg5[%c0_10, %c24, %c0_11] : memref<10x40x32xbf16, #tpu.memory_space<vmem>>, vector<10x16x32xbf16>
    tpu.vector_store %arg5[%c0_10, %c24, %c0_11], %6 {strides = array<i32>} : memref<10x40x32xbf16, #tpu.memory_space<vmem>>, vector<10x16x32xbf16>,
    %c0_12 = arith.constant 0 : index
    %c0_13 = arith.constant 0 : index
    %c0_14 = arith.constant 0 : index
    %c0_15 = arith.constant 0 : index
    %8 = vector.load %arg1[%c0_12, %c0_13, %c0_14, %c0_15] : memref<1x8x8x32xbf16, #tpu.memory_space<vmem>>, vector<1x8x8x32xbf16>
    %9 = vector.shape_cast %8 : vector<1x8x8x32xbf16> to vector<8x8x32xbf16>
    %c1 = arith.constant 1 : index
    %c16 = arith.constant 16 : index
    %c0_16 = arith.constant 0 : index
    %10 = vector.load %arg5[%c1, %c16, %c0_16] : memref<10x40x32xbf16, #tpu.memory_space<vmem>>, vector<8x8x32xbf16>
    tpu.vector_store %arg5[%c1, %c16, %c0_16], %9 {strides = array<i32>} : memref<10x40x32xbf16, #tpu.memory_space<vmem>>, vector<8x8x32xbf16>,
    %c0_17 = arith.constant 0 : index
    %c0_18 = arith.constant 0 : index
    %11 = vector.load %arg3[%c0_17, %c0_18] : memref<1x64xf32, #tpu.memory_space<vmem>>, vector<1x64xf32>
    %c0_i32 = arith.constant 0 : i32
    %c8_i32 = arith.constant 8 : i32
    %12 = arith.muli %c0_i32, %c8_i32 : i32
    %13 = tpu.assume_multiple %12, 8 : i32
    %cst_19 = arith.constant 0.000000e+00 : f32
    %14 = vector.broadcast %cst_19 : f32 to vector<64x64xf32>
    %c0_i32_20 = arith.constant 0 : i32
    %15 = arith.addi %13, %c0_i32_20 : i32
    %16 = arith.index_cast %15 : i32 to index
    %c15 = arith.constant 15 : index
    %c0_21 = arith.constant 0 : index
    %17 = vector.load %arg5[%16, %c15, %c0_21] : memref<10x40x32xbf16, #tpu.memory_space<vmem>>, vector<8x8x32xbf16>
    %18 = vector.shape_cast %17 : vector<8x8x32xbf16> to vector<64x32xbf16>
    %c0_22 = arith.constant 0 : index
    %c0_23 = arith.constant 0 : index
    %c0_24 = arith.constant 0 : index
    %19 = vector.load %arg2[%c0_22, %c0_23, %c0_24] : memref<9x32x64xbf16, #tpu.memory_space<vmem>>, vector<1x32x64xbf16>
    %20 = vector.shape_cast %19 : vector<1x32x64xbf16> to vector<32x64xbf16>
    %cst_25 = arith.constant dense<0.000000e+00> : vector<64x64xf32>
    %21 = tpu.matmul %18, %20, %cst_25 {dimension_numbers = #tpu.dot_dimension_numbers<[1], [0], [0], [1], [0, 0, 1, 1], [], []>} : vector<64x32xbf16>, vector<32x64xbf16>, vector<64x64xf32> -> vector<64x64xf32>
    %22 = arith.addf %14, %21 : vector<64x64xf32>
    %c0_i32_26 = arith.constant 0 : i32
    %23 = arith.addi %13, %c0_i32_26 : i32
    %24 = arith.index_cast %23 : i32 to index
    %c16_27 = arith.constant 16 : index
    %c0_28 = arith.constant 0 : index
    %25 = vector.load %arg5[%24, %c16_27, %c0_28] : memref<10x40x32xbf16, #tpu.memory_space<vmem>>, vector<8x8x32xbf16>
    %26 = vector.shape_cast %25 : vector<8x8x32xbf16> to vector<64x32xbf16>
    %c1_29 = arith.constant 1 : index
    %c0_30 = arith.constant 0 : index
    %c0_31 = arith.constant 0 : index
    %27 = vector.load %arg2[%c1_29, %c0_30, %c0_31] : memref<9x32x64xbf16, #tpu.memory_space<vmem>>, vector<1x32x64xbf16>
    %28 = vector.shape_cast %27 : vector<1x32x64xbf16> to vector<32x64xbf16>
    %cst_32 = arith.constant dense<0.000000e+00> : vector<64x64xf32>
    %29 = tpu.matmul %26, %28, %cst_32 {dimension_numbers = #tpu.dot_dimension_numbers<[1], [0], [0], [1], [0, 0, 1, 1], [], []>} : vector<64x32xbf16>, vector<32x64xbf16>, vector<64x64xf32> -> vector<64x64xf32>
    %30 = arith.addf %22, %29 : vector<64x64xf32>
    %c0_i32_33 = arith.constant 0 : i32
    %31 = arith.addi %13, %c0_i32_33 : i32
    %32 = arith.index_cast %31 : i32 to index
    %c17 = arith.constant 17 : index
    %c0_34 = arith.constant 0 : index
    %33 = vector.load %arg5[%32, %c17, %c0_34] : memref<10x40x32xbf16, #tpu.memory_space<vmem>>, vector<8x8x32xbf16>
    %34 = vector.shape_cast %33 : vector<8x8x32xbf16> to vector<64x32xbf16>
    %c2 = arith.constant 2 : index
    %c0_35 = arith.constant 0 : index
    %c0_36 = arith.constant 0 : index
    %35 = vector.load %arg2[%c2, %c0_35, %c0_36] : memref<9x32x64xbf16, #tpu.memory_space<vmem>>, vector<1x32x64xbf16>
    %36 = vector.shape_cast %35 : vector<1x32x64xbf16> to vector<32x64xbf16>
    %cst_37 = arith.constant dense<0.000000e+00> : vector<64x64xf32>
    %37 = tpu.matmul %34, %36, %cst_37 {dimension_numbers = #tpu.dot_dimension_numbers<[1], [0], [0], [1], [0, 0, 1, 1], [], []>} : vector<64x32xbf16>, vector<32x64xbf16>, vector<64x64xf32> -> vector<64x64xf32>
    %38 = arith.addf %30, %37 : vector<64x64xf32>
    %c1_i32 = arith.constant 1 : i32
    %39 = arith.addi %13, %c1_i32 : i32
    %40 = arith.index_cast %39 : i32 to index
    %c15_38 = arith.constant 15 : index
    %c0_39 = arith.constant 0 : index
    %41 = vector.load %arg5[%40, %c15_38, %c0_39] : memref<10x40x32xbf16, #tpu.memory_space<vmem>>, vector<8x8x32xbf16>
    %42 = vector.shape_cast %41 : vector<8x8x32xbf16> to vector<64x32xbf16>
    %c3 = arith.constant 3 : index
    %c0_40 = arith.constant 0 : index
    %c0_41 = arith.constant 0 : index
    %43 = vector.load %arg2[%c3, %c0_40, %c0_41] : memref<9x32x64xbf16, #tpu.memory_space<vmem>>, vector<1x32x64xbf16>
    %44 = vector.shape_cast %43 : vector<1x32x64xbf16> to vector<32x64xbf16>
    %cst_42 = arith.constant dense<0.000000e+00> : vector<64x64xf32>
    %45 = tpu.matmul %42, %44, %cst_42 {dimension_numbers = #tpu.dot_dimension_numbers<[1], [0], [0], [1], [0, 0, 1, 1], [], []>} : vector<64x32xbf16>, vector<32x64xbf16>, vector<64x64xf32> -> vector<64x64xf32>
    %46 = arith.addf %38, %45 : vector<64x64xf32>
    %c1_i32_43 = arith.constant 1 : i32
    %47 = arith.addi %13, %c1_i32_43 : i32
    %48 = arith.index_cast %47 : i32 to index
    %c16_44 = arith.constant 16 : index
    %c0_45 = arith.constant 0 : index
    %49 = vector.load %arg5[%48, %c16_44, %c0_45] : memref<10x40x32xbf16, #tpu.memory_space<vmem>>, vector<8x8x32xbf16>
    %50 = vector.shape_cast %49 : vector<8x8x32xbf16> to vector<64x32xbf16>
    %c4 = arith.constant 4 : index
    %c0_46 = arith.constant 0 : index
    %c0_47 = arith.constant 0 : index
    %51 = vector.load %arg2[%c4, %c0_46, %c0_47] : memref<9x32x64xbf16, #tpu.memory_space<vmem>>, vector<1x32x64xbf16>
    %52 = vector.shape_cast %51 : vector<1x32x64xbf16> to vector<32x64xbf16>
    %cst_48 = arith.constant dense<0.000000e+00> : vector<64x64xf32>
    %53 = tpu.matmul %50, %52, %cst_48 {dimension_numbers = #tpu.dot_dimension_numbers<[1], [0], [0], [1], [0, 0, 1, 1], [], []>} : vector<64x32xbf16>, vector<32x64xbf16>, vector<64x64xf32> -> vector<64x64xf32>
    %54 = arith.addf %46, %53 : vector<64x64xf32>
    %c1_i32_49 = arith.constant 1 : i32
    %55 = arith.addi %13, %c1_i32_49 : i32
    %56 = arith.index_cast %55 : i32 to index
    %c17_50 = arith.constant 17 : index
    %c0_51 = arith.constant 0 : index
    %57 = vector.load %arg5[%56, %c17_50, %c0_51] : memref<10x40x32xbf16, #tpu.memory_space<vmem>>, vector<8x8x32xbf16>
    %58 = vector.shape_cast %57 : vector<8x8x32xbf16> to vector<64x32xbf16>
    %c5 = arith.constant 5 : index
    %c0_52 = arith.constant 0 : index
    %c0_53 = arith.constant 0 : index
    %59 = vector.load %arg2[%c5, %c0_52, %c0_53] : memref<9x32x64xbf16, #tpu.memory_space<vmem>>, vector<1x32x64xbf16>
    %60 = vector.shape_cast %59 : vector<1x32x64xbf16> to vector<32x64xbf16>
    %cst_54 = arith.constant dense<0.000000e+00> : vector<64x64xf32>
    %61 = tpu.matmul %58, %60, %cst_54 {dimension_numbers = #tpu.dot_dimension_numbers<[1], [0], [0], [1], [0, 0, 1, 1], [], []>} : vector<64x32xbf16>, vector<32x64xbf16>, vector<64x64xf32> -> vector<64x64xf32>
    %62 = arith.addf %54, %61 : vector<64x64xf32>
    %c2_i32 = arith.constant 2 : i32
    %63 = arith.addi %13, %c2_i32 : i32
    %64 = arith.index_cast %63 : i32 to index
    %c15_55 = arith.constant 15 : index
    %c0_56 = arith.constant 0 : index
    %65 = vector.load %arg5[%64, %c15_55, %c0_56] : memref<10x40x32xbf16, #tpu.memory_space<vmem>>, vector<8x8x32xbf16>
    %66 = vector.shape_cast %65 : vector<8x8x32xbf16> to vector<64x32xbf16>
    %c6 = arith.constant 6 : index
    %c0_57 = arith.constant 0 : index
    %c0_58 = arith.constant 0 : index
    %67 = vector.load %arg2[%c6, %c0_57, %c0_58] : memref<9x32x64xbf16, #tpu.memory_space<vmem>>, vector<1x32x64xbf16>
    %68 = vector.shape_cast %67 : vector<1x32x64xbf16> to vector<32x64xbf16>
    %cst_59 = arith.constant dense<0.000000e+00> : vector<64x64xf32>
    %69 = tpu.matmul %66, %68, %cst_59 {dimension_numbers = #tpu.dot_dimension_numbers<[1], [0], [0], [1], [0, 0, 1, 1], [], []>} : vector<64x32xbf16>, vector<32x64xbf16>, vector<64x64xf32> -> vector<64x64xf32>
    %70 = arith.addf %62, %69 : vector<64x64xf32>
    %c2_i32_60 = arith.constant 2 : i32
    %71 = arith.addi %13, %c2_i32_60 : i32
    %72 = arith.index_cast %71 : i32 to index
    %c16_61 = arith.constant 16 : index
    %c0_62 = arith.constant 0 : index
    %73 = vector.load %arg5[%72, %c16_61, %c0_62] : memref<10x40x32xbf16, #tpu.memory_space<vmem>>, vector<8x8x32xbf16>
    %74 = vector.shape_cast %73 : vector<8x8x32xbf16> to vector<64x32xbf16>
    %c7 = arith.constant 7 : index
    %c0_63 = arith.constant 0 : index
    %c0_64 = arith.constant 0 : index
    %75 = vector.load %arg2[%c7, %c0_63, %c0_64] : memref<9x32x64xbf16, #tpu.memory_space<vmem>>, vector<1x32x64xbf16>
    %76 = vector.shape_cast %75 : vector<1x32x64xbf16> to vector<32x64xbf16>
    %cst_65 = arith.constant dense<0.000000e+00> : vector<64x64xf32>
    %77 = tpu.matmul %74, %76, %cst_65 {dimension_numbers = #tpu.dot_dimension_numbers<[1], [0], [0], [1], [0, 0, 1, 1], [], []>} : vector<64x32xbf16>, vector<32x64xbf16>, vector<64x64xf32> -> vector<64x64xf32>
    %78 = arith.addf %70, %77 : vector<64x64xf32>
    %c2_i32_66 = arith.constant 2 : i32
    %79 = arith.addi %13, %c2_i32_66 : i32
    %80 = arith.index_cast %79 : i32 to index
    %c17_67 = arith.constant 17 : index
    %c0_68 = arith.constant 0 : index
    %81 = vector.load %arg5[%80, %c17_67, %c0_68] : memref<10x40x32xbf16, #tpu.memory_space<vmem>>, vector<8x8x32xbf16>
    %82 = vector.shape_cast %81 : vector<8x8x32xbf16> to vector<64x32xbf16>
    %c8 = arith.constant 8 : index
    %c0_69 = arith.constant 0 : index
    %c0_70 = arith.constant 0 : index
    %83 = vector.load %arg2[%c8, %c0_69, %c0_70] : memref<9x32x64xbf16, #tpu.memory_space<vmem>>, vector<1x32x64xbf16>
    %84 = vector.shape_cast %83 : vector<1x32x64xbf16> to vector<32x64xbf16>
    %cst_71 = arith.constant dense<0.000000e+00> : vector<64x64xf32>
    %85 = tpu.matmul %82, %84, %cst_71 {dimension_numbers = #tpu.dot_dimension_numbers<[1], [0], [0], [1], [0, 0, 1, 1], [], []>} : vector<64x32xbf16>, vector<32x64xbf16>, vector<64x64xf32> -> vector<64x64xf32>
    %86 = arith.addf %78, %85 : vector<64x64xf32>
    %87 = vector.broadcast %11 : vector<1x64xf32> to vector<64x64xf32>
    %88 = arith.addf %86, %87 : vector<64x64xf32>
    %cst_72 = arith.constant 0.000000e+00 : f32
    %89 = vector.broadcast %cst_72 : f32 to vector<64x64xf32>
    %90 = arith.maximumf %88, %89 : vector<64x64xf32>
    %91 = vector.shape_cast %90 : vector<64x64xf32> to vector<32x2x64xf32>
    %92 = vector.extract_strided_slice %91 {offsets = [0, 0, 0], sizes = [32, 1, 64], strides = [1, 1, 1]} : vector<32x2x64xf32> to vector<32x1x64xf32>
    %93 = vector.shape_cast %92 : vector<32x1x64xf32> to vector<32x64xf32>
    %94 = vector.extract_strided_slice %91 {offsets = [0, 1, 0], sizes = [32, 1, 64], strides = [1, 1, 1]} : vector<32x2x64xf32> to vector<32x1x64xf32>
    %95 = vector.shape_cast %94 : vector<32x1x64xf32> to vector<32x64xf32>
    %96 = arith.maximumf %93, %95 : vector<32x64xf32>
    %97 = vector.shape_cast %96 : vector<32x64xf32> to vector<4x2x4x64xf32>
    %98 = vector.extract_strided_slice %97 {offsets = [0, 0, 0, 0], sizes = [4, 1, 4, 64], strides = [1, 1, 1, 1]} : vector<4x2x4x64xf32> to vector<4x1x4x64xf32>
    %99 = vector.shape_cast %98 : vector<4x1x4x64xf32> to vector<4x4x64xf32>
    %100 = vector.extract_strided_slice %97 {offsets = [0, 1, 0, 0], sizes = [4, 1, 4, 64], strides = [1, 1, 1, 1]} : vector<4x2x4x64xf32> to vector<4x1x4x64xf32>
    %101 = vector.shape_cast %100 : vector<4x1x4x64xf32> to vector<4x4x64xf32>
    %102 = arith.maximumf %99, %101 : vector<4x4x64xf32>
    %103 = arith.truncf %102 : vector<4x4x64xf32> to vector<4x4x64xbf16>
    %c4_i32 = arith.constant 4 : i32
    %104 = arith.muli %c0_i32, %c4_i32 : i32
    %105 = tpu.assume_multiple %104, 4 : i32
    %c0_73 = arith.constant 0 : index
    %106 = arith.index_cast %105 : i32 to index
    %c0_74 = arith.constant 0 : index
    %c0_75 = arith.constant 0 : index
    %107 = vector.load %arg4[%c0_73, %106, %c0_74, %c0_75] : memref<1x4x4x64xbf16, #tpu.memory_space<vmem>>, vector<1x4x4x64xbf16>
    %108 = vector.shape_cast %107 : vector<1x4x4x64xbf16> to vector<4x4x64xbf16>
    %109 = vector.shape_cast %103 : vector<4x4x64xbf16> to vector<1x4x4x64xbf16>
    tpu.vector_store %arg4[%c0_73, %106, %c0_74, %c0_75], %109 {strides = array<i32>} : memref<1x4x4x64xbf16, #tpu.memory_space<vmem>>, vector<1x4x4x64xbf16>,
    %c1_i32_76 = arith.constant 1 : i32
    return
  }
  func.func @transform_0(%arg0: i32) -> (i32, i32, i32, i32) {
    %c0_i32 = arith.constant 0 : i32
    %c0_i32_0 = arith.constant 0 : i32
    %c0_i32_1 = arith.constant 0 : i32
    %c0_i32_2 = arith.constant 0 : i32
    return %arg0, %c0_i32, %c0_i32_0, %c0_i32_1 : i32, i32, i32, i32
  }
  func.func @transform_1(%arg0: i32) -> (i32, i32, i32) {
    %c0_i32 = arith.constant 0 : i32
    %c0_i32_0 = arith.constant 0 : i32
    %c0_i32_1 = arith.constant 0 : i32
    %c0_i32_2 = arith.constant 0 : i32
    return %c0_i32, %c0_i32_0, %c0_i32_1 : i32, i32, i32
  }
  func.func @transform_2(%arg0: i32) -> (i32, i32) {
    %c0_i32 = arith.constant 0 : i32
    %c0_i32_0 = arith.constant 0 : i32
    %c0_i32_1 = arith.constant 0 : i32
    return %c0_i32, %c0_i32_0 : i32, i32
  }
  func.func @transform_3(%arg0: i32) -> (i32, i32, i32, i32) {
    %c0_i32 = arith.constant 0 : i32
    %c0_i32_0 = arith.constant 0 : i32
    %c0_i32_1 = arith.constant 0 : i32
    %c0_i32_2 = arith.constant 0 : i32
    return %arg0, %c0_i32, %c0_i32_0, %c0_i32_1 : i32, i32, i32, i32
  }
}

module attributes {stable_mosaic.version = 11 : i64} {
  func.func @_conv_pool_kernel_im2col(%arg0: i32, %arg1: memref<1x16x16x3xbf16, #tpu.memory_space<vmem>>, %arg2: memref<27x32xbf16, #tpu.memory_space<vmem>>, %arg3: memref<1x32xf32, #tpu.memory_space<vmem>>, %arg4: memref<1x8x8x32xbf16, #tpu.memory_space<vmem>>, %arg5: memref<18x48x3xbf16, #tpu.memory_space<vmem>>, %arg6: memref<16x16x27xbf16, #tpu.memory_space<vmem>>) attributes {dimension_semantics = [#tpu.dimension_semantics<parallel>], iteration_bounds = array<i64: 2>, scalar_prefetch = 0 : i64, scratch_operands = 2 : i64, tpu.core_type = #tpu.core_type<tc>, window_params = [{transform_indices = @transform_0, window_bounds = array<i64: 1, 16, 16, 3>}, {pipeline_mode = #tpu.pipeline_mode<synchronous>, transform_indices = @transform_1, window_bounds = array<i64: 27, 32>}, {pipeline_mode = #tpu.pipeline_mode<synchronous>, transform_indices = @transform_2, window_bounds = array<i64: 1, 32>}, {transform_indices = @transform_3, window_bounds = array<i64: 1, 8, 8, 32>}]} {
    %cst = arith.constant 0.000000e+00 : bf16
    %0 = vector.broadcast %cst : bf16 to vector<1x48x3xbf16>
    %c0 = arith.constant 0 : index
    %c0_0 = arith.constant 0 : index
    %c0_1 = arith.constant 0 : index
    %1 = vector.load %arg5[%c0, %c0_0, %c0_1] : memref<18x48x3xbf16, #tpu.memory_space<vmem>>, vector<1x48x3xbf16>
    tpu.vector_store %arg5[%c0, %c0_0, %c0_1], %0 {strides = array<i32>} : memref<18x48x3xbf16, #tpu.memory_space<vmem>>, vector<1x48x3xbf16>,
    %cst_2 = arith.constant 0.000000e+00 : bf16
    %2 = vector.broadcast %cst_2 : bf16 to vector<1x48x3xbf16>
    %c17 = arith.constant 17 : index
    %c0_3 = arith.constant 0 : index
    %c0_4 = arith.constant 0 : index
    %3 = vector.load %arg5[%c17, %c0_3, %c0_4] : memref<18x48x3xbf16, #tpu.memory_space<vmem>>, vector<1x48x3xbf16>
    tpu.vector_store %arg5[%c17, %c0_3, %c0_4], %2 {strides = array<i32>} : memref<18x48x3xbf16, #tpu.memory_space<vmem>>, vector<1x48x3xbf16>,
    %cst_5 = arith.constant 0.000000e+00 : bf16
    %4 = vector.broadcast %cst_5 : bf16 to vector<18x16x3xbf16>
    %c0_6 = arith.constant 0 : index
    %c0_7 = arith.constant 0 : index
    %c0_8 = arith.constant 0 : index
    %5 = vector.load %arg5[%c0_6, %c0_7, %c0_8] : memref<18x48x3xbf16, #tpu.memory_space<vmem>>, vector<18x16x3xbf16>
    tpu.vector_store %arg5[%c0_6, %c0_7, %c0_8], %4 {strides = array<i32>} : memref<18x48x3xbf16, #tpu.memory_space<vmem>>, vector<18x16x3xbf16>,
    %cst_9 = arith.constant 0.000000e+00 : bf16
    %6 = vector.broadcast %cst_9 : bf16 to vector<18x16x3xbf16>
    %c0_10 = arith.constant 0 : index
    %c32 = arith.constant 32 : index
    %c0_11 = arith.constant 0 : index
    %7 = vector.load %arg5[%c0_10, %c32, %c0_11] : memref<18x48x3xbf16, #tpu.memory_space<vmem>>, vector<18x16x3xbf16>
    tpu.vector_store %arg5[%c0_10, %c32, %c0_11], %6 {strides = array<i32>} : memref<18x48x3xbf16, #tpu.memory_space<vmem>>, vector<18x16x3xbf16>,
    %c0_12 = arith.constant 0 : index
    %c0_13 = arith.constant 0 : index
    %c0_14 = arith.constant 0 : index
    %c0_15 = arith.constant 0 : index
    %8 = vector.load %arg1[%c0_12, %c0_13, %c0_14, %c0_15] : memref<1x16x16x3xbf16, #tpu.memory_space<vmem>>, vector<1x16x16x3xbf16>
    %9 = vector.shape_cast %8 : vector<1x16x16x3xbf16> to vector<16x16x3xbf16>
    %c1 = arith.constant 1 : index
    %c16 = arith.constant 16 : index
    %c0_16 = arith.constant 0 : index
    %10 = vector.load %arg5[%c1, %c16, %c0_16] : memref<18x48x3xbf16, #tpu.memory_space<vmem>>, vector<16x16x3xbf16>
    tpu.vector_store %arg5[%c1, %c16, %c0_16], %9 {strides = array<i32>} : memref<18x48x3xbf16, #tpu.memory_space<vmem>>, vector<16x16x3xbf16>,
    %c0_17 = arith.constant 0 : index
    %c0_18 = arith.constant 0 : index
    %11 = vector.load %arg2[%c0_17, %c0_18] : memref<27x32xbf16, #tpu.memory_space<vmem>>, vector<27x32xbf16>
    %c0_19 = arith.constant 0 : index
    %c0_20 = arith.constant 0 : index
    %12 = vector.load %arg3[%c0_19, %c0_20] : memref<1x32xf32, #tpu.memory_space<vmem>>, vector<1x32xf32>
    %c0_i32 = arith.constant 0 : i32
    %c16_i32 = arith.constant 16 : i32
    %13 = arith.muli %c0_i32, %c16_i32 : i32
    %14 = tpu.assume_multiple %13, 16 : i32
    %c0_i32_21 = arith.constant 0 : i32
    %15 = arith.addi %14, %c0_i32_21 : i32
    %16 = arith.index_cast %15 : i32 to index
    %c15 = arith.constant 15 : index
    %c0_22 = arith.constant 0 : index
    %17 = vector.load %arg5[%16, %c15, %c0_22] : memref<18x48x3xbf16, #tpu.memory_space<vmem>>, vector<16x16x3xbf16>
    %c0_23 = arith.constant 0 : index
    %c0_24 = arith.constant 0 : index
    %c0_25 = arith.constant 0 : index
    %18 = vector.load %arg6[%c0_23, %c0_24, %c0_25] : memref<16x16x27xbf16, #tpu.memory_space<vmem>>, vector<16x16x3xbf16>
    tpu.vector_store %arg6[%c0_23, %c0_24, %c0_25], %17 {strides = array<i32>} : memref<16x16x27xbf16, #tpu.memory_space<vmem>>, vector<16x16x3xbf16>,
    %c0_i32_26 = arith.constant 0 : i32
    %19 = arith.addi %14, %c0_i32_26 : i32
    %20 = arith.index_cast %19 : i32 to index
    %c16_27 = arith.constant 16 : index
    %c0_28 = arith.constant 0 : index
    %21 = vector.load %arg5[%20, %c16_27, %c0_28] : memref<18x48x3xbf16, #tpu.memory_space<vmem>>, vector<16x16x3xbf16>
    %c0_29 = arith.constant 0 : index
    %c0_30 = arith.constant 0 : index
    %c3 = arith.constant 3 : index
    %22 = vector.load %arg6[%c0_29, %c0_30, %c3] : memref<16x16x27xbf16, #tpu.memory_space<vmem>>, vector<16x16x3xbf16>
    tpu.vector_store %arg6[%c0_29, %c0_30, %c3], %21 {strides = array<i32>} : memref<16x16x27xbf16, #tpu.memory_space<vmem>>, vector<16x16x3xbf16>,
    %c0_i32_31 = arith.constant 0 : i32
    %23 = arith.addi %14, %c0_i32_31 : i32
    %24 = arith.index_cast %23 : i32 to index
    %c17_32 = arith.constant 17 : index
    %c0_33 = arith.constant 0 : index
    %25 = vector.load %arg5[%24, %c17_32, %c0_33] : memref<18x48x3xbf16, #tpu.memory_space<vmem>>, vector<16x16x3xbf16>
    %c0_34 = arith.constant 0 : index
    %c0_35 = arith.constant 0 : index
    %c6 = arith.constant 6 : index
    %26 = vector.load %arg6[%c0_34, %c0_35, %c6] : memref<16x16x27xbf16, #tpu.memory_space<vmem>>, vector<16x16x3xbf16>
    tpu.vector_store %arg6[%c0_34, %c0_35, %c6], %25 {strides = array<i32>} : memref<16x16x27xbf16, #tpu.memory_space<vmem>>, vector<16x16x3xbf16>,
    %c1_i32 = arith.constant 1 : i32
    %27 = arith.addi %14, %c1_i32 : i32
    %28 = arith.index_cast %27 : i32 to index
    %c15_36 = arith.constant 15 : index
    %c0_37 = arith.constant 0 : index
    %29 = vector.load %arg5[%28, %c15_36, %c0_37] : memref<18x48x3xbf16, #tpu.memory_space<vmem>>, vector<16x16x3xbf16>
    %c0_38 = arith.constant 0 : index
    %c0_39 = arith.constant 0 : index
    %c9 = arith.constant 9 : index
    %30 = vector.load %arg6[%c0_38, %c0_39, %c9] : memref<16x16x27xbf16, #tpu.memory_space<vmem>>, vector<16x16x3xbf16>
    tpu.vector_store %arg6[%c0_38, %c0_39, %c9], %29 {strides = array<i32>} : memref<16x16x27xbf16, #tpu.memory_space<vmem>>, vector<16x16x3xbf16>,
    %c1_i32_40 = arith.constant 1 : i32
    %31 = arith.addi %14, %c1_i32_40 : i32
    %32 = arith.index_cast %31 : i32 to index
    %c16_41 = arith.constant 16 : index
    %c0_42 = arith.constant 0 : index
    %33 = vector.load %arg5[%32, %c16_41, %c0_42] : memref<18x48x3xbf16, #tpu.memory_space<vmem>>, vector<16x16x3xbf16>
    %c0_43 = arith.constant 0 : index
    %c0_44 = arith.constant 0 : index
    %c12 = arith.constant 12 : index
    %34 = vector.load %arg6[%c0_43, %c0_44, %c12] : memref<16x16x27xbf16, #tpu.memory_space<vmem>>, vector<16x16x3xbf16>
    tpu.vector_store %arg6[%c0_43, %c0_44, %c12], %33 {strides = array<i32>} : memref<16x16x27xbf16, #tpu.memory_space<vmem>>, vector<16x16x3xbf16>,
    %c1_i32_45 = arith.constant 1 : i32
    %35 = arith.addi %14, %c1_i32_45 : i32
    %36 = arith.index_cast %35 : i32 to index
    %c17_46 = arith.constant 17 : index
    %c0_47 = arith.constant 0 : index
    %37 = vector.load %arg5[%36, %c17_46, %c0_47] : memref<18x48x3xbf16, #tpu.memory_space<vmem>>, vector<16x16x3xbf16>
    %c0_48 = arith.constant 0 : index
    %c0_49 = arith.constant 0 : index
    %c15_50 = arith.constant 15 : index
    %38 = vector.load %arg6[%c0_48, %c0_49, %c15_50] : memref<16x16x27xbf16, #tpu.memory_space<vmem>>, vector<16x16x3xbf16>
    tpu.vector_store %arg6[%c0_48, %c0_49, %c15_50], %37 {strides = array<i32>} : memref<16x16x27xbf16, #tpu.memory_space<vmem>>, vector<16x16x3xbf16>,
    %c2_i32 = arith.constant 2 : i32
    %39 = arith.addi %14, %c2_i32 : i32
    %40 = arith.index_cast %39 : i32 to index
    %c15_51 = arith.constant 15 : index
    %c0_52 = arith.constant 0 : index
    %41 = vector.load %arg5[%40, %c15_51, %c0_52] : memref<18x48x3xbf16, #tpu.memory_space<vmem>>, vector<16x16x3xbf16>
    %c0_53 = arith.constant 0 : index
    %c0_54 = arith.constant 0 : index
    %c18 = arith.constant 18 : index
    %42 = vector.load %arg6[%c0_53, %c0_54, %c18] : memref<16x16x27xbf16, #tpu.memory_space<vmem>>, vector<16x16x3xbf16>
    tpu.vector_store %arg6[%c0_53, %c0_54, %c18], %41 {strides = array<i32>} : memref<16x16x27xbf16, #tpu.memory_space<vmem>>, vector<16x16x3xbf16>,
    %c2_i32_55 = arith.constant 2 : i32
    %43 = arith.addi %14, %c2_i32_55 : i32
    %44 = arith.index_cast %43 : i32 to index
    %c16_56 = arith.constant 16 : index
    %c0_57 = arith.constant 0 : index
    %45 = vector.load %arg5[%44, %c16_56, %c0_57] : memref<18x48x3xbf16, #tpu.memory_space<vmem>>, vector<16x16x3xbf16>
    %c0_58 = arith.constant 0 : index
    %c0_59 = arith.constant 0 : index
    %c21 = arith.constant 21 : index
    %46 = vector.load %arg6[%c0_58, %c0_59, %c21] : memref<16x16x27xbf16, #tpu.memory_space<vmem>>, vector<16x16x3xbf16>
    tpu.vector_store %arg6[%c0_58, %c0_59, %c21], %45 {strides = array<i32>} : memref<16x16x27xbf16, #tpu.memory_space<vmem>>, vector<16x16x3xbf16>,
    %c2_i32_60 = arith.constant 2 : i32
    %47 = arith.addi %14, %c2_i32_60 : i32
    %48 = arith.index_cast %47 : i32 to index
    %c17_61 = arith.constant 17 : index
    %c0_62 = arith.constant 0 : index
    %49 = vector.load %arg5[%48, %c17_61, %c0_62] : memref<18x48x3xbf16, #tpu.memory_space<vmem>>, vector<16x16x3xbf16>
    %c0_63 = arith.constant 0 : index
    %c0_64 = arith.constant 0 : index
    %c24 = arith.constant 24 : index
    %50 = vector.load %arg6[%c0_63, %c0_64, %c24] : memref<16x16x27xbf16, #tpu.memory_space<vmem>>, vector<16x16x3xbf16>
    tpu.vector_store %arg6[%c0_63, %c0_64, %c24], %49 {strides = array<i32>} : memref<16x16x27xbf16, #tpu.memory_space<vmem>>, vector<16x16x3xbf16>,
    %c0_65 = arith.constant 0 : index
    %c0_66 = arith.constant 0 : index
    %c0_67 = arith.constant 0 : index
    %51 = vector.load %arg6[%c0_65, %c0_66, %c0_67] : memref<16x16x27xbf16, #tpu.memory_space<vmem>>, vector<16x16x27xbf16>
    %52 = vector.shape_cast %51 : vector<16x16x27xbf16> to vector<256x27xbf16>
    %cst_68 = arith.constant dense<0.000000e+00> : vector<256x32xf32>
    %53 = tpu.matmul %52, %11, %cst_68 {dimension_numbers = #tpu.dot_dimension_numbers<[1], [0], [0], [1], [0, 0, 1, 1], [], []>} : vector<256x27xbf16>, vector<27x32xbf16>, vector<256x32xf32> -> vector<256x32xf32>
    %54 = vector.broadcast %12 : vector<1x32xf32> to vector<256x32xf32>
    %55 = arith.addf %53, %54 : vector<256x32xf32>
    %cst_69 = arith.constant 0.000000e+00 : f32
    %56 = vector.broadcast %cst_69 : f32 to vector<256x32xf32>
    %57 = arith.maximumf %55, %56 : vector<256x32xf32>
    %58 = vector.shape_cast %57 : vector<256x32xf32> to vector<128x2x32xf32>
    %59 = vector.extract_strided_slice %58 {offsets = [0, 0, 0], sizes = [128, 1, 32], strides = [1, 1, 1]} : vector<128x2x32xf32> to vector<128x1x32xf32>
    %60 = vector.shape_cast %59 : vector<128x1x32xf32> to vector<128x32xf32>
    %61 = vector.extract_strided_slice %58 {offsets = [0, 1, 0], sizes = [128, 1, 32], strides = [1, 1, 1]} : vector<128x2x32xf32> to vector<128x1x32xf32>
    %62 = vector.shape_cast %61 : vector<128x1x32xf32> to vector<128x32xf32>
    %63 = arith.maximumf %60, %62 : vector<128x32xf32>
    %64 = vector.shape_cast %63 : vector<128x32xf32> to vector<8x2x8x32xf32>
    %65 = vector.extract_strided_slice %64 {offsets = [0, 0, 0, 0], sizes = [8, 1, 8, 32], strides = [1, 1, 1, 1]} : vector<8x2x8x32xf32> to vector<8x1x8x32xf32>
    %66 = vector.shape_cast %65 : vector<8x1x8x32xf32> to vector<8x8x32xf32>
    %67 = vector.extract_strided_slice %64 {offsets = [0, 1, 0, 0], sizes = [8, 1, 8, 32], strides = [1, 1, 1, 1]} : vector<8x2x8x32xf32> to vector<8x1x8x32xf32>
    %68 = vector.shape_cast %67 : vector<8x1x8x32xf32> to vector<8x8x32xf32>
    %69 = arith.maximumf %66, %68 : vector<8x8x32xf32>
    %70 = arith.truncf %69 : vector<8x8x32xf32> to vector<8x8x32xbf16>
    %c8_i32 = arith.constant 8 : i32
    %71 = arith.muli %c0_i32, %c8_i32 : i32
    %72 = tpu.assume_multiple %71, 8 : i32
    %c0_70 = arith.constant 0 : index
    %73 = arith.index_cast %72 : i32 to index
    %c0_71 = arith.constant 0 : index
    %c0_72 = arith.constant 0 : index
    %74 = vector.load %arg4[%c0_70, %73, %c0_71, %c0_72] : memref<1x8x8x32xbf16, #tpu.memory_space<vmem>>, vector<1x8x8x32xbf16>
    %75 = vector.shape_cast %74 : vector<1x8x8x32xbf16> to vector<8x8x32xbf16>
    %76 = vector.shape_cast %70 : vector<8x8x32xbf16> to vector<1x8x8x32xbf16>
    tpu.vector_store %arg4[%c0_70, %73, %c0_71, %c0_72], %76 {strides = array<i32>} : memref<1x8x8x32xbf16, #tpu.memory_space<vmem>>, vector<1x8x8x32xbf16>,
    %c1_i32_73 = arith.constant 1 : i32
    return
  }
  func.func @transform_0(%arg0: i32) -> (i32, i32, i32, i32) {
    %c0_i32 = arith.constant 0 : i32
    %c0_i32_0 = arith.constant 0 : i32
    %c0_i32_1 = arith.constant 0 : i32
    %c0_i32_2 = arith.constant 0 : i32
    return %arg0, %c0_i32, %c0_i32_0, %c0_i32_1 : i32, i32, i32, i32
  }
  func.func @transform_1(%arg0: i32) -> (i32, i32) {
    %c0_i32 = arith.constant 0 : i32
    %c0_i32_0 = arith.constant 0 : i32
    %c0_i32_1 = arith.constant 0 : i32
    return %c0_i32, %c0_i32_0 : i32, i32
  }
  func.func @transform_2(%arg0: i32) -> (i32, i32) {
    %c0_i32 = arith.constant 0 : i32
    %c0_i32_0 = arith.constant 0 : i32
    %c0_i32_1 = arith.constant 0 : i32
    return %c0_i32, %c0_i32_0 : i32, i32
  }
  func.func @transform_3(%arg0: i32) -> (i32, i32, i32, i32) {
    %c0_i32 = arith.constant 0 : i32
    %c0_i32_0 = arith.constant 0 : i32
    %c0_i32_1 = arith.constant 0 : i32
    %c0_i32_2 = arith.constant 0 : i32
    return %arg0, %c0_i32, %c0_i32_0, %c0_i32_1 : i32, i32, i32, i32
  }
}

module attributes {stable_mosaic.version = 11 : i64} {
  func.func @_tail_kernel(%arg0: i32, %arg1: memref<2x1024xbf16, #tpu.memory_space<vmem>>, %arg2: memref<1024x128xi8, #tpu.memory_space<vmem>>, %arg3: memref<1x128xf32, #tpu.memory_space<vmem>>, %arg4: memref<1x128xf32, #tpu.memory_space<vmem>>, %arg5: memref<2x128xf32, #tpu.memory_space<vmem>>, %arg6: memref<128x128xbf16, #tpu.memory_space<vmem>>, %arg7: memref<128x128xbf16, #tpu.memory_space<vmem>>, %arg8: memref<1x128xf32, #tpu.memory_space<vmem>>, %arg9: memref<128x128xbf16, #tpu.memory_space<vmem>>, %arg10: memref<1x128xf32, #tpu.memory_space<vmem>>, %arg11: memref<1x128xf32, #tpu.memory_space<vmem>>, %arg12: memref<1x128xf32, #tpu.memory_space<vmem>>, %arg13: memref<2x128xf32, #tpu.memory_space<vmem>>, %arg14: memref<2x128xf32, #tpu.memory_space<vmem>>, %arg15: memref<2x128xf32, #tpu.memory_space<vmem>>) attributes {dimension_semantics = [#tpu.dimension_semantics<arbitrary>], iteration_bounds = array<i64: 1>, scalar_prefetch = 0 : i64, scratch_operands = 1 : i64, tpu.core_type = #tpu.core_type<tc>, window_params = [{transform_indices = @transform_0, window_bounds = array<i64: 2, 1024>}, {transform_indices = @transform_1, window_bounds = array<i64: 1024, 128>}, {pipeline_mode = #tpu.pipeline_mode<synchronous>, transform_indices = @transform_2, window_bounds = array<i64: 1, 128>}, {pipeline_mode = #tpu.pipeline_mode<synchronous>, transform_indices = @transform_3, window_bounds = array<i64: 1, 128>}, {pipeline_mode = #tpu.pipeline_mode<synchronous>, transform_indices = @transform_4, window_bounds = array<i64: 2, 128>}, {pipeline_mode = #tpu.pipeline_mode<synchronous>, transform_indices = @transform_5, window_bounds = array<i64: 128, 128>}, {pipeline_mode = #tpu.pipeline_mode<synchronous>, transform_indices = @transform_6, window_bounds = array<i64: 128, 128>}, {pipeline_mode = #tpu.pipeline_mode<synchronous>, transform_indices = @transform_7, window_bounds = array<i64: 1, 128>}, {pipeline_mode = #tpu.pipeline_mode<synchronous>, transform_indices = @transform_8, window_bounds = array<i64: 128, 128>}, {pipeline_mode = #tpu.pipeline_mode<synchronous>, transform_indices = @transform_9, window_bounds = array<i64: 1, 128>}, {pipeline_mode = #tpu.pipeline_mode<synchronous>, transform_indices = @transform_10, window_bounds = array<i64: 1, 128>}, {pipeline_mode = #tpu.pipeline_mode<synchronous>, transform_indices = @transform_11, window_bounds = array<i64: 1, 128>}, {pipeline_mode = #tpu.pipeline_mode<synchronous>, transform_indices = @transform_12, window_bounds = array<i64: 2, 128>}, {pipeline_mode = #tpu.pipeline_mode<synchronous>, transform_indices = @transform_13, window_bounds = array<i64: 2, 128>}]} {
    %c0_i32 = arith.constant 0 : i32
    %0 = arith.cmpi eq, %arg0, %c0_i32 : i32
    %1 = arith.extui %0 : i1 to i32
    %c0_i32_0 = arith.constant 0 : i32
    %2 = arith.cmpi ne, %1, %c0_i32_0 : i32
    scf.if %2 {
      %cst_10 = arith.constant 0.000000e+00 : f32
      %14 = vector.broadcast %cst_10 : f32 to vector<2x128xf32>
      %c0_11 = arith.constant 0 : index
      %c0_12 = arith.constant 0 : index
      %15 = vector.load %arg15[%c0_11, %c0_12] : memref<2x128xf32, #tpu.memory_space<vmem>>, vector<2x128xf32>
      tpu.vector_store %arg15[%c0_11, %c0_12], %14 {strides = array<i32>} : memref<2x128xf32, #tpu.memory_space<vmem>>, vector<2x128xf32>,
    } else {
    }
    %c0 = arith.constant 0 : index
    %c0_1 = arith.constant 0 : index
    %3 = vector.load %arg2[%c0, %c0_1] : memref<1024x128xi8, #tpu.memory_space<vmem>>, vector<1024x128xi8>
    %4 = arith.sitofp %3 : vector<1024x128xi8> to vector<1024x128xf32>
    %5 = arith.truncf %4 : vector<1024x128xf32> to vector<1024x128xbf16>
    %c0_2 = arith.constant 0 : index
    %c0_3 = arith.constant 0 : index
    %6 = vector.load %arg15[%c0_2, %c0_3] : memref<2x128xf32, #tpu.memory_space<vmem>>, vector<2x128xf32>
    %c0_4 = arith.constant 0 : index
    %c0_5 = arith.constant 0 : index
    %7 = vector.load %arg1[%c0_4, %c0_5] : memref<2x1024xbf16, #tpu.memory_space<vmem>>, vector<2x1024xbf16>
    %cst = arith.constant dense<0.000000e+00> : vector<2x128xf32>
    %8 = tpu.matmul %7, %5, %cst {dimension_numbers = #tpu.dot_dimension_numbers<[1], [0], [0], [1], [0, 0, 1, 1], [], []>} : vector<2x1024xbf16>, vector<1024x128xbf16>, vector<2x128xf32> -> vector<2x128xf32>
    %9 = arith.addf %6, %8 : vector<2x128xf32>
    %c0_6 = arith.constant 0 : index
    %c0_7 = arith.constant 0 : index
    %10 = vector.load %arg15[%c0_6, %c0_7] : memref<2x128xf32, #tpu.memory_space<vmem>>, vector<2x128xf32>
    tpu.vector_store %arg15[%c0_6, %c0_7], %9 {strides = array<i32>} : memref<2x128xf32, #tpu.memory_space<vmem>>, vector<2x128xf32>,
    %c0_i32_8 = arith.constant 0 : i32
    %11 = arith.cmpi eq, %arg0, %c0_i32_8 : i32
    %12 = arith.extui %11 : i1 to i32
    %c0_i32_9 = arith.constant 0 : i32
    %13 = arith.cmpi ne, %12, %c0_i32_9 : i32
    scf.if %13 {
      %c0_10 = arith.constant 0 : index
      %c0_11 = arith.constant 0 : index
      %14 = vector.load %arg15[%c0_10, %c0_11] : memref<2x128xf32, #tpu.memory_space<vmem>>, vector<2x128xf32>
      %c0_12 = arith.constant 0 : index
      %c0_13 = arith.constant 0 : index
      %15 = vector.load %arg3[%c0_12, %c0_13] : memref<1x128xf32, #tpu.memory_space<vmem>>, vector<1x128xf32>
      %16 = vector.broadcast %15 : vector<1x128xf32> to vector<2x128xf32>
      %17 = arith.mulf %14, %16 : vector<2x128xf32>
      %c0_14 = arith.constant 0 : index
      %c0_15 = arith.constant 0 : index
      %18 = vector.load %arg4[%c0_14, %c0_15] : memref<1x128xf32, #tpu.memory_space<vmem>>, vector<1x128xf32>
      %19 = vector.broadcast %18 : vector<1x128xf32> to vector<2x128xf32>
      %20 = arith.addf %17, %19 : vector<2x128xf32>
      %cst_16 = arith.constant 0.000000e+00 : f32
      %21 = vector.broadcast %cst_16 : f32 to vector<2x128xf32>
      %22 = arith.maximumf %20, %21 : vector<2x128xf32>
      %c0_17 = arith.constant 0 : index
      %c0_18 = arith.constant 0 : index
      %23 = vector.load %arg5[%c0_17, %c0_18] : memref<2x128xf32, #tpu.memory_space<vmem>>, vector<2x128xf32>
      %24 = arith.truncf %22 : vector<2x128xf32> to vector<2x128xbf16>
      %c0_19 = arith.constant 0 : index
      %c0_20 = arith.constant 0 : index
      %25 = vector.load %arg6[%c0_19, %c0_20] : memref<128x128xbf16, #tpu.memory_space<vmem>>, vector<128x128xbf16>
      %cst_21 = arith.constant dense<0.000000e+00> : vector<2x128xf32>
      %26 = tpu.matmul %24, %25, %cst_21 {dimension_numbers = #tpu.dot_dimension_numbers<[1], [0], [0], [1], [0, 0, 1, 1], [], []>} : vector<2x128xbf16>, vector<128x128xbf16>, vector<2x128xf32> -> vector<2x128xf32>
      %27 = arith.truncf %23 : vector<2x128xf32> to vector<2x128xbf16>
      %c0_22 = arith.constant 0 : index
      %c0_23 = arith.constant 0 : index
      %28 = vector.load %arg7[%c0_22, %c0_23] : memref<128x128xbf16, #tpu.memory_space<vmem>>, vector<128x128xbf16>
      %cst_24 = arith.constant dense<0.000000e+00> : vector<2x128xf32>
      %29 = tpu.matmul %27, %28, %cst_24 {dimension_numbers = #tpu.dot_dimension_numbers<[1], [0], [0], [1], [0, 0, 1, 1], [], []>} : vector<2x128xbf16>, vector<128x128xbf16>, vector<2x128xf32> -> vector<2x128xf32>
      %30 = arith.addf %26, %29 : vector<2x128xf32>
      %c0_25 = arith.constant 0 : index
      %c0_26 = arith.constant 0 : index
      %31 = vector.load %arg8[%c0_25, %c0_26] : memref<1x128xf32, #tpu.memory_space<vmem>>, vector<1x128xf32>
      %32 = vector.broadcast %31 : vector<1x128xf32> to vector<2x128xf32>
      %33 = arith.addf %30, %32 : vector<2x128xf32>
      %34 = math.tanh %33 : vector<2x128xf32>
      %35 = arith.truncf %34 : vector<2x128xf32> to vector<2x128xbf16>
      %c0_27 = arith.constant 0 : index
      %c0_28 = arith.constant 0 : index
      %36 = vector.load %arg9[%c0_27, %c0_28] : memref<128x128xbf16, #tpu.memory_space<vmem>>, vector<128x128xbf16>
      %cst_29 = arith.constant dense<0.000000e+00> : vector<2x128xf32>
      %37 = tpu.matmul %35, %36, %cst_29 {dimension_numbers = #tpu.dot_dimension_numbers<[1], [0], [0], [1], [0, 0, 1, 1], [], []>} : vector<2x128xbf16>, vector<128x128xbf16>, vector<2x128xf32> -> vector<2x128xf32>
      %c0_30 = arith.constant 0 : index
      %c0_31 = arith.constant 0 : index
      %38 = vector.load %arg10[%c0_30, %c0_31] : memref<1x128xf32, #tpu.memory_space<vmem>>, vector<1x128xf32>
      %39 = vector.broadcast %38 : vector<1x128xf32> to vector<2x128xf32>
      %40 = arith.addf %37, %39 : vector<2x128xf32>
      %cst_32 = arith.constant dense<0.000000e+00> : vector<2xf32>
      %41 = vector.multi_reduction <add>, %40, %cst_32 [1] : vector<2x128xf32> to vector<2xf32>
      %42 = vector.shape_cast %41 : vector<2xf32> to vector<2x1xf32>
      %cst_33 = arith.constant 1.280000e+02 : f32
      %43 = vector.broadcast %cst_33 : f32 to vector<2x1xf32>
      %44 = arith.divf %42, %43 : vector<2x1xf32>
      %45 = vector.broadcast %44 : vector<2x1xf32> to vector<2x128xf32>
      %46 = arith.subf %40, %45 : vector<2x128xf32>
      %47 = arith.mulf %46, %46 : vector<2x128xf32>
      %cst_34 = arith.constant dense<0.000000e+00> : vector<2xf32>
      %48 = vector.multi_reduction <add>, %47, %cst_34 [1] : vector<2x128xf32> to vector<2xf32>
      %49 = vector.shape_cast %48 : vector<2xf32> to vector<2x1xf32>
      %cst_35 = arith.constant 1.280000e+02 : f32
      %50 = vector.broadcast %cst_35 : f32 to vector<2x1xf32>
      %51 = arith.divf %49, %50 : vector<2x1xf32>
      %52 = vector.broadcast %44 : vector<2x1xf32> to vector<2x128xf32>
      %53 = arith.subf %40, %52 : vector<2x128xf32>
      %cst_36 = arith.constant 9.99999974E-6 : f32
      %54 = vector.broadcast %cst_36 : f32 to vector<2x1xf32>
      %55 = arith.addf %51, %54 : vector<2x1xf32>
      %56 = math.rsqrt %55 : vector<2x1xf32>
      %57 = vector.broadcast %56 : vector<2x1xf32> to vector<2x128xf32>
      %58 = arith.mulf %53, %57 : vector<2x128xf32>
      %c0_37 = arith.constant 0 : index
      %c0_38 = arith.constant 0 : index
      %59 = vector.load %arg11[%c0_37, %c0_38] : memref<1x128xf32, #tpu.memory_space<vmem>>, vector<1x128xf32>
      %60 = vector.broadcast %59 : vector<1x128xf32> to vector<2x128xf32>
      %61 = arith.mulf %58, %60 : vector<2x128xf32>
      %c0_39 = arith.constant 0 : index
      %c0_40 = arith.constant 0 : index
      %62 = vector.load %arg12[%c0_39, %c0_40] : memref<1x128xf32, #tpu.memory_space<vmem>>, vector<1x128xf32>
      %63 = vector.broadcast %62 : vector<1x128xf32> to vector<2x128xf32>
      %64 = arith.addf %61, %63 : vector<2x128xf32>
      %c0_41 = arith.constant 0 : index
      %c0_42 = arith.constant 0 : index
      %65 = vector.load %arg13[%c0_41, %c0_42] : memref<2x128xf32, #tpu.memory_space<vmem>>, vector<2x128xf32>
      tpu.vector_store %arg13[%c0_41, %c0_42], %64 {strides = array<i32>} : memref<2x128xf32, #tpu.memory_space<vmem>>, vector<2x128xf32>,
      %c0_43 = arith.constant 0 : index
      %c0_44 = arith.constant 0 : index
      %66 = vector.load %arg14[%c0_43, %c0_44] : memref<2x128xf32, #tpu.memory_space<vmem>>, vector<2x128xf32>
      tpu.vector_store %arg14[%c0_43, %c0_44], %34 {strides = array<i32>} : memref<2x128xf32, #tpu.memory_space<vmem>>, vector<2x128xf32>,
    } else {
    }
    return
  }
  func.func @transform_0(%arg0: i32) -> (i32, i32) {
    %c0_i32 = arith.constant 0 : i32
    %c0_i32_0 = arith.constant 0 : i32
    return %c0_i32, %arg0 : i32, i32
  }
  func.func @transform_1(%arg0: i32) -> (i32, i32) {
    %c0_i32 = arith.constant 0 : i32
    %c0_i32_0 = arith.constant 0 : i32
    return %arg0, %c0_i32 : i32, i32
  }
  func.func @transform_2(%arg0: i32) -> (i32, i32) {
    %c0_i32 = arith.constant 0 : i32
    %c0_i32_0 = arith.constant 0 : i32
    %c0_i32_1 = arith.constant 0 : i32
    return %c0_i32, %c0_i32_0 : i32, i32
  }
  func.func @transform_3(%arg0: i32) -> (i32, i32) {
    %c0_i32 = arith.constant 0 : i32
    %c0_i32_0 = arith.constant 0 : i32
    %c0_i32_1 = arith.constant 0 : i32
    return %c0_i32, %c0_i32_0 : i32, i32
  }
  func.func @transform_4(%arg0: i32) -> (i32, i32) {
    %c0_i32 = arith.constant 0 : i32
    %c0_i32_0 = arith.constant 0 : i32
    %c0_i32_1 = arith.constant 0 : i32
    return %c0_i32, %c0_i32_0 : i32, i32
  }
  func.func @transform_5(%arg0: i32) -> (i32, i32) {
    %c0_i32 = arith.constant 0 : i32
    %c0_i32_0 = arith.constant 0 : i32
    %c0_i32_1 = arith.constant 0 : i32
    return %c0_i32, %c0_i32_0 : i32, i32
  }
  func.func @transform_6(%arg0: i32) -> (i32, i32) {
    %c0_i32 = arith.constant 0 : i32
    %c0_i32_0 = arith.constant 0 : i32
    %c0_i32_1 = arith.constant 0 : i32
    return %c0_i32, %c0_i32_0 : i32, i32
  }
  func.func @transform_7(%arg0: i32) -> (i32, i32) {
    %c0_i32 = arith.constant 0 : i32
    %c0_i32_0 = arith.constant 0 : i32
    %c0_i32_1 = arith.constant 0 : i32
    return %c0_i32, %c0_i32_0 : i32, i32
  }
  func.func @transform_8(%arg0: i32) -> (i32, i32) {
    %c0_i32 = arith.constant 0 : i32
    %c0_i32_0 = arith.constant 0 : i32
    %c0_i32_1 = arith.constant 0 : i32
    return %c0_i32, %c0_i32_0 : i32, i32
  }
  func.func @transform_9(%arg0: i32) -> (i32, i32) {
    %c0_i32 = arith.constant 0 : i32
    %c0_i32_0 = arith.constant 0 : i32
    %c0_i32_1 = arith.constant 0 : i32
    return %c0_i32, %c0_i32_0 : i32, i32
  }
  func.func @transform_10(%arg0: i32) -> (i32, i32) {
    %c0_i32 = arith.constant 0 : i32
    %c0_i32_0 = arith.constant 0 : i32
    %c0_i32_1 = arith.constant 0 : i32
    return %c0_i32, %c0_i32_0 : i32, i32
  }
  func.func @transform_11(%arg0: i32) -> (i32, i32) {
    %c0_i32 = arith.constant 0 : i32
    %c0_i32_0 = arith.constant 0 : i32
    %c0_i32_1 = arith.constant 0 : i32
    return %c0_i32, %c0_i32_0 : i32, i32
  }
  func.func @transform_12(%arg0: i32) -> (i32, i32) {
    %c0_i32 = arith.constant 0 : i32
    %c0_i32_0 = arith.constant 0 : i32
    %c0_i32_1 = arith.constant 0 : i32
    return %c0_i32, %c0_i32_0 : i32, i32
  }
  func.func @transform_13(%arg0: i32) -> (i32, i32) {
    %c0_i32 = arith.constant 0 : i32
    %c0_i32_0 = arith.constant 0 : i32
    %c0_i32_1 = arith.constant 0 : i32
    return %c0_i32, %c0_i32_0 : i32, i32
  }
}

</mosaic_0001>

<bundles_post_ra>
// kernel: vpt_encode.5
= control target key start
LH: loop header
LB: loop body
LE: loop exit
PB: predicated region body
PF: predicated region fallthrough
CT: control target
= control target key end

     0   :  { %19 = vsyncpa [#allocation4], 0  ;;  %s1453_s0 = inlined_call_operand.vmem [shape: bf16[2,1024], index: 0, kind: input, shape index: {}]   ;;  %s1454_s1 = inlined_call_operand.vmem [shape: s8[1024,128], index: 1, kind: input, shape index: {}]   ;;  %s1455_s2 = inlined_call_operand.vmem [shape: f32[1,128], index: 2, kind: input, shape index: {}]   ;;  %s1456_s3 = inlined_call_operand.vmem [shape: f32[1,128], index: 3, kind: input, shape index: {}]   ;;  %s1457_s4 = inlined_call_operand.hbm [shape: f32[2,128], index: 4, kind: input, shape index: {}, may-alias: {4,13}]   ;;  %s1458_s5 = inlined_call_operand.vmem [shape: bf16[128,128], index: 5, kind: input, shape index: {}]   ;;  %s1459_s6 = inlined_call_operand.vmem [shape: bf16[128,128], index: 6, kind: input, shape index: {}]   ;;  %s1460_s7 = inlined_call_operand.vmem [shape: f32[1,128], index: 7, kind: input, shape index: {}]   ;;  %s1461_s8 = inlined_call_operand.vmem [shape: bf16[128,128], index: 8, kind: input, shape index: {}]   ;;  %s1462_s9 = inlined_call_operand.vmem [shape: f32[1,128], index: 9, kind: input, shape index: {}]   ;;  %s1463_s10 = inlined_call_operand.vmem [shape: f32[1,128], index: 10, kind: input, shape index: {}]   ;;  %s1464_s11 = inlined_call_operand.vmem [shape: f32[1,128], index: 11, kind: input, shape index: {}]   ;;  %s1465_s12 = inlined_call_operand.hbm [shape: f32[2,128], index: 12, kind: output, shape index: {0}]   ;;  %s1466_s13 = inlined_call_operand.hbm [shape: f32[2,128], index: 13, kind: output, shape index: {1}, may-alias: {4,13}]  }
   0x1   :  { %20 = vsyncpa [#allocation5], 0 }
   0x2   :  { %21 = vsyncpa [#allocation8], 0  ;;  %s1108_s25 = smov [#allocation3]   ;;  %s1036_s29 = scalar_lea.hbm %s1457_s4, 32 }
   0x3   :  { %s36_s26 = sshll.u32 %s1108_s25, 4  ;;  %p1037_p0 = scmp.ne.s32.totalorder %s1457_s4, %s1036_s29  ;;  %s37_s26 = int_to_ptr.vmem [resolvable:$true] %s36_s26 }
   0x4   :  { %p1040_p1 = scmp.lt.u32.totalorder %s1036_s29, %s1457_s4 }
   0x6   :  { %p1042_p2 = pnand %p1040_p1, %p1037_p0 }
   0x8   :  { %1045 = shalt.err (!%p1042_p2)
}
   0x9   :  { %s1046_s17 = scalar_lea.vmem %s37_s26, 32  ;;  %p1051_p4 = scmp.lt.s32.totalorder %s37_s26, %s37_s26 }
   0xa   :  { %p1047_p3 = scmp.ne.s32.totalorder %s37_s26, %s1046_s17  ;;  %p1052_p5 = scmp.lt.s32.totalorder %s1046_s17, %s1046_s17 }
   0xc   :  { %p1053_p6 = por %p1052_p5, %p1051_p4 }
   0xe   :  { %p1054_p7 = pnand %p1053_p6, %p1047_p3 }
  0x10   :  { %1057 = shalt.err (!%p1054_p7)
}
  0x11   :  { %39 = dma.hbm_to_vmem [thread:$0]  %s1457_s4, 32, %s37_s26, [#allocation4]  }
  0x12   :  { %1102 = dma.done.wait [#allocation4], 32  }
  0x13   :  { %1103 = vsyncadd [#allocation4], 4294967264  ;;  %v1109_v0 = vmov 1966171168   ;;  %v166_v2 = vlaneseq  ;;  %v67_v3 = vld [vmem:[%s1454_s1 + $0x20] sm:$0xff]  ;;  %v68_v15 = vld [vmem:[%s1454_s1 + $0x28] sm:$0xff] }
  0x14   :  { %v164_v1 = vunpack.c.l.s4 %v1109_v0  ;;  %v75_v4 = vld [vmem:[%s1454_s1 + $0x60] sm:$0xff]  ;;  %v103_v8 = vunpack.c.l.s8.bf16 %v67_v3  ;;  %v104_v9 = vunpack.c.h.s8.bf16 %v67_v3  ;;  %v76_v16 = vld [vmem:[%s1454_s1 + $0x68] sm:$0xff]  ;;  %v105_v19 = vunpack.c.l.s8.bf16 %v68_v15  ;;  %v69_v30 = vld [vmem:[%s1454_s1 + $0x30] sm:$0xff] }
  0x15   :  { %v63_v5 = vld [vmem:[%s1454_s1] sm:$0xff]  ;;  %v167_v7 = vshrl.u32 %v166_v2, 7  ;;  %v119_v10 = vunpack.c.l.s8.bf16 %v75_v4  ;;  %v120_v11 = vunpack.c.h.s8.bf16 %v75_v4  ;;  %v121_v20 = vunpack.c.l.s8.bf16 %v76_v16  ;;  %v64_v21 = vld [vmem:[%s1454_s1 + $0x8] sm:$0xff]  ;;  %v77_v31 = vld [vmem:[%s1454_s1 + $0x70] sm:$0xff] }
  0x16   :  { %v165_v6 = vunpack.c.0.s8 %v164_v1  ;;  %v71_v12 = vld [vmem:[%s1454_s1 + $0x40] sm:$0xff]  ;;  %v95_v13 = vunpack.c.l.s8.bf16 %v63_v5  ;;  %826 = vmatprep.subr.bf16.mxu0 %v103_v8  ;;  %v96_v17 = vunpack.c.h.s8.bf16 %v63_v5  ;;  %v72_v22 = vld [vmem:[%s1454_s1 + $0x48] sm:$0xff]  ;;  %v97_v25 = vunpack.c.l.s8.bf16 %v64_v21  ;;  %v65_v32 = vld [vmem:[%s1454_s1 + $0x10] sm:$0xff] }
  0x17   :  { %v111_v14 = vunpack.c.l.s8.bf16 %v71_v12  ;;  %848 = vmatprep.subr.bf16.mxu1 %v119_v10  ;;  %v112_v18 = vunpack.c.h.s8.bf16 %v71_v12  ;;  %v160_v24 = vld [vmem:[%s1453_s0] sm:$0xff]  ;;  %v113_v26 = vunpack.c.l.s8.bf16 %v72_v22  ;;  %v106_v27 = vunpack.c.h.s8.bf16 %v68_v15  ;;  %v73_v33 = vld [vmem:[%s1454_s1 + $0x50] sm:$0xff]  ;;  %v70_v43 = vld [vmem:[%s1454_s1 + $0x38] sm:$0xff] }
  0x18   :  { %827 = vmatpush3.bf16.msra.mxu0 %v95_v13  ;;  %v1220_v23 = vsub.s32 %v165_v6, %v167_v7  ;;  %v122_v28 = vunpack.c.h.s8.bf16 %v76_v16  ;;  %v98_v35 = vunpack.c.h.s8.bf16 %v64_v21  ;;  %v114_v36 = vunpack.c.h.s8.bf16 %v72_v22  ;;  %v78_v44 = vld [vmem:[%s1454_s1 + $0x78] sm:$0xff]  ;;  %v83_v57 = vld [vmem:[%s1454_s1 + $0xa0] sm:$0xff]  ;;  %v92_v12 = vld [vmem:[%s1454_s1 + $0xe8] sm:$0xff] }
  0x19   :  { %849 = vmatpush3.bf16.msra.mxu1 %v111_v14  ;;  %828 = vmatprep.subr.bf16.mxu0 %v104_v9  ;;  %v107_v37 = vunpack.c.l.s8.bf16 %v69_v30  ;;  %v123_v38 = vunpack.c.l.s8.bf16 %v77_v31  ;;  %v99_v41 = vunpack.c.l.s8.bf16 %v65_v32  ;;  %v115_v42 = vunpack.c.l.s8.bf16 %v73_v33  ;;  %v66_v48 = vld [vmem:[%s1454_s1 + $0x18] sm:$0xff]  ;;  %v91_v58 = vld [vmem:[%s1454_s1 + $0xe0] sm:$0xff] }
  0x1a   :  { %850 = vmatprep.subr.bf16.mxu1 %v120_v11  ;;  %v169_v29 = vrot.slane %v160_v24, %v1220_v23  ;;  %v108_v45 = vunpack.c.h.s8.bf16 %v69_v30  ;;  %v124_v46 = vunpack.c.h.s8.bf16 %v77_v31  ;;  %v162_v47 = vcombine.high %v160_v24, %v160_v24  ;;  %v74_v49 = vld [vmem:[%s1454_s1 + $0x58] sm:$0xff]  ;;  %v79_v3 = vld [vmem:[%s1454_s1 + $0x80] sm:$0xff]  ;;  %v84_v11 = vld [vmem:[%s1454_s1 + $0xa8] sm:$0xff] }
  0x1b   :  { %v100_v50 = vunpack.c.h.s8.bf16 %v65_v32  ;;  %v116_v51 = vunpack.c.h.s8.bf16 %v73_v33  ;;  %v109_v52 = vunpack.c.l.s8.bf16 %v70_v43  ;;  %v125_v53 = vunpack.c.l.s8.bf16 %v78_v44  ;;  %v87_v4 = vld [vmem:[%s1454_s1 + $0xc0] sm:$0xff]  ;;  %v81_v31 = vld [vmem:[%s1454_s1 + $0x90] sm:$0xff] }
  0x1c   :  { %829 = vmatpush3.bf16.msra.mxu0 %v96_v17  ;;  %v177_v34 = vcombine.high %v169_v29, %v169_v29  ;;  %v1252_v54 = vrot.slane %v162_v47, %v1220_v23  ;;  %v101_v55 = vunpack.c.l.s8.bf16 %v66_v48  ;;  %v117_v56 = vunpack.c.l.s8.bf16 %v74_v49  ;;  %v89_v32 = vld [vmem:[%s1454_s1 + $0xd0] sm:$0xff] }
  0x1d   :  { %851 = vmatpush3.bf16.msra.mxu1 %v112_v18  ;;  %830 = vmatprep.subr.bf16.mxu0 %v105_v19  ;;  %v110_v59 = vunpack.c.h.s8.bf16 %v70_v43  ;;  %v126_v60 = vunpack.c.h.s8.bf16 %v78_v44  ;;  %v185_v62 = vrot.slane %v169_v29, %v1220_v23  ;;  %v102_v63 = vunpack.c.h.s8.bf16 %v66_v48  ;;  %v80_v18 = vld [vmem:[%s1454_s1 + $0x88] sm:$0xff]  ;;  %v82_v43 = vld [vmem:[%s1454_s1 + $0x98] sm:$0xff] }
  0x1e   :  { %852 = vmatprep.subr.bf16.mxu1 %v121_v20  ;;  %v199_v39 = vrot.slane %v177_v34, %v1220_v23  ;;  %v178_v61 = vcombine.high %v1252_v54, %v1252_v54  ;;  %v118_v0 = vunpack.c.h.s8.bf16 %v74_v49  ;;  %v135_v1 = vunpack.c.l.s8.bf16 %v83_v57  ;;  %v88_v19 = vld [vmem:[%s1454_s1 + $0xc8] sm:$0xff]  ;;  %v90_v44 = vld [vmem:[%s1454_s1 + $0xd8] sm:$0xff] }
  0x1f   :  { %v151_v2 = vunpack.c.l.s8.bf16 %v91_v58  ;;  %v207_v6 = vcombine.high %v185_v62, %v185_v62  ;;  %v127_v7 = vunpack.c.l.s8.bf16 %v79_v3  ;;  %v143_v8 = vunpack.c.l.s8.bf16 %v87_v4 }
  0x20   :  { %831 = vmatpush3.bf16.msra.mxu0 %v97_v25  ;;  %251 = vmatprep.mubr.bf16.mxu0 %v199_v39  ;;  %v209_v40 = vcombine.high %v199_v39, %v199_v39  ;;  %v206_v5 = vrot.slane %v178_v61, %v1220_v23  ;;  %v136_v9 = vunpack.c.h.s8.bf16 %v83_v57  ;;  %v152_v10 = vunpack.c.h.s8.bf16 %v91_v58  ;;  %v85_v25 = vld [vmem:[%s1454_s1 + $0xb0] sm:$0xff]  ;;  %v1016_v61 = vld [vmem:[%s1459_s6 + $0x20] sm:$0xff]  }
  0x21   :  { %853 = vmatpush3.bf16.msra.mxu1 %v113_v26  ;;  %832 = vmatprep.subr.bf16.mxu0 %v106_v27  ;;  %v128_v14 = vunpack.c.h.s8.bf16 %v79_v3  ;;  %v144_v15 = vunpack.c.h.s8.bf16 %v87_v4  ;;  %v137_v16 = vunpack.c.l.s8.bf16 %v84_v11  ;;  %v153_v17 = vunpack.c.l.s8.bf16 %v92_v12  ;;  %v93_v26 = vld [vmem:[%s1454_s1 + $0xf0] sm:$0xff]  ;;  %v1022_v3 = vld [vmem:[%s1459_s6 + $0x38] sm:$0xff]   ;;  %v402_v4 = vld [vmem:[#allocation3] sm:$0x3] }
  0x22   :  { %854 = vmatprep.subr.bf16.mxu1 %v122_v28  ;;  %291 = vmatprep.mubr.bf16.mxu1 %v209_v40  ;;  %v210_v13 = vcombine.high %v206_v5, %v206_v5  ;;  %v129_v20 = vunpack.c.l.s8.bf16 %v80_v18  ;;  %v145_v21 = vunpack.c.l.s8.bf16 %v88_v19  ;;  %v138_v22 = vunpack.c.h.s8.bf16 %v84_v11  ;;  %v1012_v57 = vld [vmem:[%s1459_s6 + $0x10] sm:$0xff]  }
  0x23   :  { %v154_v24 = vunpack.c.h.s8.bf16 %v92_v12  ;;  %v130_v27 = vunpack.c.h.s8.bf16 %v80_v18  ;;  %v146_v28 = vunpack.c.h.s8.bf16 %v88_v19  ;;  %v139_v29 = vunpack.c.l.s8.bf16 %v85_v25  ;;  %v1013_v58 = vld [vmem:[%s1458_s5 + $0x10] sm:$0xff]  }
  0x24   :  { %833 = vmatpush3.bf16.msra.mxu0 %v98_v35  ;;  %v155_v30 = vunpack.c.l.s8.bf16 %v93_v26  ;;  %v131_v33 = vunpack.c.l.s8.bf16 %v81_v31  ;;  %v147_v34 = vunpack.c.l.s8.bf16 %v89_v32  ;;  %v140_v35 = vunpack.c.h.s8.bf16 %v85_v25 }
  0x25   :  { %855 = vmatpush3.bf16.msra.mxu1 %v114_v36  ;;  %834 = vmatprep.subr.bf16.mxu0 %v107_v37  ;;  %v156_v36 = vunpack.c.h.s8.bf16 %v93_v26  ;;  %v86_v37 = vld [vmem:[%s1454_s1 + $0xb8] sm:$0xff]  ;;  %v132_v39 = vunpack.c.h.s8.bf16 %v81_v31  ;;  %v148_v40 = vunpack.c.h.s8.bf16 %v89_v32  ;;  %v192_v49 = vrot.slane %v1252_v54, %v1220_v23  ;;  %v1010_v54 = vld [vmem:[%s1459_s6 + $0x8] sm:$0xff]  }
  0x26   :  { %856 = vmatprep.subr.bf16.mxu1 %v123_v38  ;;  %v94_v38 = vld [vmem:[%s1454_s1 + $0xf8] sm:$0xff]  ;;  %v142_v47 = vunpack.c.h.s8.bf16 %v86_v37  ;;  %v1110_v23 = vmov 0.0   ;;  %vm1111_vm0 = vmmov 0   ;;  %vm734_vm1 = vcmask 1041408  }
  0x27   :  { %v158_v48 = vunpack.c.h.s8.bf16 %v94_v38  ;;  %62 = vst [vmem:[#allocation2] sm:$0x3] %v1110_v23 }
  0x28   :  { %835 = vmatpush3.bf16.msra.mxu0 %v99_v41  ;;  %v141_v41 = vunpack.c.l.s8.bf16 %v86_v37  ;;  %v796_v37 = vld [vmem:[%s1455_s2] ss:$0 sm:$0xff] }
  0x29   :  { %857 = vmatpush3.bf16.msra.mxu1 %v115_v42  ;;  %836 = vmatprep.subr.bf16.mxu0 %v108_v45  ;;  %v157_v42 = vunpack.c.l.s8.bf16 %v94_v38  ;;  %v133_v45 = vunpack.c.l.s8.bf16 %v82_v43 }
  0x2a   :  { %858 = vmatprep.subr.bf16.mxu1 %v124_v46  ;;  %v149_v46 = vunpack.c.l.s8.bf16 %v90_v44 }
  0x2c   :  { %837 = vmatpush3.bf16.msra.mxu0 %v100_v50  ;;  %v134_v50 = vunpack.c.h.s8.bf16 %v82_v43 }
  0x2d   :  { %859 = vmatpush3.bf16.msra.mxu1 %v116_v51  ;;  %838 = vmatprep.subr.bf16.mxu0 %v109_v52  ;;  %v150_v51 = vunpack.c.h.s8.bf16 %v90_v44  ;;  %v208_v52 = vcombine.high %v192_v49, %v192_v49 }
  0x2e   :  { %860 = vmatprep.subr.bf16.mxu1 %v125_v53  ;;  %v1008_v53 = vld [vmem:[%s1459_s6] sm:$0xff]  }
  0x30   :  { %839 = vmatpush3.bf16.msra.mxu0 %v101_v55  ;;  %v1009_v55 = vld [vmem:[%s1458_s5] sm:$0xff]  }
  0x31   :  { %861 = vmatpush3.bf16.msra.mxu1 %v117_v56  ;;  %840 = vmatprep.subr.bf16.mxu0 %v110_v59  ;;  %v1011_v56 = vld [vmem:[%s1458_s5 + $0x8] sm:$0xff]   ;;  %v1014_v59 = vld [vmem:[%s1459_s6 + $0x18] sm:$0xff]  }
  0x32   :  { %862 = vmatprep.subr.bf16.mxu1 %v126_v60  ;;  %v1015_v60 = vld [vmem:[%s1458_s5 + $0x18] sm:$0xff]  }
  0x34   :  { %841 = vmatpush3.bf16.msra.mxu0 %v102_v63  ;;  %v1018_v63 = vld [vmem:[%s1459_s6 + $0x28] sm:$0xff]  }
  0x35   :  { %863 = vmatpush3.bf16.msra.mxu1 %v118_v0  ;;  %870 = vmatprep.subr.bf16.mxu0 %v135_v1  ;;  %v1019_v0 = vld [vmem:[%s1458_s5 + $0x28] sm:$0xff]   ;;  %v1020_v1 = vld [vmem:[%s1459_s6 + $0x30] sm:$0xff]  }
  0x36   :  { %892 = vmatprep.subr.bf16.mxu1 %v151_v2  ;;  %v1021_v2 = vld [vmem:[%s1458_s5 + $0x30] sm:$0xff]  }
  0x37   :  { %252 = vmatmul.mubr.bf16.vlgmr.msra.gmra.mrb[0].mxu0 %v185_v62  ;;  %v1017_v62 = vld [vmem:[%s1458_s5 + $0x20] sm:$0xff]  }
  0x38   :  { %292 = vmatmul.mubr.bf16.vlgmr.msra.gmra.mrb[0].mxu1 %v207_v6  ;;  %871 = vmatpush3.bf16.msra.mxu0 %v127_v7  ;;  %v1023_v6 = vld [vmem:[%s1458_s5 + $0x38] sm:$0xff]   ;;  %v1024_v7 = vld [vmem:[%s1461_s8] sm:$0xff]  }
  0x39   :  { %893 = vmatpush3.bf16.msra.mxu1 %v143_v8  ;;  %872 = vmatprep.subr.bf16.mxu0 %v136_v9  ;;  %v1025_v8 = vld [vmem:[%s1461_s8 + $0x8] sm:$0xff]   ;;  %v1026_v9 = vld [vmem:[%s1461_s8 + $0x10] sm:$0xff]  }
  0x3a   :  { %894 = vmatprep.subr.bf16.mxu1 %v152_v10  ;;  %331 = vmatprep.mubr.bf16.mxu0 %v206_v5  ;;  %v420_v5 = vpack.c.bf16 %v402_v4, %v402_v4 }
  0x3b   :  { %371 = vmatprep.mubr.bf16.mxu1 %v210_v13 }
  0x3c   :  { %873 = vmatpush3.bf16.msra.mxu0 %v128_v14 }
  0x3d   :  { %895 = vmatpush3.bf16.msra.mxu1 %v144_v15  ;;  %874 = vmatprep.subr.bf16.mxu0 %v137_v16 }
  0x3e   :  { %896 = vmatprep.subr.bf16.mxu1 %v153_v17 }
  0x40   :  { %875 = vmatpush3.bf16.msra.mxu0 %v129_v20 }
  0x41   :  { %897 = vmatpush3.bf16.msra.mxu1 %v145_v21  ;;  %876 = vmatprep.subr.bf16.mxu0 %v138_v22  ;;  %v1027_v21 = vld [vmem:[%s1461_s8 + $0x18] sm:$0xff]  }
  0x42   :  { %898 = vmatprep.subr.bf16.mxu1 %v154_v24 }
  0x44   :  { %877 = vmatpush3.bf16.msra.mxu0 %v130_v27 }
  0x45   :  { %899 = vmatpush3.bf16.msra.mxu1 %v146_v28  ;;  %878 = vmatprep.subr.bf16.mxu0 %v139_v29 }
  0x46   :  { %900 = vmatprep.subr.bf16.mxu1 %v155_v30 }
  0x48   :  { %879 = vmatpush3.bf16.msra.mxu0 %v131_v33 }
  0x49   :  { %901 = vmatpush3.bf16.msra.mxu1 %v147_v34  ;;  %880 = vmatprep.subr.bf16.mxu0 %v140_v35  ;;  %v159_v34 = vld [vmem:[#allocation2] sm:$0x3] }
  0x4a   :  { %902 = vmatprep.subr.bf16.mxu1 %v156_v36 }
  0x4c   :  { %881 = vmatpush3.bf16.msra.mxu0 %v132_v39  ;;  %v797_v39 = vld [vmem:[%s1456_s3] ss:$0 sm:$0xff] }
  0x4d   :  { %903 = vmatpush3.bf16.msra.mxu1 %v148_v40  ;;  %882 = vmatprep.subr.bf16.mxu0 %v141_v41 }
  0x4e   :  { %904 = vmatprep.subr.bf16.mxu1 %v157_v42 }
  0x50   :  { %883 = vmatpush3.bf16.msra.mxu0 %v133_v45 }
  0x51   :  { %905 = vmatpush3.bf16.msra.mxu1 %v149_v46  ;;  %884 = vmatprep.subr.bf16.mxu0 %v142_v47 }
  0x52   :  { %906 = vmatprep.subr.bf16.mxu1 %v158_v48  ;;  %v1028_v48 = vld [vmem:[%s1461_s8 + $0x20] sm:$0xff]  }
  0x54   :  { %885 = vmatpush3.bf16.msra.mxu0 %v134_v50  ;;  %v1030_v50 = vld [vmem:[%s1461_s8 + $0x30] sm:$0xff]  }
  0x55   :  { %907 = vmatpush3.bf16.msra.mxu1 %v150_v51  ;;  %941 = vmatprep.subr.bf16.mxu0 %v1110_v23  ;;  %v1031_v51 = vld [vmem:[%s1461_s8 + $0x38] sm:$0xff]  }
  0x56   :  { %961 = vmatprep.subr.bf16.mxu1 %v1110_v23 }
  0x57   :  { %332 = vmatmul.mubr.bf16.vlgmr.msra.gmra.mrb[4].mxu0 %v192_v49  ;;  %v1029_v49 = vld [vmem:[%s1461_s8 + $0x28] sm:$0xff]  }
  0x58   :  { %372 = vmatmul.mubr.bf16.vlgmr.msra.gmra.mrb[4].mxu1 %v208_v52  ;;  %942 = vmatpush3.bf16.msra.mxu0 %v1008_v53  ;;  %v814_v53 = vld [vmem:[%s1460_s7] ss:$0 sm:$0xff]  ;;  %s1112_s7 = smov [#allocation7]  }
  0x59   :  { %962 = vmatpush3.bf16.msra.mxu1 %v1009_v55  ;;  %943 = vmatprep.subr.bf16.mxu0 %v1110_v23  ;;  %s783_s8 = sshll.u32 %s1112_s7, 4  ;;  %s784_s8 = int_to_ptr.vmem [resolvable:$true] %s783_s8 }
  0x5a   :  { %963 = vmatprep.subr.bf16.mxu1 %v1110_v23  ;;  %957 = vmatprep.mubr.msk.bf16.mxu0 %vm1111_vm0, %v1110_v23  ;;  %s1058_s6 = scalar_lea.vmem %s784_s8, 32  ;;  %p1063_p9 = scmp.lt.s32.totalorder %s784_s8, %s784_s8 }
  0x5b   :  { %977 = vmatprep.mubr.msk.bf16.mxu1 %vm1111_vm0, %v1110_v23  ;;  %p1059_p8 = scmp.ne.s32.totalorder %s784_s8, %s1058_s6  ;;  %p1064_p10 = scmp.lt.s32.totalorder %s1058_s6, %s1058_s6 }
  0x5c   :  { %944 = vmatpush3.bf16.msra.mxu0 %v1010_v54 }
  0x5d   :  { %964 = vmatpush3.bf16.msra.mxu1 %v1011_v56  ;;  %945 = vmatprep.subr.bf16.mxu0 %v1110_v23  ;;  %p1065_p11 = por %p1064_p10, %p1063_p9 }
  0x5e   :  { %965 = vmatprep.subr.bf16.mxu1 %v1110_v23 }
  0x5f   :  { %p1066_p12 = pnand %p1065_p11, %p1059_p8 }
  0x60   :  { %946 = vmatpush3.bf16.msra.mxu0 %v1012_v57 }
  0x61   :  { %947 = vmatprep.subr.bf16.mxu0 %v1110_v23  ;;  %966 = vmatpush3.bf16.msra.mxu1 %v1013_v58 }
  0x62   :  { %967 = vmatprep.subr.bf16.mxu1 %v1110_v23 }
  0x64   :  { %948 = vmatpush3.bf16.msra.mxu0 %v1014_v59 }
  0x65   :  { %949 = vmatprep.subr.bf16.mxu0 %v1110_v23  ;;  %968 = vmatpush3.bf16.msra.mxu1 %v1015_v60 }
  0x66   :  { %969 = vmatprep.subr.bf16.mxu1 %v1110_v23 }
  0x68   :  { %950 = vmatpush3.bf16.msra.mxu0 %v1016_v61 }
  0x69   :  { %951 = vmatprep.subr.bf16.mxu0 %v1110_v23  ;;  %970 = vmatpush3.bf16.msra.mxu1 %v1017_v62 }
  0x6a   :  { %971 = vmatprep.subr.bf16.mxu1 %v1110_v23 }
  0x6c   :  { %952 = vmatpush3.bf16.msra.mxu0 %v1018_v63 }
  0x6d   :  { %953 = vmatprep.subr.bf16.mxu0 %v1110_v23  ;;  %972 = vmatpush3.bf16.msra.mxu1 %v1019_v0 }
  0x6e   :  { %973 = vmatprep.subr.bf16.mxu1 %v1110_v23 }
  0x70   :  { %954 = vmatpush3.bf16.msra.mxu0 %v1020_v1 }
  0x71   :  { %955 = vmatprep.subr.bf16.mxu0 %v1110_v23  ;;  %974 = vmatpush3.bf16.msra.mxu1 %v1021_v2 }
  0x72   :  { %975 = vmatprep.subr.bf16.mxu1 %v1110_v23 }
  0x74   :  { %956 = vmatpush3.bf16.msra.mxu0 %v1022_v3 }
  0x75   :  { %981 = vmatprep.subr.bf16.mxu0 %v1110_v23  ;;  %976 = vmatpush3.bf16.msra.mxu1 %v1023_v6 }
  0x77   :  { %958 = vmatmul.mubr.bf16.vlgmr.msra.gmra.mrb[8].mxu0 %v420_v5 }
  0x78   :  { %997 = vmatprep.mubr.msk.bf16.mxu0 %vm1111_vm0, %v1110_v23  ;;  %982 = vmatpush3.bf16.msra.mxu0 %v1024_v7 }
  0x79   :  { %983 = vmatprep.subr.bf16.mxu0 %v1110_v23 }
  0x7c   :  { %984 = vmatpush3.bf16.msra.mxu0 %v1025_v8 }
  0x7d   :  { %985 = vmatprep.subr.bf16.mxu0 %v1110_v23 }
  0x80   :  { %986 = vmatpush3.bf16.msra.mxu0 %v1026_v9 }
  0x81   :  { %987 = vmatprep.subr.bf16.mxu0 %v1110_v23 }
  0x84   :  { %988 = vmatpush3.bf16.msra.mxu0 %v1027_v21 }
  0x85   :  { %989 = vmatprep.subr.bf16.mxu0 %v1110_v23 }
  0x88   :  { %990 = vmatpush3.bf16.msra.mxu0 %v1028_v48 }
  0x89   :  { %991 = vmatprep.subr.bf16.mxu0 %v1110_v23 }
  0x8c   :  { %992 = vmatpush3.bf16.msra.mxu0 %v1029_v49 }
  0x8d   :  { %993 = vmatprep.subr.bf16.mxu0 %v1110_v23 }
  0x90   :  { %994 = vmatpush3.bf16.msra.mxu0 %v1030_v50 }
  0x91   :  { %995 = vmatprep.subr.bf16.mxu0 %v1110_v23  ;;  %v815_v23 = vld [vmem:[%s1462_s9] ss:$0 sm:$0xff] }
  0x94   :  { %996 = vmatpush3.bf16.msra.mxu0 %v1031_v51 }
 0x10a   :  { %v842_v10 = vpop.f32.mrb[0].mxu0 }
 0x10b   :  { %v864_v11 = vpop.f32.mrb[0].mxu1  ;;  %v843_v12 = vpop.f32.mrb[1].mxu0 }
 0x10c   :  { %v865_v13 = vpop.f32.mrb[1].mxu1  ;;  %v844_v14 = vadd.f32 %v843_v12, %v842_v10  ;;  %v845_v16 = vpop.f32.mrb[2].mxu0 }
 0x10d   :  { %v866_v15 = vadd.f32 %v865_v13, %v864_v11  ;;  %v867_v17 = vpop.f32.mrb[2].mxu1  ;;  %v846_v18 = vpop.f32.mrb[3].mxu0 }
 0x10e   :  { %v868_v19 = vpop.f32.mrb[3].mxu1 }
 0x10f   :  { %v294_v20 = vadd.f32 %v866_v15, %v844_v14 }
 0x12a   :  { %v886_v22 = vpop.f32.mrb[4].mxu0 }
 0x12b   :  { %v908_v24 = vpop.f32.mrb[4].mxu1  ;;  %v887_v25 = vpop.f32.mrb[5].mxu0 }
 0x12c   :  { %v909_v26 = vpop.f32.mrb[5].mxu1  ;;  %v888_v27 = vadd.f32 %v887_v25, %v886_v22  ;;  %v889_v29 = vpop.f32.mrb[6].mxu0 }
 0x12d   :  { %v910_v28 = vadd.f32 %v909_v26, %v908_v24  ;;  %v911_v30 = vpop.f32.mrb[6].mxu1  ;;  %v890_v31 = vpop.f32.mrb[7].mxu0 }
 0x12e   :  { %v912_v32 = vpop.f32.mrb[7].mxu1  ;;  %v334_v33 = vadd.f32 %v888_v27, %v294_v20 }
 0x130   :  { %v374_v35 = vadd.f32 %v910_v28, %v334_v33 }
 0x132   :  { %v379_v36 = vadd.f32 %v374_v35, %v159_v34 }
 0x134   :  { %380 = vst [vmem:[#allocation2] sm:$0x3] %v379_v36 }
 0x13b   :  { %v384_v38 = vld [vmem:[#allocation2] sm:$0x3] }
 0x13c   :  { %v392_v40 = vmul.f32 %v796_v37, %v384_v38 }
 0x13e   :  { %v400_v41 = vadd.f32 %v797_v39, %v392_v40 }
 0x140   :  { %v401_v42 = vmax.f32 %v400_v41, 0.0 }
 0x142   :  { %v403_v43 = vpack.c.bf16 %v401_v42, %v401_v42 }
 0x144   :  { %978 = vmatmul.mubr.bf16.vlgmr.msra.gmra.mrb[8].mxu1 %v403_v43 }
 0x14a   :  { %v519_v44 = vpop.f32.mrb[8].mxu0 }
 0x14b   :  { %v959_v45 = vpop.f32.mrb[9].mxu0 }
 0x14c   :  { %v522_v46 = vpop.f32.mrb[10].mxu0 }
 0x14d   :  { %v960_v47 = vpop.f32.mrb[11].mxu0 }
 0x217   :  { %v607_v52 = vpop.f32.mrb[8].mxu1 }
 0x218   :  { %v608_v55 = vadd.f32 %v607_v52, %v519_v44  ;;  %v979_v54 = vpop.f32.mrb[9].mxu1 }
 0x219   :  { %v610_v56 = vpop.f32.mrb[10].mxu1 }
 0x21a   :  { %v620_v57 = vadd.f32 %v814_v53, %v608_v55  ;;  %v980_v58 = vpop.f32.mrb[11].mxu1 }
 0x21c   :  { %1032 = vtanh.f32 %v620_v57 }
 0x226   :  { %v1033_v59 = vpop.eup %1032 }
 0x227   :  { %766 = vst [vmem:[#allocation7] sm:$0x3] %v1033_v59  ;;  %v622_v60 = vpack.c.bf16 %v1033_v59, %v1033_v59 }
 0x229   :  { %998 = vmatmul.mubr.bf16.vlgmr.msra.gmra.mrb[12].mxu0 %v622_v60 }
 0x2fc   :  { %v728_v61 = vpop.f32.mrb[12].mxu0 }
 0x2fd   :  { %v729_v62 = vadd.f32 %v815_v23, %v728_v61  ;;  %v999_v63 = vpop.f32.mrb[13].mxu0 }
 0x2fe   :  { %v731_v0 = vpop.f32.mrb[14].mxu0 }
 0x2ff   :  { %v1000_v1 = vpop.f32.mrb[15].mxu0  ;;  %v735_v2 = vsel %vm734_vm1, %v729_v62, 0.0 }
 0x300   :  { %736 = vadd.xlane.f32.xlu0 %v735_v2 }
 0x38d   :  { %v737_v3 = vpop.xlane.xlu0 %736 }
 0x38e   :  { %v739_v4 = vmul.f32 0.0078125, %v737_v3 }
 0x390   :  { %v740_v5 = vsub.f32 %v729_v62, %v739_v4 }
 0x392   :  { %v741_v6 = vmul.f32 %v740_v5, %v740_v5 }
 0x394   :  { %v742_v7 = vsel %vm734_vm1, %v741_v6, 0.0 }
 0x395   :  { %743 = vadd.xlane.f32.xlu0 %v742_v7 }
 0x396   :  { %1069 = shalt.err (!%p1066_p12)
}
 0x397   :  { %s1070_s23 = scalar_lea.hbm %s1466_s13, 32 }
 0x398   :  { %p1071_p13 = scmp.ne.s32.totalorder %s1466_s13, %s1070_s23  ;;  %p1074_p0 = scmp.lt.u32.totalorder %s1070_s23, %s1466_s13 }
 0x39a   :  { %p1076_p1 = pnand %p1074_p0, %p1071_p13 }
 0x39c   :  { %1079 = shalt.err (!%p1076_p1)
}
 0x39d   :  { %786 = dma.vmem_to_hbm [thread:$0]  %s784_s8, 32, %s1466_s13, [#allocation8]   ;;  %v824_v12 = vld [vmem:[%s1463_s10] ss:$0 sm:$0xff] }
 0x39e   :  { %v825_v14 = vld [vmem:[%s1464_s11] ss:$0 sm:$0xff]  ;;  %s1113_s30 = smov [#allocation6]  }
 0x39f   :  { %s773_s2 = sshll.u32 %s1113_s30, 4  ;;  %s774_s2 = int_to_ptr.vmem [resolvable:$true] %s773_s2 }
 0x3a0   :  { %s1080_s13 = scalar_lea.vmem %s774_s2, 32  ;;  %p1085_p3 = scmp.lt.s32.totalorder %s774_s2, %s774_s2 }
 0x3a1   :  { %p1081_p2 = scmp.ne.s32.totalorder %s774_s2, %s1080_s13  ;;  %p1086_p4 = scmp.lt.s32.totalorder %s1080_s13, %s1080_s13 }
 0x3a3   :  { %p1087_p5 = por %p1086_p4, %p1085_p3 }
 0x3a5   :  { %p1088_p6 = pnand %p1087_p5, %p1081_p2 }
 0x422   :  { %v744_v8 = vpop.xlane.xlu0 %743 }
 0x423   :  { %v745_v9 = vmul.f32 0.0078125, %v744_v8 }
 0x425   :  { %v746_v10 = vadd.f32 1e-05, %v745_v9 }
 0x427   :  { %1034 = vrsqrt.f32 %v746_v10 }
 0x431   :  { %v1035_v11 = vpop.eup %1034 }
 0x432   :  { %v748_v13 = vmul.f32 %v1035_v11, %v740_v5 }
 0x434   :  { %v756_v15 = vmul.f32 %v824_v12, %v748_v13 }
 0x436   :  { %v764_v16 = vadd.f32 %v825_v14, %v756_v15 }
 0x438   :  { %765 = vst [vmem:[#allocation6] sm:$0x3] %v764_v16 }
 0x439   :  { %1091 = shalt.err (!%p1088_p6)
}
 0x43a   :  { %s1092_s3 = scalar_lea.hbm %s1465_s12, 32 }
 0x43b   :  { %p1093_p7 = scmp.ne.s32.totalorder %s1465_s12, %s1092_s3  ;;  %p1096_p8 = scmp.lt.u32.totalorder %s1092_s3, %s1465_s12 }
 0x43d   :  { %p1098_p9 = pnand %p1096_p8, %p1093_p7 }
 0x43f   :  { %1101 = shalt.err (!%p1098_p9)
}
 0x440   :  { %776 = dma.vmem_to_hbm [thread:$0]  %s774_s2, 32, %s1465_s12, [#allocation5]  }
 0x441   :  { %1104 = dma.done.wait [#allocation5], 32  }
 0x442   :  { %1105 = vsyncadd [#allocation5], 4294967264 }
 0x443   :  { %1106 = dma.done.wait [#allocation8], 32  }
 0x444   :  { %1107 = vsyncadd [#allocation8], 4294967264 }
 0x445   :  { %793 = vsyncpa [#allocation4], 1 }
 0x446   :  { %794 = vsyncpa [#allocation5], 1 }
 0x447   :  { %795 = vsyncpa [#allocation8], 1 }

// kernel: vpt_encode.4
= control target key start
LH: loop header
LB: loop body
LE: loop exit
PB: predicated region body
PF: predicated region fallthrough
CT: control target
= control target key end

     0   :  { %s3270_s12 = smov 0   ;;  %s3814_s0 = inlined_call_operand.vmem [shape: bf16[2,8,8,32], index: 0, kind: input, shape index: {}]   ;;  %s3815_s1 = inlined_call_operand.vmem [shape: bf16[9,32,64], index: 1, kind: input, shape index: {}]   ;;  %s3816_s2 = inlined_call_operand.vmem [shape: f32[1,64], index: 2, kind: input, shape index: {}]   ;;  %s3817_s3 = inlined_call_operand.vmem [shape: bf16[2,4,4,64], index: 3, kind: output, shape index: {}]  }
   0x1 LB: > { %s2776_s13 = sadd.s32 4294967295, %s3246_s12   ;;  %p2780_p0 = scmp.ge.s32.totalorder %s3246_s12, 1  ;;  %s3246_s12 = sphi %s3270_s12, %s13_s12  }
   0x2   : > { %p137_p1 = scmp.lt.s32.totalorder %s3246_s12, 3 }
   0x4   : > { %p138_p2 = pnand %p2780_p0, %p137_p1 }
   0x5   : > { %v3208_v0 = vld [vmem:[%s3815_s1 + $0x10] sm:$0xff] (!%p138_p2)   ;;  %p161_p3 = scmp.lt.s32.totalorder (!%p138_p2), %s2776_s13, 1  ;;  %v3209_v1 = vld [vmem:[%s3815_s1 + $0x40] sm:$0xff] (!%p138_p2)   ;;  %vm172_vm0 = vcmask (!%p138_p2), 257024   ;;  %v3210_v2 = vld [vmem:[%s3815_s1 + $0x18] sm:$0xff] (!%p138_p2)   ;;  %v3248_v4 = vmov (!%p138_p2), 0  }
   0x6   : > { %141 = sbr.rel (%p138_p2) target bundleno = 411 (0x19b), region = 32  ;;  %3022 = vmatprep.subr.bf16.mxu1 (!%p138_p2), %v3208_v0  ;;  %3070 = vmatprep.subr.bf16.mxu0 (!%p138_p2), %v3209_v1  ;;  %v3211_v3 = vld [vmem:[%s3815_s1 + $0x48] sm:$0xff] (!%p138_p2)   ;;  %175 = vst.msk [vmem:[#allocation2 + $0x8] sm:$0xf] (!%p138_p2), %vm172_vm0, %v3248_v4  ;;  %174 = vst.msk [vmem:[#allocation2 + $0x4] sm:$0xf] (!%p138_p2), %vm172_vm0, %v3248_v4 }
   0x7   : > { %3023 = vmatpush3.bf16.msra.mxu1 (!%p138_p2), %v3208_v0  ;;  %3071 = vmatpush3.bf16.msra.mxu0 (!%p138_p2), %v3209_v1  ;;  %176 = vst.msk [vmem:[#allocation2 + $0xc] sm:$0xf] (!%p138_p2), %vm172_vm0, %v3248_v4  ;;  %180 = vst.msk [vmem:[#allocation2 + $0xb8] sm:$0xf] (!%p138_p2), %vm172_vm0, %v3248_v4  ;;  %v3323_v5 = vld [vmem:[%s3815_s1] sm:$0xff] (!%p138_p2)   ;;  %v3334_v8 = vld [vmem:[%s3815_s1 + $0x50] sm:$0xff] (!%p138_p2)  }
   0x8   : > { %3024 = vmatprep.subr.bf16.mxu1 (!%p138_p2), %v3210_v2  ;;  %181 = vst.msk [vmem:[#allocation2 + $0xbc] sm:$0xf] (!%p138_p2), %vm172_vm0, %v3248_v4  ;;  %182 = vst.msk [vmem:[#allocation2 + $0xc0] sm:$0xf] (!%p138_p2), %vm172_vm0, %v3248_v4  ;;  %3072 = vmatprep.subr.bf16.mxu0 (!%p138_p2), %v3211_v3  ;;  %vm409_vm1 = vcmask (!%p138_p2), 261120   ;;  %v3220_v51 = vld [vmem:[%s3815_s1 + $0x8] sm:$0xff] (!%p138_p2)  }
   0x9   : > { %187 = vst.msk [vmem:[#allocation2 + $0x18] sm:$0xf] (!%p138_p2), %vm172_vm0, %v3248_v4  ;;  %189 = vst.msk [vmem:[#allocation2 + $0x2c] sm:$0xf] (!%p138_p2), %vm172_vm0, %v3248_v4  ;;  %v3218_v56 = vld [vmem:[%s3815_s1 + $0x58] sm:$0xff] (!%p138_p2)   ;;  %vm2652_vm8 = vcmask (!%p138_p2), 1041409  }
   0xa   : > { %191 = vst.msk [vmem:[#allocation2 + $0x40] sm:$0xf] (!%p138_p2), %vm172_vm0, %v3248_v4  ;;  %193 = vst.msk [vmem:[#allocation2 + $0x54] sm:$0xf] (!%p138_p2), %vm172_vm0, %v3248_v4  ;;  %vm604_vm2 = vsmask.f32 (!%p138_p2), 3328 }
   0xb   : > { %195 = vst.msk [vmem:[#allocation2 + $0x68] sm:$0xf] (!%p138_p2), %vm172_vm0, %v3248_v4  ;;  %197 = vst.msk [vmem:[#allocation2 + $0x7c] sm:$0xf] (!%p138_p2), %vm172_vm0, %v3248_v4  ;;  %3025 = vmatpush3.bf16.msra.mxu1 (!%p138_p2), %v3210_v2  ;;  %3073 = vmatpush3.bf16.msra.mxu0 (!%p138_p2), %v3211_v3  ;;  %vm605_vm3 = vsmask.f32 (!%p138_p2), 7440 }
   0xc   : > { %199 = vst.msk [vmem:[#allocation2 + $0x90] sm:$0xf] (!%p138_p2), %vm172_vm0, %v3248_v4  ;;  %201 = vst.msk [vmem:[#allocation2 + $0xa4] sm:$0xf] (!%p138_p2), %vm172_vm0, %v3248_v4  ;;  %3034 = vmatprep.subr.bf16.mxu1 (!%p138_p2), %v3323_v5  ;;  %3082 = vmatprep.subr.bf16.mxu0 (!%p138_p2), %v3334_v8  ;;  %vm261_vm5 = vsmask.f32 (!%p138_p2), 256 }
   0xd   : > { %s3823_s13 = smov (!%p161_p3, %s2776_s13), 1  ;;  %206 = vst.msk [vmem:[#allocation2 + $0x20] sm:$0xf] %vm172_vm0, %v3248_v4  ;;  %208 = vst.msk [vmem:[#allocation2 + $0x34] sm:$0xf] %vm172_vm0, %v3248_v4  ;;  %vm2655_vm9 = vcmask 1042434  }
   0xe   : > { %s2966_s22 = sshll.u32 %s3823_s13, 5  ;;  %210 = vst.msk [vmem:[#allocation2 + $0x48] sm:$0xf] %vm172_vm0, %v3248_v4  ;;  %212 = vst.msk [vmem:[#allocation2 + $0x5c] sm:$0xf] %vm172_vm0, %v3248_v4  ;;  %vm2658_vm10 = vcmask 1043459  }
   0xf   : > { %214 = vst.msk [vmem:[#allocation2 + $0x70] sm:$0xf] %vm172_vm0, %v3248_v4  ;;  %216 = vst.msk [vmem:[#allocation2 + $0x84] sm:$0xf] %vm172_vm0, %v3248_v4  ;;  %s3318_s25 = scalar_lea.vmem %s3814_s0, %s2966_s22  ;;  %v246_v14 = vld [vmem:[#allocation2 + $0x8] sm:$0xf] }
  0x10   : > { %218 = vst.msk [vmem:[#allocation2 + $0x98] sm:$0xf] %vm172_vm0, %v3248_v4  ;;  %220 = vst.msk [vmem:[#allocation2 + $0xac] sm:$0xf] %vm172_vm0, %v3248_v4  ;;  %v224_v6 = vld [vmem:[%s3318_s25] sm:$0xf] }
  0x11   : > { %185 = vst.msk [vmem:[#allocation2 + $0x4] sm:$0xf] %vm172_vm0, %v3248_v4  ;;  %203 = vst.msk [vmem:[#allocation2 + $0xb8] sm:$0xf] %vm172_vm0, %v3248_v4  ;;  %v225_v7 = vld [vmem:[%s3318_s25 + $0x4] sm:$0xf] }
  0x12   : > { %204 = vst.msk [vmem:[#allocation2 + $0xc] sm:$0xf] %vm172_vm0, %v3248_v4  ;;  %222 = vst.msk [vmem:[#allocation2 + $0xc0] sm:$0xf] %vm172_vm0, %v3248_v4  ;;  %v226_v9 = vld [vmem:[%s3318_s25 + $0x8] sm:$0xf] }
  0x13   : > { %233 = vst.msk [vmem:[#allocation2 + $0x1c] sm:$0xf] %vm172_vm0, %v224_v6  ;;  %234 = vst.msk [vmem:[#allocation2 + $0x30] sm:$0xf] %vm172_vm0, %v225_v7  ;;  %v227_v10 = vld [vmem:[%s3318_s25 + $0xc] sm:$0xf] }
  0x14   : > { %235 = vst.msk [vmem:[#allocation2 + $0x44] sm:$0xf] %vm172_vm0, %v226_v9  ;;  %236 = vst.msk [vmem:[#allocation2 + $0x58] sm:$0xf] %vm172_vm0, %v227_v10  ;;  %v228_v11 = vld [vmem:[%s3318_s25 + $0x10] sm:$0xf] }
  0x15   : > { %237 = vst.msk [vmem:[#allocation2 + $0x6c] sm:$0xf] %vm172_vm0, %v228_v11  ;;  %v229_v12 = vld [vmem:[%s3318_s25 + $0x14] sm:$0xf]  ;;  %v230_v13 = vld [vmem:[%s3318_s25 + $0x18] sm:$0xf]  ;;  %vm3429_vm4 = vmor %vm604_vm2, %vm605_vm3 }
  0x16   : > { %238 = vst.msk [vmem:[#allocation2 + $0x80] sm:$0xf] %vm172_vm0, %v229_v12  ;;  %239 = vst.msk [vmem:[#allocation2 + $0x94] sm:$0xf] %vm172_vm0, %v230_v13  ;;  %v1194_v15 = vld [vmem:[#allocation2 + $0x20] sm:$0x1] }
  0x17   : > { %v270_v16 = vshrl.u32 %v246_v14, 16  ;;  %v273_v17 = vshll.u32 %v246_v14, 16  ;;  %v3350_v18 = vld [vmem:[#allocation2 + $0x34] sm:$0x1]  ;;  %v1219_v19 = vshll.u32 %v1194_v15, 16  ;;  %s2967_s8 = sshll.u32 %s3823_s13, 3 }
  0x18   : > { %v1233_v20 = vshll.u32 %v3350_v18, 16  ;;  %vm262_vm6 = vsmask.f32 4368  ;;  %s3757_s11 = scalar_lea.vmem %s3817_s3, %s2967_s8  ;;  %vm2714_vm11 = vcmask 517120  }
  0x19   : > { %v272_v22 = vrot.slane %v270_v16, 7  ;;  %v3353_v24 = vrot.slane %v1219_v19, 5  ;;  %vm3436_vm7 = vmor %vm261_vm5, %vm262_vm6 }
  0x1a   : > { %v248_v21 = vld [vmem:[#allocation2 + $0x1c] sm:$0xf]  ;;  %v840_v28 = vld [vmem:[#allocation2 + $0x30] sm:$0xf] }
  0x1b   : > { %v838_v23 = vld [vmem:[#allocation2 + $0x1c] sm:$0xf]  ;;  %v283_v25 = vshrl.u32 %v248_v21, 16  ;;  %v286_v26 = vshll.u32 %v248_v21, 16  ;;  %v2797_v27 = vcombine.low %v246_v14, %v248_v21  ;;  %v3355_v30 = vor.u32 %v273_v17, %v272_v22  ;;  %v250_v34 = vld [vmem:[#allocation2 + $0x30] sm:$0xf] }
  0x1c   : > { %v859_v29 = vshrl.u32 %v838_v23, 16  ;;  %v862_v31 = vshll.u32 %v838_v23, 16  ;;  %v872_v32 = vshrl.u32 %v840_v28, 16  ;;  %v875_v33 = vshll.u32 %v840_v28, 16  ;;  %v252_v38 = vld [vmem:[#allocation2 + $0x44] sm:$0xf] }
  0x1d   : > { %v285_v35 = vrot.slane %v283_v25, 7  ;;  %3026 = vmatprep.mubr.msk.bf16.mxu1 %vm409_vm1, %v2797_v27  ;;  %v2857_v37 = vcombine.low %v838_v23, %v840_v28  ;;  %v296_v39 = vshrl.u32 %v250_v34, 16  ;;  %v299_v41 = vshll.u32 %v250_v34, 16  ;;  %v842_v44 = vld [vmem:[#allocation2 + $0x44] sm:$0xf] }
  0x1e   : > { %v861_v36 = vrot.slane %v859_v29, 7  ;;  %v874_v40 = vrot.slane %v872_v32, 7  ;;  %v309_v42 = vshrl.u32 %v252_v38, 16  ;;  %v312_v43 = vshll.u32 %v252_v38, 16  ;;  %v844_v49 = vld [vmem:[#allocation2 + $0x58] sm:$0xf] }
  0x1f   : > { %v3358_v45 = vor.u32 %v286_v26, %v285_v35  ;;  %3074 = vmatprep.mubr.msk.bf16.mxu0 %vm409_vm1, %v2857_v37  ;;  %v298_v47 = vrot.slane %v296_v39, 7  ;;  %v2798_v48 = vcombine.low %v250_v34, %v252_v38  ;;  %v3363_v50 = vld [vmem:[#allocation2 + $0x58] sm:$0xf]  ;;  %v885_v54 = vshrl.u32 %v842_v44, 16  ;;  %v3373_v57 = vld [vmem:[#allocation2 + $0x6c] sm:$0xf] }
  0x20   : > { %v3360_v46 = vor.u32 %v862_v31, %v861_v36  ;;  %v3368_v52 = vor.u32 %v875_v33, %v874_v40  ;;  %v311_v53 = vrot.slane %v309_v42, 7  ;;  %v888_v55 = vshll.u32 %v842_v44, 16  ;;  %v3378_v62 = vld [vmem:[#allocation2 + $0x80] sm:$0xf]  ;;  %v3380_v63 = vld [vmem:[#allocation2 + $0x94] sm:$0xf] }
  0x21   : > { %v3375_v58 = vor.u32 %v299_v41, %v298_v47  ;;  %3027 = vmatmul.mubr.msk.bf16.vlgmr.msra.gmra.mrb[0].mxu1 %vm409_vm1, %v2798_v48  ;;  %v898_v59 = vshrl.u32 %v844_v49, 16  ;;  %v901_v60 = vshll.u32 %v844_v49, 16  ;;  %v2858_v61 = vcombine.low %v842_v44, %v844_v49  ;;  %v1193_v4 = vld [vmem:[#allocation2 + $0x1c] sm:$0xf]  ;;  %v1195_v11 = vld [vmem:[#allocation2 + $0x30] sm:$0xf] }
  0x22   : > { %v3382_v0 = vor.u32 %v312_v43, %v311_v53  ;;  %3035 = vmatpush3.bf16.msra.mxu1 %v3323_v5  ;;  %v887_v1 = vrot.slane %v885_v54, 7  ;;  %v322_v2 = vshrl.u32 %v3363_v50, 16  ;;  %v325_v3 = vshll.u32 %v3363_v50, 16  ;;  %v3395_v5 = vld [vmem:[%s3815_s1 + $0x20] sm:$0xff]   ;;  %v1198_v23 = vld [vmem:[#allocation2 + $0x48] sm:$0x1] }
  0x23   : > { %v900_v6 = vrot.slane %v898_v59, 7  ;;  %3075 = vmatmul.mubr.msk.bf16.vlgmr.msra.gmra.mrb[0].mxu0 %vm409_vm1, %v2858_v61  ;;  %v335_v7 = vshrl.u32 %v3373_v57, 16  ;;  %v338_v9 = vshll.u32 %v3373_v57, 16  ;;  %v2799_v10 = vcombine.low %v3363_v50, %v3373_v57  ;;  %3036 = vmatprep.subr.bf16.mxu1 %v3220_v51  ;;  %v1197_v16 = vld [vmem:[#allocation2 + $0x44] sm:$0xf] }
  0x24   : > { %v3397_v12 = vor.u32 %v888_v55, %v887_v1  ;;  %3083 = vmatpush3.bf16.msra.mxu0 %v3334_v8  ;;  %v3400_v13 = vrot.slane %v322_v2, 7  ;;  %v348_v14 = vshrl.u32 %v3378_v62, 16  ;;  %v351_v15 = vshll.u32 %v3378_v62, 16  ;;  %v3414_v8 = vld [vmem:[%s3815_s1 + $0x60] sm:$0xff]   ;;  %v1199_v29 = vld [vmem:[#allocation2 + $0x58] sm:$0xf] }
  0x25   : > { %v3404_v17 = vor.u32 %v901_v60, %v900_v6  ;;  %3084 = vmatprep.subr.bf16.mxu0 %v3218_v56  ;;  %v3406_v19 = vrot.slane %v335_v7, 7  ;;  %3030 = vmatprep.mubr.msk.bf16.mxu1 %vm409_vm1, %v2799_v10  ;;  %v361_v21 = vshrl.u32 %v3380_v63, 16  ;;  %v364_v22 = vshll.u32 %v3380_v63, 16  ;;  %v1200_v35 = vld [vmem:[#allocation2 + $0x5c] sm:$0x1] }
  0x26   : > { %v3416_v25 = vrot.slane %v348_v14, 7  ;;  %v2800_v26 = vcombine.low %v3378_v62, %v3380_v63  ;;  %3037 = vmatpush3.bf16.msra.mxu1 %v3220_v51  ;;  %v1210_v27 = vshrl.u32 %v1193_v4, 16  ;;  %v1213_v28 = vshll.u32 %v1193_v4, 16  ;;  %v245_v40 = vld [vmem:[#allocation2 + $0x4] sm:$0x8]  ;;  %v3239_v14 = vld [vmem:[%s3815_s1 + $0x48] sm:$0xff]  }
  0x27   : > { %v3420_v31 = vrot.slane %v361_v21, 7  ;;  %v1224_v32 = vshrl.u32 %v1195_v11, 16  ;;  %v1227_v33 = vshll.u32 %v1195_v11, 16  ;;  %v1235_v34 = vrot.slane %v1233_v20, 5  ;;  %3046 = vmatprep.subr.bf16.mxu1 %v3395_v5  ;;  %v247_v47 = vld [vmem:[#allocation2 + $0x18] sm:$0x8] }
  0x28   : > { %3085 = vmatpush3.bf16.msra.mxu0 %v3218_v56  ;;  %v1212_v36 = vrot.slane %v1210_v27, 4  ;;  %v1215_v37 = vrot.slane %v1213_v28, 5  ;;  %v1238_v38 = vshrl.u32 %v1197_v16, 16  ;;  %v1241_v39 = vshll.u32 %v1197_v16, 16  ;;  %v249_v1 = vld [vmem:[#allocation2 + $0x2c] sm:$0x8] }
  0x29   : > { %3031 = vmatmul.mubr.msk.bf16.gmra.mrb[4].mxu1 %vm409_vm1, %v2800_v26  ;;  %v1226_v41 = vrot.slane %v1224_v32, 4  ;;  %v1229_v42 = vrot.slane %v1227_v33, 5  ;;  %3094 = vmatprep.subr.bf16.mxu0 %v3414_v8  ;;  %v1247_v43 = vshll.u32 %v1198_v23, 16  ;;  %v1252_v44 = vshrl.u32 %v1199_v29, 16  ;;  %v251_v21 = vld [vmem:[#allocation2 + $0x40] sm:$0x8] }
  0x2a   : > { %v1216_v18 = vor.u32 %v1215_v37, %v1212_v36  ;;  %v1240_v20 = vrot.slane %v1238_v38, 4  ;;  %v1243_v48 = vrot.slane %v1241_v39, 5  ;;  %v1255_v49 = vshll.u32 %v1199_v29, 16  ;;  %v1201_v23 = vld [vmem:[#allocation2 + $0x6c] sm:$0xf] }
  0x2b   : > { %v1230_v53 = vor.u32 %v1229_v42, %v1226_v41  ;;  %v1249_v54 = vrot.slane %v1247_v43, 5  ;;  %v1254_v55 = vrot.slane %v1252_v44, 4  ;;  %v1261_v56 = vshll.u32 %v1200_v35, 16  ;;  %v1202_v32 = vld [vmem:[#allocation2 + $0x70] sm:$0x1]  ;;  %v3224_v42 = vld [vmem:[%s3815_s1 + $0x68] sm:$0xff]  }
  0x2c   : > { %v1217_v59 = vrot.slane %v1216_v18, 4  ;;  %v1244_v60 = vor.u32 %v1243_v48, %v1240_v20  ;;  %v1257_v61 = vrot.slane %v1255_v49, 5  ;;  %v265_v6 = vshrl.u32 %v245_v40, 16  ;;  %v1203_v37 = vld [vmem:[#allocation2 + $0x80] sm:$0xf] }
  0x2d   : > { %v1231_v2 = vrot.slane %v1230_v53, 4  ;;  %v1263_v4 = vrot.slane %v1261_v56, 5  ;;  %v278_v16 = vshrl.u32 %v247_v47, 16  ;;  %v291_v28 = vshrl.u32 %v249_v1, 16  ;;  %v1204_v38 = vld [vmem:[#allocation2 + $0x84] sm:$0x1] }
  0x2e   : > { %v1222_v7 = vsel %vm3429_vm4, %v1217_v59, %v3353_v24  ;;  %v1245_v10 = vrot.slane %v1244_v60, 4  ;;  %v1258_v11 = vor.u32 %v1257_v61, %v1254_v55  ;;  %v2785_v27 = vrot.slane %v265_v6, 11  ;;  %v231_v20 = vld [vmem:[%s3318_s25 + $0x1c] sm:$0xf]  ;;  %v1206_v55 = vld [vmem:[#allocation2 + $0x98] sm:$0x1] }
  0x2f   : > { %v1236_v26 = vsel %vm3429_vm4, %v1231_v2, %v1235_v34  ;;  %v304_v29 = vshrl.u32 %v251_v21, 16  ;;  %v2786_v36 = vrot.slane %v278_v16, 11  ;;  %v2787_v40 = vrot.slane %v291_v28, 11  ;;  %240 = vst.msk [vmem:[#allocation2 + $0xa8] sm:$0xf] %vm172_vm0, %v231_v20  ;;  %v3225_v2 = vld [vmem:[%s3815_s1 + $0x28] sm:$0xff]  }
  0x30   : > { %v2871_v33 = vcombine.low %v1222_v7, %v1236_v26  ;;  %v1250_v24 = vsel %vm3429_vm4, %v1245_v10, %v1249_v54  ;;  %v1259_v35 = vrot.slane %v1258_v11, 4  ;;  %v276_v39 = vsel %vm3436_vm7, %v2785_v27, %v3355_v30  ;;  %v1205_v54 = vld [vmem:[#allocation2 + $0x94] sm:$0xf]  ;;  %v1208_v56 = vld [vmem:[#allocation2 + $0xac] sm:$0x1] }
  0x31   : > { %v2788_v41 = vrot.slane %v304_v29, 11  ;;  %v1266_v34 = vshrl.u32 %v1201_v23, 16  ;;  %v289_v44 = vsel %vm3436_vm7, %v2786_v36, %v3358_v45  ;;  %v1269_v47 = vshll.u32 %v1201_v23, 16  ;;  %v253_v1 = vld [vmem:[#allocation2 + $0x54] sm:$0x8] }
  0x32   : > { %3086 = vmatprep.mubr.msk.bf16.mxu0 %vm409_vm1, %v2871_v33  ;;  %v1264_v43 = vsel %vm3429_vm4, %v1259_v35, %v1263_v4  ;;  %v1275_v18 = vshll.u32 %v1202_v32, 16  ;;  %v2807_v48 = vcombine.low %v276_v39, %v289_v44  ;;  %v302_v49 = vsel %vm3436_vm7, %v2787_v40, %v3375_v58  ;;  %v255_v7 = vld [vmem:[#allocation2 + $0x68] sm:$0x8]  ;;  %v3472_v10 = vld [vmem:[%s3815_s1 + $0x70] sm:$0xff]   ;;  %v257_v36 = vld [vmem:[#allocation2 + $0x7c] sm:$0x8] }
  0x33   : > { %v2872_v30 = vcombine.low %v1250_v24, %v1264_v43  ;;  %v315_v53 = vsel %vm3436_vm7, %v2788_v41, %v3382_v0  ;;  %v1268_v45 = vrot.slane %v1266_v34, 4  ;;  %v1271_v60 = vrot.slane %v1269_v47, 5  ;;  %v3479_v26 = vld [vmem:[%s3815_s1 + $0x30] sm:$0xff]   ;;  %v1439_v50 = vld [vmem:[#allocation2 + $0x2c] sm:$0x8] }
  0x34   : > { %v2808_v59 = vcombine.low %v302_v49, %v315_v53  ;;  %v1277_v61 = vrot.slane %v1275_v18, 5  ;;  %3038 = vmatprep.mubr.msk.bf16.mxu1 %vm409_vm1, %v2807_v48  ;;  %v1280_v58 = vshrl.u32 %v1203_v37, 16  ;;  %v1283_v0 = vshll.u32 %v1203_v37, 16  ;;  %v259_v44 = vld [vmem:[#allocation2 + $0x90] sm:$0x8] }
  0x35   : > { %3087 = vmatmul.mubr.msk.bf16.vlgmr.msra.gmra.mrb[0].mxu0 %vm409_vm1, %v2872_v30  ;;  %v1289_v4 = vshll.u32 %v1204_v38, 16  ;;  %v1294_v6 = vshrl.u32 %v1205_v54, 16  ;;  %v1272_v11 = vor.u32 %v1271_v60, %v1268_v45  ;;  %v1297_v16 = vshll.u32 %v1205_v54, 16 }
  0x36   : > { %3095 = vmatpush3.bf16.msra.mxu0 %v3414_v8  ;;  %3039 = vmatmul.mubr.msk.bf16.vlgmr.msra.gmra.mrb[0].mxu1 %vm409_vm1, %v2808_v59  ;;  %v1303_v21 = vshll.u32 %v1206_v55, 16  ;;  %v1317_v23 = vshll.u32 %v1208_v56, 16  ;;  %v1282_v27 = vrot.slane %v1280_v58, 4  ;;  %v1285_v28 = vrot.slane %v1283_v0, 5  ;;  %v1207_v41 = vld [vmem:[#allocation2 + $0xa8] sm:$0xf] }
  0x37   : > { %3047 = vmatpush3.bf16.msra.mxu1 %v3395_v5  ;;  %v1291_v29 = vrot.slane %v1289_v4, 5  ;;  %3096 = vmatprep.subr.bf16.mxu0 %v3224_v42  ;;  %v1296_v32 = vrot.slane %v1294_v6, 4  ;;  %v1273_v33 = vrot.slane %v1272_v11, 4  ;;  %v1299_v8 = vrot.slane %v1297_v16, 5  ;;  %v3517_v58 = vld [vmem:[#allocation2 + $0x58] sm:$0xf] }
  0x38   : > { %v3482_v24 = vrot.slane %v1303_v21, 5  ;;  %v3484_v35 = vrot.slane %v1317_v23, 5  ;;  %3048 = vmatprep.subr.bf16.mxu1 %v3225_v2  ;;  %v1286_v37 = vor.u32 %v1285_v28, %v1282_v27  ;;  %v317_v38 = vshrl.u32 %v253_v1, 16  ;;  %v1445_v11 = vld [vmem:[#allocation2 + $0x68] sm:$0x8] }
  0x39   : > { %v327_v39 = vor.u32 %v325_v3, %v3400_v13  ;;  %v330_v5 = vshrl.u32 %v255_v7, 16  ;;  %v1278_v40 = vsel %vm3429_vm4, %v1273_v33, %v1277_v61  ;;  %v1300_v34 = vor.u32 %v1299_v8, %v1296_v32  ;;  %v3494_v3 = vld [vmem:[#allocation2 + $0x30] sm:$0xf]  ;;  %v588_v32 = vld [vmem:[#allocation2 + $0x8] sm:$0xf] }
  0x3a   : > { %3097 = vmatpush3.bf16.msra.mxu0 %v3224_v42  ;;  %v340_v43 = vor.u32 %v338_v9, %v3406_v19  ;;  %v343_v47 = vshrl.u32 %v257_v36, 16  ;;  %v1287_v18 = vrot.slane %v1286_v37, 4  ;;  %v1308_v20 = vshrl.u32 %v1207_v41, 16  ;;  %v1441_v9 = vld [vmem:[#allocation2 + $0x40] sm:$0x8] }
  0x3b   : > { %v1311_v30 = vshll.u32 %v1207_v41, 16  ;;  %v2789_v48 = vrot.slane %v317_v38, 11  ;;  %3049 = vmatpush3.bf16.msra.mxu1 %v3225_v2  ;;  %3106 = vmatprep.subr.bf16.mxu0 %v3472_v10  ;;  %v1301_v13 = vrot.slane %v1300_v34, 4  ;;  %v2790_v49 = vrot.slane %v330_v5, 11  ;;  %v1443_v2 = vld [vmem:[#allocation2 + $0x54] sm:$0x8] }
  0x3c   : > { %v2791_v53 = vrot.slane %v343_v47, 11  ;;  %v353_v57 = vor.u32 %v351_v15, %v3416_v25  ;;  %3058 = vmatprep.subr.bf16.mxu1 %v3479_v26  ;;  %v1292_v19 = vsel %vm3429_vm4, %v1287_v18, %v1291_v29  ;;  %v1310_v42 = vrot.slane %v1308_v20, 4  ;;  %v3512_v25 = vld [vmem:[#allocation2 + $0x44] sm:$0xf]  ;;  %v590_v20 = vld [vmem:[#allocation2 + $0x1c] sm:$0xf] }
  0x3d   : > { %v1313_v54 = vrot.slane %v1311_v30, 5  ;;  %v328_v55 = vsel %vm3436_vm7, %v2789_v48, %v327_v39  ;;  %v2873_v56 = vcombine.low %v1278_v40, %v1292_v19  ;;  %v1306_v59 = vsel %vm3429_vm4, %v1301_v13, %v3482_v24 }
  0x3e   : > { %v341_v62 = vsel %vm3436_vm7, %v2790_v49, %v340_v43  ;;  %v354_v15 = vsel %vm3436_vm7, %v2791_v53, %v353_v57  ;;  %v356_v61 = vshrl.u32 %v259_v44, 16  ;;  %v366_v1 = vor.u32 %v364_v22, %v3420_v31  ;;  %v3525_v22 = vld [vmem:[#allocation2 + $0x6c] sm:$0xf]  ;;  %v591_v49 = vld [vmem:[#allocation2 + $0x20] sm:$0x1] }
  0x3f   : > { %v1314_v45 = vor.u32 %v1313_v54, %v1310_v42  ;;  %v2809_v60 = vcombine.low %v328_v55, %v341_v62  ;;  %3090 = vmatprep.mubr.msk.bf16.mxu0 %vm409_vm1, %v2873_v56  ;;  %v1456_v0 = vshrl.u32 %v1439_v50, 16  ;;  %v1461_v4 = vshrl.u32 %v3494_v3, 16  ;;  %v589_v44 = vld [vmem:[#allocation2 + $0xc] sm:$0x1]  ;;  %v592_v57 = vld [vmem:[#allocation2 + $0x30] sm:$0xf] }
  0x40   : > { %v1464_v6 = vshll.u32 %v3494_v3, 16  ;;  %v1469_v7 = vshrl.u32 %v1441_v9, 16  ;;  %v2792_v21 = vrot.slane %v356_v61, 11  ;;  %v1474_v23 = vshrl.u32 %v3512_v25, 16  ;;  %v593_v55 = vld [vmem:[#allocation2 + $0x34] sm:$0x1] }
  0x41   : > { %v1315_v16 = vrot.slane %v1314_v45, 4  ;;  %3042 = vmatprep.mubr.msk.bf16.mxu1 %vm409_vm1, %v2809_v60  ;;  %v1477_v63 = vshll.u32 %v3512_v25, 16  ;;  %v2881_v31 = vrot.slane %v1456_v0, 11  ;;  %v1463_v27 = vrot.slane %v1461_v4, 7  ;;  %v594_v45 = vld [vmem:[#allocation2 + $0x44] sm:$0xf] }
  0x42   : > { %v2882_v28 = vrot.slane %v1469_v7, 11  ;;  %v1482_v29 = vshrl.u32 %v1443_v2, 16  ;;  %v367_v8 = vsel %vm3436_vm7, %v2792_v21, %v366_v1  ;;  %v1476_v24 = vrot.slane %v1474_v23, 7  ;;  %v595_v60 = vld [vmem:[#allocation2 + $0x48] sm:$0x1] }
  0x43   : > { %v1320_v33 = vsel %vm3429_vm4, %v1315_v16, %v3484_v35  ;;  %v1487_v36 = vshrl.u32 %v3517_v58, 16  ;;  %v2810_v38 = vcombine.low %v354_v15, %v367_v8  ;;  %v1466_v39 = vor.u32 %v1464_v6, %v1463_v27  ;;  %v3228_v8 = vld [vmem:[%s3815_s1 + $0x78] sm:$0xff]  }
  0x44   : > { %v2874_v37 = vcombine.low %v1306_v59, %v1320_v33  ;;  %v2883_v5 = vrot.slane %v1482_v29, 11  ;;  %v1479_v40 = vor.u32 %v1477_v63, %v1476_v24  ;;  %v1490_v34 = vshll.u32 %v3517_v58, 16  ;;  %v3547_v33 = vld [vmem:[#allocation2 + $0x80] sm:$0xf] }
  0x45   : > { %v1489_v41 = vrot.slane %v1487_v36, 7  ;;  %v1495_v43 = vshrl.u32 %v1445_v11, 16  ;;  %3043 = vmatmul.mubr.msk.bf16.gmra.mrb[4].mxu1 %vm409_vm1, %v2810_v38  ;;  %v1467_v35 = vsel %vm3436_vm7, %v2881_v31, %v1466_v39  ;;  %v1500_v47 = vshrl.u32 %v3525_v22, 16  ;;  %v1447_v31 = vld [vmem:[#allocation2 + $0x7c] sm:$0x8] }
  0x46   : > { %3091 = vmatmul.mubr.msk.bf16.gmra.mrb[4].mxu0 %vm409_vm1, %v2874_v37  ;;  %v1503_v18 = vshll.u32 %v3525_v22, 16  ;;  %v608_v30 = vshrl.u32 %v588_v32, 16  ;;  %v1480_v48 = vsel %vm3436_vm7, %v2882_v28, %v1479_v40  ;;  %v611_v53 = vshll.u32 %v588_v32, 16  ;;  %v1449_v39 = vld [vmem:[#allocation2 + $0x90] sm:$0x8] }
  0x47   : > { %v1492_v50 = vor.u32 %v1490_v34, %v1489_v41  ;;  %v2884_v13 = vrot.slane %v1495_v43, 11  ;;  %v2893_v9 = vcombine.low %v1467_v35, %v1480_v48  ;;  %v1502_v19 = vrot.slane %v1500_v47, 7  ;;  %v3555_v34 = vld [vmem:[#allocation2 + $0x94] sm:$0xf] }
  0x48   : > { %v610_v42 = vrot.slane %v608_v30, 4  ;;  %v617_v54 = vshll.u32 %v589_v44, 16  ;;  %v613_v59 = vrot.slane %v611_v53, 5  ;;  %v622_v62 = vshrl.u32 %v590_v20, 16  ;;  %v1451_v44 = vld [vmem:[#allocation2 + $0xa4] sm:$0x8] }
  0x49   : > { %v1493_v56 = vsel %vm3436_vm7, %v2883_v5, %v1492_v50  ;;  %v625_v15 = vshll.u32 %v590_v20, 16  ;;  %3098 = vmatprep.mubr.msk.bf16.mxu0 %vm409_vm1, %v2893_v9  ;;  %v1505_v61 = vor.u32 %v1503_v18, %v1502_v19  ;;  %v631_v2 = vshll.u32 %v591_v49, 16  ;;  %v3559_v30 = vld [vmem:[#allocation2 + $0xa8] sm:$0xf]  ;;  %v1453_v53 = vld [vmem:[#allocation2 + $0xb8] sm:$0x8] }
  0x4a   : > { %v619_v1 = vrot.slane %v617_v54, 5  ;;  %v636_v0 = vshrl.u32 %v592_v57, 16  ;;  %v614_v4 = vor.u32 %v613_v59, %v610_v42  ;;  %v624_v6 = vrot.slane %v622_v62, 4  ;;  %v3573_v59 = vld [vmem:[#allocation2 + $0xbc] sm:$0xf] }
  0x4b   : > { %v627_v7 = vrot.slane %v625_v15, 5  ;;  %v639_v11 = vshll.u32 %v592_v57, 16  ;;  %v1506_v16 = vsel %vm3436_vm7, %v2884_v13, %v1505_v61  ;;  %v633_v21 = vrot.slane %v631_v2, 5 }
  0x4c   : > { %v638_v23 = vrot.slane %v636_v0, 4  ;;  %v645_v63 = vshll.u32 %v593_v55, 16  ;;  %v2894_v27 = vcombine.low %v1493_v56, %v1506_v16  ;;  %v615_v28 = vrot.slane %v614_v4, 4 }
  0x4d   : > { %v628_v29 = vor.u32 %v627_v7, %v624_v6  ;;  %v641_v32 = vrot.slane %v639_v11, 5  ;;  %v650_v36 = vshrl.u32 %v594_v45, 16  ;;  %v653_v37 = vshll.u32 %v594_v45, 16  ;;  %v597_v7 = vld [vmem:[#allocation2 + $0x5c] sm:$0x1] }
  0x4e   : > { %v647_v24 = vrot.slane %v645_v63, 5  ;;  %v659_v38 = vshll.u32 %v595_v60, 16  ;;  %3099 = vmatmul.mubr.msk.bf16.vlgmr.msra.gmra.mrb[0].mxu0 %vm409_vm1, %v2894_v27  ;;  %v620_v5 = vsel %vm3429_vm4, %v615_v28, %v619_v1  ;;  %v1508_v43 = vshrl.u32 %v1447_v31, 16  ;;  %v596_v1 = vld [vmem:[#allocation2 + $0x58] sm:$0xf] }
  0x4f   : > { %v629_v40 = vrot.slane %v628_v29, 4  ;;  %v642_v41 = vor.u32 %v641_v32, %v638_v23  ;;  %3107 = vmatpush3.bf16.msra.mxu0 %v3472_v10  ;;  %v652_v35 = vrot.slane %v650_v36, 4  ;;  %v655_v47 = vrot.slane %v653_v37, 5  ;;  %v3567_v10 = vld [vmem:[%s3815_s1 + $0x80] sm:$0xff]   ;;  %v3229_v11 = vld [vmem:[%s3815_s1 + $0x38] sm:$0xff]  }
  0x50   : > { %v661_v18 = vrot.slane %v659_v38, 5  ;;  %v1513_v20 = vshrl.u32 %v3547_v33, 16  ;;  %v2885_v13 = vrot.slane %v1508_v43, 11  ;;  %v1516_v49 = vshll.u32 %v3547_v33, 16  ;;  %3108 = vmatprep.subr.bf16.mxu0 %v3228_v8  ;;  %v598_v31 = vld [vmem:[#allocation2 + $0x6c] sm:$0xf] }
  0x51   : > { %v634_v48 = vsel %vm3429_vm4, %v629_v40, %v633_v21  ;;  %v643_v50 = vrot.slane %v642_v41, 4  ;;  %v656_v9 = vor.u32 %v655_v47, %v652_v35  ;;  %v1521_v42 = vshrl.u32 %v1449_v39, 16  ;;  %v600_v39 = vld [vmem:[#allocation2 + $0x80] sm:$0xf] }
  0x52   : > { %v2821_v57 = vcombine.low %v620_v5, %v634_v48  ;;  %v1515_v19 = vrot.slane %v1513_v20, 7  ;;  %v1526_v55 = vshrl.u32 %v3555_v34, 16  ;;  %v1529_v56 = vshll.u32 %v3555_v34, 16  ;;  %v602_v48 = vld [vmem:[#allocation2 + $0x94] sm:$0xf] }
  0x53   : > { %v648_v54 = vsel %vm3429_vm4, %v643_v50, %v647_v24  ;;  %v1534_v62 = vshrl.u32 %v1451_v44, 16  ;;  %v657_v15 = vrot.slane %v656_v9, 4  ;;  %v2886_v60 = vrot.slane %v1521_v42, 11  ;;  %3109 = vmatpush3.bf16.msra.mxu0 %v3228_v8  ;;  %v599_v8 = vld [vmem:[#allocation2 + $0x70] sm:$0x1] }
  0x54   : > { %3050 = vmatprep.mubr.msk.bf16.mxu1 %vm409_vm1, %v2821_v57  ;;  %v1518_v45 = vor.u32 %v1516_v49, %v1515_v19  ;;  %v1539_v61 = vshrl.u32 %v3559_v30, 16  ;;  %v1528_v2 = vrot.slane %v1526_v55, 7  ;;  %v1542_v4 = vshll.u32 %v3559_v30, 16  ;;  %3118 = vmatprep.subr.bf16.mxu0 %v3567_v10  ;;  %v601_v44 = vld [vmem:[#allocation2 + $0x84] sm:$0x1] }
  0x55   : > { %v2887_v0 = vrot.slane %v1534_v62, 11  ;;  %v1547_v6 = vshrl.u32 %v1453_v53, 16  ;;  %v662_v16 = vsel %vm3429_vm4, %v657_v15, %v661_v18  ;;  %v1552_v63 = vshrl.u32 %v3573_v59, 16 }
  0x56   : > { %v1519_v21 = vsel %vm3436_vm7, %v2885_v13, %v1518_v45  ;;  %v1541_v23 = vrot.slane %v1539_v61, 7  ;;  %v2822_v27 = vcombine.low %v648_v54, %v662_v16  ;;  %v1531_v28 = vor.u32 %v1529_v56, %v1528_v2  ;;  %v603_v56 = vld [vmem:[#allocation2 + $0x98] sm:$0x1]  ;;  %v3601_v16 = vld [vmem:[%s3815_s1 + $0x40] sm:$0xff]  }
  0x57   : > { %v2888_v29 = vrot.slane %v1547_v6, 11  ;;  %v1555_v32 = vshll.u32 %v3573_v59, 16  ;;  %v1554_v36 = vrot.slane %v1552_v63, 7  ;;  %v664_v37 = vshrl.u32 %v596_v1, 16 }
  0x58   : > { %v1544_v24 = vor.u32 %v1542_v4, %v1541_v23  ;;  %v667_v38 = vshll.u32 %v596_v1, 16  ;;  %3051 = vmatmul.mubr.msk.bf16.vlgmr.msra.gmra.mrb[0].mxu1 %vm409_vm1, %v2822_v27  ;;  %v1532_v5 = vsel %vm3436_vm7, %v2886_v60, %v1531_v28  ;;  %v673_v40 = vshll.u32 %v597_v7, 16  ;;  %v837_v1 = vld [vmem:[#allocation2 + $0x18] sm:$0x8]  ;;  %v839_v7 = vld [vmem:[#allocation2 + $0x2c] sm:$0x8] }
  0x59   : > { %v678_v41 = vshrl.u32 %v598_v31, 16  ;;  %v681_v43 = vshll.u32 %v598_v31, 16  ;;  %3059 = vmatpush3.bf16.msra.mxu1 %v3479_v26  ;;  %v2895_v35 = vcombine.low %v1519_v21, %v1532_v5  ;;  %v1557_v18 = vor.u32 %v1555_v32, %v1554_v36  ;;  %v841_v31 = vld [vmem:[#allocation2 + $0x40] sm:$0x8]  ;;  %v843_v27 = vld [vmem:[#allocation2 + $0x54] sm:$0x8] }
  0x5a   : > { %v1545_v47 = vsel %vm3436_vm7, %v2887_v0, %v1544_v24  ;;  %v666_v20 = vrot.slane %v664_v37, 4  ;;  %v669_v50 = vrot.slane %v667_v38, 5  ;;  %v675_v13 = vrot.slane %v673_v40, 5  ;;  %3060 = vmatprep.subr.bf16.mxu1 %v3229_v11 }
  0x5b   : > { %v680_v49 = vrot.slane %v678_v41, 4  ;;  %v683_v53 = vrot.slane %v681_v43, 5  ;;  %3102 = vmatprep.mubr.msk.bf16.mxu0 %vm409_vm1, %v2895_v35  ;;  %v1558_v57 = vsel %vm3436_vm7, %v2888_v29, %v1557_v18  ;;  %v687_v9 = vshll.u32 %v599_v8, 16  ;;  %v3613_v41 = vld [vmem:[#allocation2 + $0x6c] sm:$0xf] }
  0x5c   : > { %v692_v19 = vshrl.u32 %v600_v39, 16  ;;  %v695_v26 = vshll.u32 %v600_v39, 16  ;;  %v2896_v42 = vcombine.low %v1545_v47, %v1558_v57  ;;  %v670_v54 = vor.u32 %v669_v50, %v666_v20  ;;  %v845_v39 = vld [vmem:[#allocation2 + $0x68] sm:$0x8]  ;;  %v847_v50 = vld [vmem:[#allocation2 + $0x7c] sm:$0x8] }
  0x5d   : > { %v684_v55 = vor.u32 %v683_v53, %v680_v49  ;;  %v701_v62 = vshll.u32 %v601_v44, 16  ;;  %v689_v15 = vrot.slane %v687_v9, 5  ;;  %v706_v61 = vshrl.u32 %v602_v48, 16  ;;  %3061 = vmatpush3.bf16.msra.mxu1 %v3229_v11  ;;  %v3628_v49 = vld [vmem:[#allocation2 + $0x80] sm:$0xf] }
  0x5e   : > { %v694_v45 = vrot.slane %v692_v19, 4  ;;  %v697_v60 = vrot.slane %v695_v26, 5  ;;  %3103 = vmatmul.mubr.msk.bf16.gmra.mrb[4].mxu0 %vm409_vm1, %v2896_v42  ;;  %v671_v2 = vrot.slane %v670_v54, 4  ;;  %v709_v6 = vshll.u32 %v602_v48, 16  ;;  %3130 = vmatprep.subr.bf16.mxu1 %v3601_v16  ;;  %v849_v9 = vld [vmem:[#allocation2 + $0x90] sm:$0x8] }
  0x5f   : > { %v685_v0 = vrot.slane %v684_v55, 4  ;;  %v703_v4 = vrot.slane %v701_v62, 5  ;;  %v708_v23 = vrot.slane %v706_v61, 4  ;;  %v715_v63 = vshll.u32 %v603_v56, 16  ;;  %v3644_v19 = vld [vmem:[#allocation2 + $0x94] sm:$0xf] }
  0x60   : > { %v698_v21 = vor.u32 %v697_v60, %v694_v45  ;;  %v2907_v11 = vcombine.low %v3494_v3, %v3512_v25  ;;  %v676_v28 = vsel %vm3429_vm4, %v671_v2, %v675_v13  ;;  %v711_v32 = vrot.slane %v709_v6, 5  ;;  %v851_v26 = vld [vmem:[#allocation2 + $0xa4] sm:$0x8]  ;;  %v3648_v56 = vld [vmem:[#allocation2 + $0xa8] sm:$0xf] }
  0x61   : > { %v690_v29 = vsel %vm3429_vm4, %v685_v0, %v689_v15  ;;  %v2908_v8 = vcombine.low %v3517_v58, %v3525_v22  ;;  %v717_v37 = vrot.slane %v715_v63, 5  ;;  %v854_v38 = vshrl.u32 %v837_v1, 16  ;;  %v3234_v22 = vld [vmem:[%s3815_s1 + $0x88] sm:$0xff]   ;;  %v1795_v45 = vld [vmem:[#allocation2 + $0x30] sm:$0xf] }
  0x62   : > { %v2823_v24 = vcombine.low %v676_v28, %v690_v29  ;;  %v699_v36 = vrot.slane %v698_v21, 4  ;;  %3110 = vmatprep.mubr.msk.bf16.mxu0 %vm409_vm1, %v2907_v11  ;;  %v712_v3 = vor.u32 %v711_v32, %v708_v23  ;;  %v867_v25 = vshrl.u32 %v839_v7, 16  ;;  %v1796_v2 = vld [vmem:[#allocation2 + $0x34] sm:$0x1]  ;;  %v1797_v21 = vld [vmem:[#allocation2 + $0x44] sm:$0xf] }
  0x63   : > { %v880_v5 = vshrl.u32 %v841_v31, 16  ;;  %v893_v40 = vshrl.u32 %v843_v27, 16  ;;  %v2831_v44 = vrot.slane %v854_v38, 11  ;;  %v2909_v58 = vcombine.low %v3547_v33, %v3555_v34 }
  0x64   : > { %3054 = vmatprep.mubr.msk.bf16.mxu1 %vm409_vm1, %v2823_v24  ;;  %v704_v43 = vsel %vm3429_vm4, %v699_v36, %v703_v4  ;;  %v2910_v35 = vcombine.low %v3559_v30, %v3573_v59  ;;  %v713_v47 = vrot.slane %v712_v3, 4  ;;  %v2832_v18 = vrot.slane %v867_v25, 11  ;;  %v1798_v24 = vld [vmem:[#allocation2 + $0x48] sm:$0x1] }
  0x65   : > { %v2833_v20 = vrot.slane %v880_v5, 11  ;;  %v2834_v48 = vrot.slane %v893_v40, 11  ;;  %v865_v13 = vsel %vm3436_vm7, %v2831_v44, %v3360_v46  ;;  %v906_v53 = vshrl.u32 %v845_v39, 16  ;;  %v1799_v40 = vld [vmem:[#allocation2 + $0x58] sm:$0xf] }
  0x66   : > { %v911_v33 = vshrl.u32 %v3613_v41, 16  ;;  %v914_v34 = vshll.u32 %v3613_v41, 16  ;;  %v718_v57 = vsel %vm3429_vm4, %v713_v47, %v717_v37  ;;  %3111 = vmatmul.mubr.msk.bf16.vlgmr.msra.gmra.mrb[0].mxu0 %vm409_vm1, %v2908_v8  ;;  %v878_v30 = vsel %vm3436_vm7, %v2832_v18, %v3368_v52  ;;  %v1800_v47 = vld [vmem:[#allocation2 + $0x5c] sm:$0x1]  ;;  %v1801_v18 = vld [vmem:[#allocation2 + $0x6c] sm:$0xf] }
  0x67   : > { %v891_v46 = vsel %vm3436_vm7, %v2833_v20, %v3397_v12  ;;  %v904_v59 = vsel %vm3436_vm7, %v2834_v48, %v3404_v17  ;;  %v2824_v42 = vcombine.low %v704_v43, %v718_v57  ;;  %3119 = vmatpush3.bf16.msra.mxu0 %v3567_v10  ;;  %v2843_v54 = vcombine.low %v865_v13, %v878_v30 }
  0x68   : > { %v2844_v55 = vcombine.low %v891_v46, %v904_v59  ;;  %3114 = vmatprep.mubr.msk.bf16.mxu0 %vm409_vm1, %v2909_v58  ;;  %v2835_v52 = vrot.slane %v906_v53, 11  ;;  %3120 = vmatprep.subr.bf16.mxu0 %v3234_v22  ;;  %v913_v12 = vrot.slane %v911_v33, 7  ;;  %v919_v62 = vshrl.u32 %v847_v50, 16  ;;  %v1802_v33 = vld [vmem:[#allocation2 + $0x70] sm:$0x1] }
  0x69   : > { %v924_v15 = vshrl.u32 %v3628_v49, 16  ;;  %v927_v17 = vshll.u32 %v3628_v49, 16  ;;  %3055 = vmatmul.mubr.msk.bf16.gmra.mrb[4].mxu1 %vm409_vm1, %v2824_v42  ;;  %v932_v60 = vshrl.u32 %v849_v9, 16  ;;  %v937_v10 = vshrl.u32 %v3644_v19, 16 }
  0x6a   : > { %v940_v61 = vshll.u32 %v3644_v19, 16  ;;  %v945_v1 = vshrl.u32 %v851_v26, 16  ;;  %3062 = vmatprep.mubr.msk.bf16.mxu1 %vm409_vm1, %v2843_v54  ;;  %v916_v0 = vor.u32 %v914_v34, %v913_v12  ;;  %v2836_v4 = vrot.slane %v919_v62, 11 }
  0x6b   : > { %v926_v6 = vrot.slane %v924_v15, 7  ;;  %v950_v7 = vshrl.u32 %v3648_v56, 16  ;;  %3121 = vmatpush3.bf16.msra.mxu0 %v3234_v22  ;;  %v2837_v23 = vrot.slane %v932_v60, 11  ;;  %v939_v63 = vrot.slane %v937_v10, 7 }
  0x6c   : > { %v2838_v11 = vrot.slane %v945_v1, 11  ;;  %v953_v31 = vshll.u32 %v3648_v56, 16  ;;  %v917_v27 = vsel %vm3436_vm7, %v2835_v52, %v916_v0  ;;  %v1812_v32 = vshrl.u32 %v1795_v45, 16  ;;  %v1803_v52 = vld [vmem:[#allocation2 + $0x80] sm:$0xf] }
  0x6d   : > { %v929_v28 = vor.u32 %v927_v17, %v926_v6  ;;  %v952_v29 = vrot.slane %v950_v7, 7  ;;  %v942_v8 = vor.u32 %v940_v61, %v939_v63  ;;  %v1815_v36 = vshll.u32 %v1795_v45, 16  ;;  %v1804_v17 = vld [vmem:[#allocation2 + $0x84] sm:$0x1]  ;;  %v1805_v1 = vld [vmem:[#allocation2 + $0x94] sm:$0xf] }
  0x6e   : > { %v1821_v37 = vshll.u32 %v1796_v2, 16  ;;  %v1826_v38 = vshrl.u32 %v1797_v21, 16  ;;  %3115 = vmatmul.mubr.msk.bf16.gmra.mrb[4].mxu0 %vm409_vm1, %v2910_v35  ;;  %v1814_v25 = vrot.slane %v1812_v32, 4  ;;  %v1829_v5 = vshll.u32 %v1797_v21, 16  ;;  %v1807_v32 = vld [vmem:[#allocation2 + $0xa8] sm:$0xf] }
  0x6f   : > { %v930_v39 = vsel %vm3436_vm7, %v2836_v4, %v929_v28  ;;  %v955_v3 = vor.u32 %v953_v31, %v952_v29  ;;  %v943_v44 = vsel %vm3436_vm7, %v2837_v23, %v942_v8  ;;  %v1817_v58 = vrot.slane %v1815_v36, 5  ;;  %v1806_v4 = vld [vmem:[#allocation2 + $0x98] sm:$0x1] }
  0x70   : > { %v2845_v43 = vcombine.low %v917_v27, %v930_v39  ;;  %v1823_v22 = vrot.slane %v1821_v37, 5  ;;  %v1828_v48 = vrot.slane %v1826_v38, 4  ;;  %v1831_v35 = vrot.slane %v1829_v5, 5 }
  0x71   : > { %v956_v20 = vsel %vm3436_vm7, %v2838_v11, %v955_v3  ;;  %v1835_v50 = vshll.u32 %v1798_v24, 16  ;;  %3063 = vmatmul.mubr.msk.bf16.vlgmr.msra.gmra.mrb[0].mxu1 %vm409_vm1, %v2844_v55  ;;  %v1818_v53 = vor.u32 %v1817_v58, %v1814_v25  ;;  %v1840_v34 = vshrl.u32 %v1799_v40, 16  ;;  %v1808_v24 = vld [vmem:[#allocation2 + $0xac] sm:$0x1]  ;;  %v1809_v3 = vld [vmem:[#allocation2 + $0xbc] sm:$0xf] }
  0x72   : > { %v2846_v13 = vcombine.low %v943_v44, %v956_v20  ;;  %v1843_v57 = vshll.u32 %v1799_v40, 16  ;;  %3132 = vmatpush3.bf16.msra.mxu1 %v3601_v16  ;;  %3066 = vmatprep.mubr.msk.bf16.mxu1 %vm409_vm1, %v2845_v43  ;;  %v1832_v30 = vor.u32 %v1831_v35, %v1828_v48  ;;  %v1849_v59 = vshll.u32 %v1800_v47, 16  ;;  %v1810_v40 = vld [vmem:[#allocation2 + $0xc0] sm:$0x1] }
  0x73   : > { %v1837_v46 = vrot.slane %v1835_v50, 5  ;;  %v1854_v9 = vshrl.u32 %v1801_v18, 16  ;;  %3131 = vmatprep.subr.bf16.mxu1 %v3239_v14  ;;  %v1819_v26 = vrot.slane %v1818_v53, 4  ;;  %v1842_v42 = vrot.slane %v1840_v34, 4 }
  0x74   : > { %v1845_v54 = vrot.slane %v1843_v57, 5  ;;  %v1857_v55 = vshll.u32 %v1801_v18, 16  ;;  %v1833_v12 = vrot.slane %v1832_v30, 4  ;;  %v1851_v62 = vrot.slane %v1849_v59, 5 }
  0x75   : > { %v1856_v15 = vrot.slane %v1854_v9, 4  ;;  %v1863_v16 = vshll.u32 %v1802_v33, 16  ;;  %v1824_v45 = vsel %vm3429_vm4, %v1819_v26, %v1823_v22  ;;  %v2859_v61 = vcombine.low %v3613_v41, %v3628_v49 }
  0x76   : > { %v1846_v60 = vor.u32 %v1845_v54, %v1842_v42  ;;  %v1859_v10 = vrot.slane %v1857_v55, 5  ;;  %3133 = vmatpush3.bf16.msra.mxu1 %v3239_v14  ;;  %v1838_v2 = vsel %vm3429_vm4, %v1833_v12, %v1837_v46  ;;  %v1868_v6 = vshrl.u32 %v1803_v52, 16 }
  0x77   : > { %v1865_v0 = vrot.slane %v1863_v16, 5  ;;  %v1871_v7 = vshll.u32 %v1803_v52, 16  ;;  %v2921_v21 = vcombine.low %v1824_v45, %v1838_v2  ;;  %v1877_v11 = vshll.u32 %v1804_v17, 16 }
  0x78   : > { %v1847_v23 = vrot.slane %v1846_v60, 4  ;;  %v1860_v63 = vor.u32 %v1859_v10, %v1856_v15  ;;  %v1870_v31 = vrot.slane %v1868_v6, 4  ;;  %v1882_v28 = vshrl.u32 %v1805_v1, 16 }
  0x79   : > { %v1873_v27 = vrot.slane %v1871_v7, 5  ;;  %v1885_v29 = vshll.u32 %v1805_v1, 16  ;;  %3067 = vmatmul.mubr.msk.bf16.gmra.mrb[4].mxu1 %vm409_vm1, %v2846_v13  ;;  %3122 = vmatprep.mubr.msk.bf16.mxu0 %vm409_vm1, %v2921_v21  ;;  %v1891_v8 = vshll.u32 %v1806_v4, 16  ;;  %v1879_v37 = vrot.slane %v1877_v11, 5  ;;  %v3703_v1 = vld [vmem:[%s3816_s2] ss:$0 sm:$0xff] }
  0x7a   : > { %v1852_v41 = vsel %vm3429_vm4, %v1847_v23, %v1851_v62  ;;  %v1861_v49 = vrot.slane %v1860_v63, 4  ;;  %3078 = vmatprep.mubr.msk.bf16.mxu1 %vm409_vm1, %v2859_v61  ;;  %v1884_v38 = vrot.slane %v1882_v28, 4  ;;  %v1896_v43 = vshrl.u32 %v1807_v32, 16 }
  0x7b   : > { %v1874_v36 = vor.u32 %v1873_v27, %v1870_v31  ;;  %v1887_v39 = vrot.slane %v1885_v29, 5  ;;  %v1893_v5 = vrot.slane %v1891_v8, 5  ;;  %v1899_v44 = vshll.u32 %v1807_v32, 16 }
  0x7c   : > { %v1866_v25 = vsel %vm3429_vm4, %v1861_v49, %v1865_v0  ;;  %v1905_v18 = vshll.u32 %v1808_v24, 16  ;;  %v1898_v20 = vrot.slane %v1896_v43, 4  ;;  %v1910_v35 = vshrl.u32 %v1809_v3, 16 }
  0x7d   : > { %v2922_v58 = vcombine.low %v1852_v41, %v1866_v25  ;;  %v1875_v22 = vrot.slane %v1874_v36, 4  ;;  %v1888_v47 = vor.u32 %v1887_v39, %v1884_v38  ;;  %v1901_v48 = vrot.slane %v1899_v44, 5 }
  0x7e   : > { %v1913_v50 = vshll.u32 %v1809_v3, 16  ;;  %v1919_v33 = vshll.u32 %v1810_v40, 16  ;;  %v1907_v57 = vrot.slane %v1905_v18, 5  ;;  %v1912_v30 = vrot.slane %v1910_v35, 4 }
  0x7f   : > { %3123 = vmatmul.mubr.msk.bf16.vlgmr.msra.gmra.mrb[0].mxu0 %vm409_vm1, %v2922_v58  ;;  %v1880_v13 = vsel %vm3429_vm4, %v1875_v22, %v1879_v37  ;;  %v1889_v53 = vrot.slane %v1888_v47, 4  ;;  %v1902_v34 = vor.u32 %v1901_v48, %v1898_v20  ;;  %v2860_v9 = vcombine.low %v3644_v19, %v3648_v56 }
  0x80   : > { %v1915_v46 = vrot.slane %v1913_v50, 5  ;;  %v1921_v54 = vrot.slane %v1919_v33, 5  ;;  %v3249_v17 = vmov 1983009808   ;;  %v2071_v60 = vlaneseq }
  0x81   : > { %v1894_v59 = vsel %vm3429_vm4, %v1889_v53, %v1893_v5  ;;  %v1903_v26 = vrot.slane %v1902_v34, 4  ;;  %v2069_v45 = vunpack.c.l.s4 %v3249_v17 }
  0x82   : > { %v2923_v14 = vcombine.low %v1880_v13, %v1894_v59  ;;  %v1916_v42 = vor.u32 %v1915_v46, %v1912_v30  ;;  %v2072_v61 = vshrl.u32 %v2071_v60, 7 }
  0x83   : > { %v1908_v55 = vsel %vm3429_vm4, %v1903_v26, %v1907_v57  ;;  %v2070_v10 = vunpack.c.0.s8 %v2069_v45 }
  0x84   : > { %3126 = vmatprep.mubr.msk.bf16.mxu0 %vm409_vm1, %v2923_v14  ;;  %v1917_v52 = vrot.slane %v1916_v42, 4 }
  0x85   : > { %3079 = vmatmul.mubr.msk.bf16.vlgmr.msra.gmra.mrb[4].mxu1 %vm409_vm1, %v2860_v9  ;;  %v3706_v21 = vsub.s32 %v2070_v10, %v2072_v61 }
  0x86   : > { %v1922_v12 = vsel %vm3429_vm4, %v1917_v52, %v1921_v54 }
  0x87   : > { %v2924_v62 = vcombine.low %v1908_v55, %v1922_v12 }
  0x89   : > { %3127 = vmatmul.mubr.msk.bf16.gmra.mrb[4].mxu0 %vm409_vm1, %v2924_v62 }
 0x144   : > { %v3064_v15 = vpop.f32.mrb[0].mxu1 }
 0x145   : > { %v1032_v19 = vpop.f32.mrb[1].mxu1 }
 0x146   : > { %v3065_v56 = vpop.f32.mrb[2].mxu1 }
 0x147   : > { %v1035_v16 = vpop.f32.mrb[3].mxu1 }
 0x152   : > { %v3124_v2 = vpop.f32.mrb[0].mxu0 }
 0x153   : > { %v3134_v51 = vadd.f32 %v3124_v2, %v3064_v15  ;;  %v1998_v0 = vpop.f32.mrb[1].mxu0 }
 0x154   : > { %v3135_v4 = vadd.f32 %v1998_v0, %v1032_v19  ;;  %v3125_v6 = vpop.f32.mrb[2].mxu0 }
 0x155   : > { %v2045_v7 = vadd.f32 %v3134_v51, %v3703_v1  ;;  %v3136_v23 = vadd.f32 %v3125_v6, %v3065_v56  ;;  %v2001_v63 = vpop.f32.mrb[3].mxu0 }
 0x156   : > { %v2043_v11 = vadd.f32 %v3135_v4, %v3703_v1  ;;  %v3137_v31 = vadd.f32 %v2001_v63, %v1035_v16 }
 0x157   : > { %v2053_v27 = vmax.f32 %v2045_v7, 0.0  ;;  %v2046_v28 = vadd.f32 %v3136_v23, %v3703_v1 }
 0x158   : > { %v2051_v29 = vmax.f32 %v2043_v11, 0.0  ;;  %v2044_v32 = vadd.f32 %v3137_v31, %v3703_v1  ;;  %v3080_v24 = vpop.f32.mrb[4].mxu1 }
 0x159   : > { %v2101_v41 = vcombine.high %v2053_v27, %v2053_v27  ;;  %v2108_v49 = vrot.slane %v2053_v27, %v3706_v21  ;;  %v2054_v8 = vmax.f32 %v2046_v28, 0.0  ;;  %v3713_v39 = vpop.f32.mrb[5].mxu1 }
 0x15a   : > { %v2067_v36 = vcombine.high %v2051_v29, %v2051_v29  ;;  %v2074_v37 = vrot.slane %v2051_v29, %v3706_v21  ;;  %v2052_v38 = vmax.f32 %v2044_v32, 0.0  ;;  %v3716_v43 = vpop.f32.mrb[6].mxu1 }
 0x15b   : > { %v2115_v3 = vrot.slane %v2101_v41, %v3706_v21  ;;  %v2116_v25 = vcombine.high %v2108_v49, %v2108_v49  ;;  %v2940_v5 = vrot.slane %v2108_v49, 9  ;;  %v2118_v40 = vcombine.high %v2054_v8, %v2054_v8  ;;  %v3720_v20 = vpop.f32.mrb[7].mxu1 }
 0x15c   : > { %v2081_v44 = vrot.slane %v2067_v36, %v3706_v21  ;;  %v2082_v58 = vcombine.high %v2074_v37, %v2074_v37  ;;  %v2932_v22 = vrot.slane %v2074_v37, 9  ;;  %v2125_v47 = vrot.slane %v2054_v8, %v3706_v21  ;;  %v3128_v18 = vpop.f32.mrb[4].mxu0 }
 0x15d   : > { %v2117_v48 = vcombine.high %v2115_v3, %v2115_v3  ;;  %v2941_v35 = vrot.slane %v2116_v25, 9  ;;  %v2942_v50 = vrot.slane %v2115_v3, 9  ;;  %v2339_v13 = vmax.f32 %v2108_v49, %v2940_v5  ;;  %v3722_v53 = vpop.f32.mrb[5].mxu0 }
 0x15e   : > { %v2083_v33 = vcombine.high %v2081_v44, %v2081_v44  ;;  %v2933_v34 = vrot.slane %v2082_v58, 9  ;;  %v2934_v57 = vrot.slane %v2081_v44, 9  ;;  %v2331_v30 = vmax.f32 %v2074_v37, %v2932_v22  ;;  %v3724_v46 = vpop.f32.mrb[6].mxu0 }
 0x15f   : > { %v2943_v59 = vrot.slane %v2117_v48, 9  ;;  %v2340_v9 = vmax.f32 %v2116_v25, %v2941_v35  ;;  %v2341_v14 = vmax.f32 %v2115_v3, %v2942_v50  ;;  %v2132_v26 = vrot.slane %v2118_v40, %v3706_v21  ;;  %v3727_v42 = vpop.f32.mrb[7].mxu0 }
 0x160   : > { %v2935_v54 = vrot.slane %v2083_v33, 9  ;;  %v2332_v55 = vmax.f32 %v2082_v58, %v2933_v34  ;;  %v2333_v52 = vmax.f32 %v2081_v44, %v2934_v57  ;;  %v2133_v12 = vcombine.high %v2125_v47, %v2125_v47 }
 0x161   : > { %v2342_v62 = vmax.f32 %v2117_v48, %v2943_v59  ;;  %v2134_v15 = vcombine.high %v2132_v26, %v2132_v26  ;;  %v2944_v19 = vrot.slane %v2125_v47, 9  ;;  %v2946_v56 = vrot.slane %v2132_v26, 9 }
 0x162   : > { %v2334_v16 = vmax.f32 %v2083_v33, %v2935_v54  ;;  %v2945_v17 = vrot.slane %v2133_v12, 9  ;;  %v2084_v45 = vcombine.high %v2052_v38, %v2052_v38  ;;  %v2091_v60 = vrot.slane %v2052_v38, %v3706_v21 }
 0x163   : > { %v2947_v10 = vrot.slane %v2134_v15, 9  ;;  %v2343_v61 = vmax.f32 %v2125_v47, %v2944_v19  ;;  %v2345_v2 = vmax.f32 %v2132_v26, %v2946_v56  ;;  %v3138_v51 = vadd.f32 %v3128_v18, %v3080_v24 }
 0x164   : > { %v2344_v0 = vmax.f32 %v2133_v12, %v2945_v17  ;;  %v2098_v4 = vrot.slane %v2084_v45, %v3706_v21  ;;  %v2099_v6 = vcombine.high %v2091_v60, %v2091_v60  ;;  %v2936_v7 = vrot.slane %v2091_v60, 9 }
 0x165   : > { %v2346_v23 = vmax.f32 %v2134_v15, %v2947_v10  ;;  %v2367_v63 = vmax.f32 %v2339_v13, %v2343_v61  ;;  %v2369_v11 = vmax.f32 %v2341_v14, %v2345_v2  ;;  %v2049_v31 = vadd.f32 %v3138_v51, %v3703_v1 }
 0x166   : > { %v2368_v27 = vmax.f32 %v2340_v9, %v2344_v0  ;;  %v2100_v28 = vcombine.high %v2098_v4, %v2098_v4  ;;  %v2937_v29 = vrot.slane %v2099_v6, 9  ;;  %v2938_v32 = vrot.slane %v2098_v4, 9 }
 0x167   : > { %v2370_v41 = vmax.f32 %v2342_v62, %v2346_v23  ;;  %v2383_v49 = vpack.c.bf16 %v2367_v63, %v2367_v63  ;;  %v2385_v8 = vpack.c.bf16 %v2369_v11, %v2369_v11  ;;  %v2335_v36 = vmax.f32 %v2091_v60, %v2936_v7 }
 0x168   : > { %v2384_v24 = vpack.c.bf16 %v2368_v27, %v2368_v27  ;;  %v2939_v37 = vrot.slane %v2100_v28, 9  ;;  %v2336_v38 = vmax.f32 %v2099_v6, %v2937_v29  ;;  %v2337_v3 = vmax.f32 %v2098_v4, %v2938_v32 }
 0x169   : > { %v2386_v25 = vpack.c.bf16 %v2370_v41, %v2370_v41  ;;  %v2445_v5 = vrot.slane %v2383_v49, %v3706_v21  ;;  %v2459_v40 = vrot.slane %v2385_v8, %v3706_v21  ;;  %v2363_v44 = vmax.f32 %v2331_v30, %v2335_v36 }
 0x16a   : > { %v2452_v58 = vrot.slane %v2384_v24, %v3706_v21  ;;  %v2338_v22 = vmax.f32 %v2100_v28, %v2939_v37  ;;  %v2364_v47 = vmax.f32 %v2332_v55, %v2336_v38  ;;  %v2365_v18 = vmax.f32 %v2333_v52, %v2337_v3 }
 0x16b   : > { %v2466_v48 = vrot.slane %v2386_v25, %v3706_v21  ;;  %v2557_v35 = vrot.slane %v2445_v5, %v3706_v21  ;;  %v2571_v50 = vrot.slane %v2459_v40, %v3706_v21  ;;  %v2379_v13 = vpack.c.bf16 %v2363_v44, %v2363_v44 }
 0x16c   : > { %v2564_v33 = vrot.slane %v2452_v58, %v3706_v21  ;;  %v2366_v34 = vmax.f32 %v2334_v16, %v2338_v22  ;;  %v2380_v57 = vpack.c.bf16 %v2364_v47, %v2364_v47  ;;  %v2381_v59 = vpack.c.bf16 %v2365_v18, %v2365_v18 }
 0x16d   : > { %v2578_v9 = vrot.slane %v2466_v48, %v3706_v21  ;;  %v2639_v30 = vunpack.c.l.b16 %v2557_v35  ;;  %v2641_v14 = vunpack.c.l.b16 %v2571_v50  ;;  %v2417_v26 = vrot.slane %v2379_v13, %v3706_v21 }
 0x16e   : > { %v2640_v54 = vunpack.c.l.b16 %v2564_v33  ;;  %v2382_v55 = vpack.c.bf16 %v2366_v34, %v2366_v34  ;;  %v2424_v52 = vrot.slane %v2380_v57, %v3706_v21  ;;  %v2431_v12 = vrot.slane %v2381_v59, %v3706_v21 }
 0x16f   : > { %v2642_v62 = vunpack.c.l.b16 %v2578_v9  ;;  %v2662_v15 = vrot.slane %v2641_v14, 6  ;;  %v2529_v19 = vrot.slane %v2417_v26, %v3706_v21  ;;  %v2057_v56 = vmax.f32 %v2049_v31, 0.0 }
 0x170   : > { %v2660_v16 = vrot.slane %v2640_v54, 7  ;;  %v2438_v17 = vrot.slane %v2382_v55, %v3706_v21  ;;  %v2536_v45 = vrot.slane %v2424_v52, %v3706_v21  ;;  %v2543_v60 = vrot.slane %v2431_v12, %v3706_v21 }
 0x171   : > { %v2664_v10 = vrot.slane %v2642_v62, 5  ;;  %v2169_v61 = vcombine.high %v2057_v56, %v2057_v56  ;;  %v2176_v2 = vrot.slane %v2057_v56, %v3706_v21  ;;  %v2635_v23 = vunpack.c.l.b16 %v2529_v19 }
 0x172   : > { %v2661_v51 = vsel %vm2652_vm8, %v2660_v16, %v2639_v30  ;;  %v2550_v0 = vrot.slane %v2438_v17, %v3706_v21  ;;  %v2636_v4 = vunpack.c.l.b16 %v2536_v45  ;;  %v2637_v6 = vunpack.c.l.b16 %v2543_v60 }
 0x173   : > { %v2663_v7 = vsel %vm2655_vm9, %v2662_v15, %v2661_v51  ;;  %v2183_v63 = vrot.slane %v2169_v61, %v3706_v21  ;;  %v2184_v32 = vcombine.high %v2176_v2, %v2176_v2  ;;  %v3139_v8 = vadd.f32 %v3722_v53, %v3713_v39 }
 0x174   : > { %v2665_v11 = vsel %vm2658_vm10, %v2664_v10, %v2663_v7  ;;  %v2638_v31 = vunpack.c.l.b16 %v2550_v0  ;;  %v2651_v27 = vrot.slane %v2636_v4, 7  ;;  %v2654_v28 = vrot.slane %v2637_v6, 6 }
 0x175   : > { %v2679_v29 = vpack.c.b16 %v2665_v11, %v2665_v11  ;;  %v2185_v37 = vcombine.high %v2183_v63, %v2183_v63  ;;  %v2956_v3 = vrot.slane %v2176_v2, 9  ;;  %v2047_v25 = vadd.f32 %v3139_v8, %v3703_v1 }
 0x176   : > { %v2653_v41 = vsel %vm2652_vm8, %v2651_v27, %v2635_v23  ;;  %v2657_v49 = vrot.slane %v2638_v31, 5  ;;  %v3140_v5 = vadd.f32 %v3724_v46, %v3716_v43  ;;  %v2957_v44 = vrot.slane %v2184_v32, 9 }
 0x177   : > { %v2695_v36 = vrot.slane %v2679_v29, %v3706_v21  ;;  %v2656_v24 = vsel %vm2655_vm9, %v2654_v28, %v2653_v41  ;;  %v2958_v58 = vrot.slane %v2183_v63, 9  ;;  %v3141_v39 = vadd.f32 %v3727_v42, %v3720_v20 }
 0x178   : > { %v2659_v38 = vsel %vm2658_vm10, %v2657_v49, %v2656_v24  ;;  %v2055_v53 = vmax.f32 %v2047_v25, 0.0  ;;  %v2050_v22 = vadd.f32 %v3140_v5, %v3703_v1  ;;  %v2959_v18 = vrot.slane %v2185_v37, 9 }
 0x179   : > { %2716 = vst.msk [vmem:[%s3757_s11 + $0x2] sm:$0x3] %vm2714_vm11, %v2695_v36  ;;  %v2678_v40 = vpack.c.b16 %v2659_v38, %v2659_v38  ;;  %v2048_v48 = vadd.f32 %v3141_v39, %v3703_v1  ;;  %v2355_v46 = vmax.f32 %v2176_v2, %v2956_v3  ;;  %v2356_v13 = vmax.f32 %v2184_v32, %v2957_v44 }
 0x17a   : > { %v2135_v35 = vcombine.high %v2055_v53, %v2055_v53  ;;  %v2142_v50 = vrot.slane %v2055_v53, %v3706_v21  ;;  %v2058_v43 = vmax.f32 %v2050_v22, 0.0  ;;  %v2357_v33 = vmax.f32 %v2183_v63, %v2958_v58 }
 0x17b   : > { %v2688_v47 = vrot.slane %v2678_v40, %v3706_v21  ;;  %v2056_v34 = vmax.f32 %v2048_v48, 0.0  ;;  %v2358_v9 = vmax.f32 %v2185_v37, %v2959_v18 }
 0x17c   : > { %v2149_v20 = vrot.slane %v2135_v35, %v3706_v21  ;;  %v2150_v42 = vcombine.high %v2142_v50, %v2142_v50  ;;  %v2948_v57 = vrot.slane %v2142_v50, 9  ;;  %v2186_v59 = vcombine.high %v2058_v43, %v2058_v43 }
 0x17d   : > { %2715 = vst.msk [vmem:[%s3757_s11] sm:$0x3] %vm2714_vm11, %v2688_v47  ;;  %v2193_v30 = vrot.slane %v2058_v43, %v3706_v21  ;;  %v2152_v14 = vcombine.high %v2056_v34, %v2056_v34  ;;  %v2159_v1 = vrot.slane %v2056_v34, %v3706_v21 }
 0x17e   : > { %v2151_v26 = vcombine.high %v2149_v20, %v2149_v20  ;;  %v2949_v54 = vrot.slane %v2150_v42, 9  ;;  %v2950_v55 = vrot.slane %v2149_v20, 9  ;;  %v2347_v52 = vmax.f32 %v2142_v50, %v2948_v57 }
 0x17f   : > { %v2200_v12 = vrot.slane %v2186_v59, %v3706_v21  ;;  %v2201_v62 = vcombine.high %v2193_v30, %v2193_v30  ;;  %v2960_v15 = vrot.slane %v2193_v30, 9  ;;  %v2166_v19 = vrot.slane %v2152_v14, %v3706_v21 }
 0x180   : > { %v2951_v56 = vrot.slane %v2151_v26, 9  ;;  %v2348_v16 = vmax.f32 %v2150_v42, %v2949_v54  ;;  %v2349_v17 = vmax.f32 %v2149_v20, %v2950_v55  ;;  %v2167_v45 = vcombine.high %v2159_v1, %v2159_v1 }
 0x181   : > { %v2202_v60 = vcombine.high %v2200_v12, %v2200_v12  ;;  %v2961_v10 = vrot.slane %v2201_v62, 9  ;;  %v2962_v61 = vrot.slane %v2200_v12, 9  ;;  %v2359_v2 = vmax.f32 %v2193_v30, %v2960_v15 }
 0x182   : > { %v2350_v51 = vmax.f32 %v2151_v26, %v2951_v56  ;;  %v2168_v0 = vcombine.high %v2166_v19, %v2166_v19  ;;  %v2952_v4 = vrot.slane %v2159_v1, 9  ;;  %v2953_v6 = vrot.slane %v2167_v45, 9 }
 0x183   : > { %v2963_v7 = vrot.slane %v2202_v60, 9  ;;  %v2360_v23 = vmax.f32 %v2201_v62, %v2961_v10  ;;  %v2361_v63 = vmax.f32 %v2200_v12, %v2962_v61  ;;  %v2375_v11 = vmax.f32 %v2355_v46, %v2359_v2 }
 0x184   : > { %v2954_v31 = vrot.slane %v2166_v19, 9  ;;  %v2955_v27 = vrot.slane %v2168_v0, 9  ;;  %v2351_v28 = vmax.f32 %v2159_v1, %v2952_v4  ;;  %v2352_v29 = vmax.f32 %v2167_v45, %v2953_v6 }
 0x185   : > { %v2362_v32 = vmax.f32 %v2202_v60, %v2963_v7  ;;  %v2376_v41 = vmax.f32 %v2356_v13, %v2360_v23  ;;  %v2377_v49 = vmax.f32 %v2357_v33, %v2361_v63  ;;  %v2391_v8 = vpack.c.bf16 %v2375_v11, %v2375_v11 }
 0x186   : > { %v2353_v36 = vmax.f32 %v2166_v19, %v2954_v31  ;;  %v2354_v24 = vmax.f32 %v2168_v0, %v2955_v27  ;;  %v2371_v37 = vmax.f32 %v2347_v52, %v2351_v28  ;;  %v2372_v38 = vmax.f32 %v2348_v16, %v2352_v29 }
 0x187   : > { %v2378_v3 = vmax.f32 %v2358_v9, %v2362_v32  ;;  %v2392_v25 = vpack.c.bf16 %v2376_v41, %v2376_v41  ;;  %v2393_v5 = vpack.c.bf16 %v2377_v49, %v2377_v49  ;;  %v2501_v40 = vrot.slane %v2391_v8, %v3706_v21 }
 0x188   : > { %v2373_v44 = vmax.f32 %v2349_v17, %v2353_v36  ;;  %v2374_v58 = vmax.f32 %v2350_v51, %v2354_v24  ;;  %v2387_v39 = vpack.c.bf16 %v2371_v37, %v2371_v37  ;;  %v2388_v53 = vpack.c.bf16 %v2372_v38, %v2372_v38 }
 0x189   : > { %v2394_v22 = vpack.c.bf16 %v2378_v3, %v2378_v3  ;;  %v2508_v47 = vrot.slane %v2392_v25, %v3706_v21  ;;  %v2515_v18 = vrot.slane %v2393_v5, %v3706_v21  ;;  %v2613_v13 = vrot.slane %v2501_v40, %v3706_v21 }
 0x18a   : > { %v2389_v48 = vpack.c.bf16 %v2373_v44, %v2373_v44  ;;  %v2390_v35 = vpack.c.bf16 %v2374_v58, %v2374_v58  ;;  %v2473_v50 = vrot.slane %v2387_v39, %v3706_v21  ;;  %v2480_v43 = vrot.slane %v2388_v53, %v3706_v21 }
 0x18b   : > { %v2522_v46 = vrot.slane %v2394_v22, %v3706_v21  ;;  %v2620_v33 = vrot.slane %v2508_v47, %v3706_v21  ;;  %v2627_v34 = vrot.slane %v2515_v18, %v3706_v21  ;;  %v2647_v55 = vunpack.c.l.b16 %v2613_v13 }
 0x18c   : > { %v2487_v20 = vrot.slane %v2389_v48, %v3706_v21  ;;  %v2494_v42 = vrot.slane %v2390_v35, %v3706_v21  ;;  %v2585_v57 = vrot.slane %v2473_v50, %v3706_v21  ;;  %v2592_v59 = vrot.slane %v2480_v43, %v3706_v21 }
 0x18d   : > { %v2634_v9 = vrot.slane %v2522_v46, %v3706_v21  ;;  %v2648_v30 = vunpack.c.l.b16 %v2620_v33  ;;  %v2649_v14 = vunpack.c.l.b16 %v2627_v34 }
 0x18e   : > { %v2599_v1 = vrot.slane %v2487_v20, %v3706_v21  ;;  %v2606_v26 = vrot.slane %v2494_v42, %v3706_v21  ;;  %v2644_v54 = vunpack.c.l.b16 %v2592_v59  ;;  %v2643_v15 = vunpack.c.l.b16 %v2585_v57 }
 0x18f   : > { %v2650_v52 = vunpack.c.l.b16 %v2634_v9  ;;  %v2672_v12 = vrot.slane %v2648_v30, 7  ;;  %v2674_v62 = vrot.slane %v2649_v14, 6 }
 0x190   : > { %v2645_v19 = vunpack.c.l.b16 %v2599_v1  ;;  %v2646_v56 = vunpack.c.l.b16 %v2606_v26  ;;  %v2666_v16 = vrot.slane %v2644_v54, 7 }
 0x191   : > { %v2673_v17 = vsel %vm2652_vm8, %v2672_v12, %v2647_v55  ;;  %v2676_v45 = vrot.slane %v2650_v52, 5 }
 0x192   : > { %v2675_v60 = vsel %vm2655_vm9, %v2674_v62, %v2673_v17  ;;  %v2667_v10 = vsel %vm2652_vm8, %v2666_v16, %v2643_v15  ;;  %v2668_v61 = vrot.slane %v2645_v19, 6  ;;  %v2670_v2 = vrot.slane %v2646_v56, 5 }
 0x193   : > { %v2677_v51 = vsel %vm2658_vm10, %v2676_v45, %v2675_v60 }
 0x194   : > { %v2681_v0 = vpack.c.b16 %v2677_v51, %v2677_v51  ;;  %v2669_v4 = vsel %vm2655_vm9, %v2668_v61, %v2667_v10 }
 0x195   : > { %v2671_v6 = vsel %vm2658_vm10, %v2670_v2, %v2669_v4 }
 0x196   : > { %v2709_v7 = vrot.slane %v2681_v0, %v3706_v21  ;;  %v2680_v23 = vpack.c.b16 %v2671_v6, %v2671_v6 }
 0x198   : > { %2718 = vst.msk [vmem:[%s3757_s11 + $0x6] sm:$0x3] %vm2714_vm11, %v2709_v7  ;;  %v2702_v63 = vrot.slane %v2680_v23, %v3706_v21 }
 0x19a   : > { %2717 = vst.msk [vmem:[%s3757_s11 + $0x4] sm:$0x3] %vm2714_vm11, %v2702_v63 }
 0x19b PF: > { %s13_s12 = sadd.s32 1, %s3246_s12  }
 0x19c   : > { %p10_p4 = scmp.ge.s32.totalorder %s13_s12, 4  }
 0x19e   :  { %12 = sbr.rel (!%p10_p4) target bundleno = 1 (0x1), region = 75 }

// kernel: vpt_encode.3
= control target key start
LH: loop header
LB: loop body
LE: loop exit
PB: predicated region body
PF: predicated region fallthrough
CT: control target
= control target key end

     0   :  { %s4893_s12 = smov 0   ;;  %s5923_s0 = inlined_call_operand.vmem [shape: bf16[2,16,16,3], index: 0, kind: input, shape index: {}]   ;;  %s5924_s1 = inlined_call_operand.vmem [shape: bf16[27,32], index: 1, kind: input, shape index: {}]   ;;  %s5925_s2 = inlined_call_operand.vmem [shape: f32[1,32], index: 2, kind: input, shape index: {}]   ;;  %s5926_s3 = inlined_call_operand.vmem [shape: bf16[2,8,8,32], index: 3, kind: output, shape index: {}]  }
   0x1 LB: > { %s4454_s13 = sadd.s32 4294967295, %s4860_s12   ;;  %p4458_p0 = scmp.ge.s32.totalorder %s4860_s12, 1  ;;  %s4860_s12 = sphi %s4893_s12, %s13_s12  }
   0x2   : > { %p137_p1 = scmp.lt.s32.totalorder %s4860_s12, 3 }
   0x4   : > { %p138_p2 = pnand %p4458_p0, %p137_p1 }
   0x5   : > { %vm172_vm0 = vcmask (!%p138_p2), 23552   ;;  %v4862_v0 = vmov (!%p138_p2), 0   ;;  %p161_p3 = scmp.lt.s32.totalorder (!%p138_p2), %s4454_s13, 1  ;;  %s4863_s18 = smov (!%p138_p2), 3   ;;  %vm755_vm1 = vsmask.f32 (!%p138_p2), 7424 }
   0x6   : > { %141 = sbr.rel (%p138_p2) target bundleno = 683 (0x2ab), region = 32  ;;  %174 = vst.msk [vmem:[#allocation2 + $0x8] sm:$0xff] (!%p138_p2), %vm172_vm0, %v4862_v0  ;;  %173 = vst.msk [vmem:[#allocation2] sm:$0xff] (!%p138_p2), %vm172_vm0, %v4862_v0  ;;  %s4864_s19 = smov (!%p138_p2), 6   ;;  %vm401_vm2 = vsmask.f32 (!%p138_p2), 256 }
   0x7   : > { %175 = vst.msk [vmem:[#allocation2 + $0x10] sm:$0xff] (!%p138_p2), %vm172_vm0, %v4862_v0  ;;  %177 = vst.msk [vmem:[#allocation2 + $0x198] sm:$0xff] (!%p138_p2), %vm172_vm0, %v4862_v0  ;;  %s4865_s20 = smov (!%p138_p2), 12   ;;  %s4866_s21 = smov (!%p138_p2), 9   ;;  %vm2453_vm3 = vcmask (!%p138_p2), 1044480   ;;  %vm2454_vm4 = vcmask (!%p138_p2), 1045504  }
   0x8   : > { %178 = vst.msk [vmem:[#allocation2 + $0x1a0] sm:$0xff] (!%p138_p2), %vm172_vm0, %v4862_v0  ;;  %179 = vst.msk [vmem:[#allocation2 + $0x1a8] sm:$0xff] (!%p138_p2), %vm172_vm0, %v4862_v0  ;;  %s4867_s22 = smov (!%p138_p2), 15   ;;  %s4868_s23 = smov (!%p138_p2), 18   ;;  %vm706_vm5 = vcmask (!%p138_p2), 48152   ;;  %vm996_vm6 = vcmask (!%p138_p2), 72752  }
   0x9   : > { %181 = vst.msk [vmem:[#allocation2 + $0x18] sm:$0xff] (!%p138_p2), %vm172_vm0, %v4862_v0  ;;  %182 = vst.msk [vmem:[#allocation2 + $0x30] sm:$0xff] (!%p138_p2), %vm172_vm0, %v4862_v0  ;;  %s4869_s24 = smov (!%p138_p2), 21   ;;  %s4870_s27 = smov (!%p138_p2), 24   ;;  %vm1289_vm7 = vcmask (!%p138_p2), 97352   ;;  %vm1386_vm8 = vcmask (!%p138_p2), 121952  }
   0xa   : > { %183 = vst.msk [vmem:[#allocation2 + $0x48] sm:$0xff] (!%p138_p2), %vm172_vm0, %v4862_v0  ;;  %184 = vst.msk [vmem:[#allocation2 + $0x60] sm:$0xff] (!%p138_p2), %vm172_vm0, %v4862_v0  ;;  %vm1675_vm9 = vcmask (!%p138_p2), 146552   ;;  %vm1968_vm10 = vcmask (!%p138_p2), 171152   ;;  %vm2065_vm11 = vcmask (!%p138_p2), 195752   ;;  %vm2354_vm12 = vcmask (!%p138_p2), 220352  }
   0xb   : > { %185 = vst.msk [vmem:[#allocation2 + $0x78] sm:$0xff] (!%p138_p2), %vm172_vm0, %v4862_v0  ;;  %186 = vst.msk [vmem:[#allocation2 + $0x90] sm:$0xff] (!%p138_p2), %vm172_vm0, %v4862_v0  ;;  %vm2404_vm13 = vcmask (!%p138_p2), 220160   ;;  %vm4254_vm14 = vcmask (!%p138_p2), 1041409   ;;  %vm4257_vm15 = vcmask (!%p138_p2), 1042434  }
   0xc   : > { %187 = vst.msk [vmem:[#allocation2 + $0xa8] sm:$0xff] (!%p138_p2), %vm172_vm0, %v4862_v0  ;;  %188 = vst.msk [vmem:[#allocation2 + $0xc0] sm:$0xff] (!%p138_p2), %vm172_vm0, %v4862_v0 }
   0xd   : > { %189 = vst.msk [vmem:[#allocation2 + $0xd8] sm:$0xff] %vm172_vm0, %v4862_v0  ;;  %190 = vst.msk [vmem:[#allocation2 + $0xf0] sm:$0xff] %vm172_vm0, %v4862_v0  ;;  %s5928_s13 = smov (!%p161_p3, %s4454_s13), 1  ;;  %v4956_v2 = vld [vmem:[#allocation2 + $0x8] sm:$0xff] }
   0xe   : > { %191 = vst.msk [vmem:[#allocation2 + $0x108] sm:$0xff] %vm172_vm0, %v4862_v0  ;;  %192 = vst.msk [vmem:[#allocation2 + $0x120] sm:$0xff] %vm172_vm0, %v4862_v0  ;;  %s4692_s14 = sshll.u32 %s5928_s13, 7  ;;  %658 = vrot.lane.b32.xlu0 %v4956_v2, %s4863_s18  ;;  %v757_v4 = vshrl.u32 %v4956_v2, 16  ;;  %v759_v5 = vshll.u32 %v4956_v2, 16  ;;  %s4693_s5 = sshll.u32 %s5928_s13, 5 }
   0xf   : > { %193 = vst.msk [vmem:[#allocation2 + $0x138] sm:$0xff] %vm172_vm0, %v4862_v0  ;;  %194 = vst.msk [vmem:[#allocation2 + $0x150] sm:$0xff] %vm172_vm0, %v4862_v0  ;;  %s4953_s17 = scalar_lea.vmem %s5923_s0, %s4692_s14  ;;  %s5764_s8 = scalar_lea.vmem %s5926_s3, %s4693_s5 }
  0x10   : > { %195 = vst.msk [vmem:[#allocation2 + $0x168] sm:$0xff] %vm172_vm0, %v4862_v0  ;;  %196 = vst.msk [vmem:[#allocation2 + $0x180] sm:$0xff] %vm172_vm0, %v4862_v0  ;;  %v4835_v1 = vld [vmem:[%s4953_s17] sm:$0xff]   ;;  %v4836_v6 = vld [vmem:[%s4953_s17 + $0x38] sm:$0xff]   ;;  %v761_v10 = vrot.slane %v759_v5, 1 }
  0x11   : > { %199 = vst.msk [vmem:[#allocation2 + $0x28] sm:$0xff] %vm172_vm0, %v4862_v0  ;;  %200 = vst.msk [vmem:[#allocation2 + $0x40] sm:$0xff] %vm172_vm0, %v4862_v0  ;;  %v4837_v7 = vld [vmem:[%s4953_s17 + $0x40] sm:$0xff]   ;;  %v4838_v9 = vld [vmem:[%s4953_s17 + $0x8] sm:$0xff]  }
  0x12   : > { %201 = vst.msk [vmem:[#allocation2 + $0x58] sm:$0xff] %vm172_vm0, %v4862_v0  ;;  %202 = vst.msk [vmem:[#allocation2 + $0x70] sm:$0xff] %vm172_vm0, %v4862_v0  ;;  %v4839_v11 = vld [vmem:[%s4953_s17 + $0x48] sm:$0xff]   ;;  %v4840_v13 = vld [vmem:[%s4953_s17 + $0x10] sm:$0xff]   ;;  %v762_v14 = vor.u32 %v761_v10, %v757_v4 }
  0x13   : > { %203 = vst.msk [vmem:[#allocation2 + $0x88] sm:$0xff] %vm172_vm0, %v4862_v0  ;;  %204 = vst.msk [vmem:[#allocation2 + $0xa0] sm:$0xff] %vm172_vm0, %v4862_v0  ;;  %v4841_v16 = vld [vmem:[%s4953_s17 + $0x50] sm:$0xff]   ;;  %v4842_v17 = vld [vmem:[%s4953_s17 + $0x18] sm:$0xff]  }
  0x14   : > { %205 = vst.msk [vmem:[#allocation2 + $0xb8] sm:$0xff] %vm172_vm0, %v4862_v0  ;;  %206 = vst.msk [vmem:[#allocation2 + $0xd0] sm:$0xff] %vm172_vm0, %v4862_v0  ;;  %v1017_v20 = vld [vmem:[#allocation2 + $0x18] sm:$0x80]  ;;  %v4844_v31 = vld [vmem:[%s4953_s17 + $0x20] sm:$0xff]  }
  0x15   : > { %207 = vst.msk [vmem:[#allocation2 + $0xe8] sm:$0xff] %vm172_vm0, %v4862_v0  ;;  %208 = vst.msk [vmem:[#allocation2 + $0x100] sm:$0xff] %vm172_vm0, %v4862_v0  ;;  %v4843_v21 = vld [vmem:[%s4953_s17 + $0x58] sm:$0xff]   ;;  %v1050_v30 = vshrl.u32 %v1017_v20, 16  ;;  %v4845_v37 = vld [vmem:[%s4953_s17 + $0x60] sm:$0xff]  }
  0x16   : > { %209 = vst.msk [vmem:[#allocation2 + $0x118] sm:$0xff] %vm172_vm0, %v4862_v0  ;;  %210 = vst.msk [vmem:[#allocation2 + $0x130] sm:$0xff] %vm172_vm0, %v4862_v0  ;;  %v1019_v40 = vld [vmem:[#allocation2 + $0x30] sm:$0x80]  ;;  %v4846_v41 = vld [vmem:[%s4953_s17 + $0x28] sm:$0xff]  }
  0x17   : > { %211 = vst.msk [vmem:[#allocation2 + $0x148] sm:$0xff] %vm172_vm0, %v4862_v0  ;;  %212 = vst.msk [vmem:[#allocation2 + $0x160] sm:$0xff] %vm172_vm0, %v4862_v0  ;;  %v1033_v46 = vld [vmem:[#allocation2 + $0xd8] sm:$0x80]  ;;  %v1052_v51 = vrot.slane %v1050_v30, 7  ;;  %v1062_v54 = vshrl.u32 %v1019_v40, 16 }
  0x18   : > { %213 = vst.msk [vmem:[#allocation2 + $0x178] sm:$0xff] %vm172_vm0, %v4862_v0  ;;  %214 = vst.msk [vmem:[#allocation2 + $0x190] sm:$0xff] %vm172_vm0, %v4862_v0  ;;  %v726_v15 = vld [vmem:[#allocation2 + $0x28] sm:$0x1]  ;;  %v1146_v55 = vshrl.u32 %v1033_v46, 16 }
  0x19   : > { %198 = vst.msk [vmem:[#allocation2 + $0x10] sm:$0xff] %vm172_vm0, %v4862_v0  ;;  %180 = vst.msk [vmem:[#allocation2] sm:$0xff] %vm172_vm0, %v4862_v0  ;;  %v776_v23 = vshll.u32 %v726_v15, 16  ;;  %v1035_v60 = vld [vmem:[#allocation2 + $0xf0] sm:$0x80]  ;;  %v4847_v20 = vld [vmem:[%s4953_s17 + $0x68] sm:$0xff]  }
  0x1a   : > { %197 = vst.msk [vmem:[#allocation2 + $0x198] sm:$0xff] %vm172_vm0, %v4862_v0  ;;  %215 = vst.msk [vmem:[#allocation2 + $0x1a8] sm:$0xff] %vm172_vm0, %v4862_v0  ;;  %v1712_v46 = vld [vmem:[#allocation2 + $0xf0] sm:$0x80] }
  0x1b   : > { %345 = vst.msk [vmem:[#allocation2 + $0x20] sm:$0xff] %vm172_vm0, %v4835_v1  ;;  %352 = vst.msk [vmem:[#allocation2 + $0xc8] sm:$0xff] %vm172_vm0, %v4836_v6  ;;  %v740_v19 = vld [vmem:[#allocation2 + $0xd0] sm:$0x1]  ;;  %v778_v38 = vrot.slane %v776_v23, 1  ;;  %v1064_v1 = vrot.slane %v1062_v54, 7 }
  0x1c   : > { %353 = vst.msk [vmem:[#allocation2 + $0xe0] sm:$0xff] %vm172_vm0, %v4837_v7  ;;  %346 = vst.msk [vmem:[#allocation2 + $0x38] sm:$0xff] %vm172_vm0, %v4838_v9  ;;  %v742_v24 = vld [vmem:[#allocation2 + $0xe8] sm:$0x1]  ;;  %v860_v29 = vshll.u32 %v740_v19, 16  ;;  %v1148_v7 = vrot.slane %v1146_v55, 7 }
  0x1d   : > { %354 = vst.msk [vmem:[#allocation2 + $0xf8] sm:$0xff] %vm172_vm0, %v4839_v11  ;;  %347 = vst.msk [vmem:[#allocation2 + $0x50] sm:$0xff] %vm172_vm0, %v4840_v13  ;;  %v872_v35 = vshll.u32 %v742_v24, 16  ;;  %v1404_v13 = vld [vmem:[#allocation2 + $0x28] sm:$0x1] }
  0x1e   : > { %355 = vst.msk [vmem:[#allocation2 + $0x110] sm:$0xff] %vm172_vm0, %v4841_v16  ;;  %348 = vst.msk [vmem:[#allocation2 + $0x68] sm:$0xff] %vm172_vm0, %v4842_v17  ;;  %v862_v47 = vrot.slane %v860_v29, 1  ;;  %v1443_v15 = vshll.u32 %v1404_v13, 16  ;;  %v1406_v16 = vld [vmem:[#allocation2 + $0x40] sm:$0x1] }
  0x1f   : > { %356 = vst.msk [vmem:[#allocation2 + $0x128] sm:$0xff] %vm172_vm0, %v4843_v21  ;;  %349 = vst.msk [vmem:[#allocation2 + $0x80] sm:$0xff] %vm172_vm0, %v4844_v31  ;;  %v874_v52 = vrot.slane %v872_v35, 1  ;;  %v1420_v21 = vld [vmem:[#allocation2 + $0xe8] sm:$0x1]  ;;  %v1455_v23 = vshll.u32 %v1406_v16, 16 }
  0x20   : > { %v724_v3 = vld [vmem:[#allocation2 + $0x10] sm:$0x1]  ;;  %357 = vst.msk [vmem:[#allocation2 + $0x140] sm:$0xff] %vm172_vm0, %v4845_v37  ;;  %350 = vst.msk [vmem:[#allocation2 + $0x98] sm:$0xff] %vm172_vm0, %v4846_v41  ;;  %v1445_v24 = vrot.slane %v1443_v15, 1 }
  0x21   : > { %v764_v8 = vshll.u32 %v724_v3, 16  ;;  %358 = vst.msk [vmem:[#allocation2 + $0x158] sm:$0xff] %vm172_vm0, %v4847_v20  ;;  %v1422_v29 = vld [vmem:[#allocation2 + $0x100] sm:$0x1]  ;;  %v4848_v37 = vld [vmem:[%s4953_s17 + $0x30] sm:$0xff]   ;;  %v409_v20 = vrot.slane %v757_v4, 7 }
  0x22   : > { %v627_v22 = vld [vmem:[#allocation2 + $0x20] sm:$0xff]  ;;  %v4986_v27 = vld [vmem:[#allocation2 + $0xc8] sm:$0xff]  ;;  %v1551_v40 = vshll.u32 %v1422_v29, 16  ;;  %351 = vst.msk [vmem:[#allocation2 + $0xb0] sm:$0xff] %vm172_vm0, %v4848_v37  ;;  %v371_v15 = vld [vmem:[#allocation2 + $0x18] sm:$0x80] }
  0x23   : > { %v766_v12 = vrot.slane %v764_v8, 1  ;;  %660 = vrot.lane.b32.xlu1 %v627_v22, %s4863_s18  ;;  %v769_v25 = vshrl.u32 %v627_v22, 16  ;;  %v771_v26 = vshll.u32 %v627_v22, 16  ;;  %v635_v28 = vld [vmem:[#allocation2 + $0xe0] sm:$0xff]  ;;  %v853_v33 = vshrl.u32 %v4986_v27, 16  ;;  %v4991_v36 = vld [vmem:[#allocation2 + $0x38] sm:$0xff] }
  0x24   : > { %v855_v34 = vshll.u32 %v4986_v27, 16  ;;  %v867_v39 = vshll.u32 %v635_v28, 16  ;;  %v1066_v45 = vshrl.u32 %v4991_v36, 16  ;;  %v865_v48 = vshrl.u32 %v635_v28, 16  ;;  %v5008_v53 = vld [vmem:[#allocation2 + $0xf8] sm:$0xff]  ;;  %v5043_v30 = vld [vmem:[#allocation2 + $0x50] sm:$0xff] }
  0x25   : > { %v767_v18 = vsel %vm755_vm1, %v762_v14, %v766_v12  ;;  %v773_v32 = vrot.slane %v771_v26, 1  ;;  %v1056_v44 = vrot.slane %v769_v25, 7  ;;  %v1069_v59 = vshll.u32 %v4991_v36, 16  ;;  %v1698_v41 = vld [vmem:[#allocation2 + $0x48] sm:$0x80]  ;;  %v4850_v4 = vld [vmem:[%s5924_s1] sm:$0xff]  }
  0x26   : > { %948 = vrot.lane.b32.xlu0 %v767_v18, %s4864_s19  ;;  %v857_v43 = vrot.slane %v855_v34, 1  ;;  %v869_v49 = vrot.slane %v867_v39, 1  ;;  %v1068_v58 = vrot.slane %v1066_v45, 7  ;;  %v1152_v63 = vrot.slane %v865_v48, 7  ;;  %v369_v13 = vld [vmem:[#allocation2] sm:$0x80]  ;;  %4776 = vmatprep.subr.bf16.mxu0 %v4850_v4 }
  0x27   : > { %676 = vrot.lane.b32.xlu1 %v635_v28, %s4863_s18  ;;  %v4999_v42 = vor.u32 %v773_v32, %v769_v25  ;;  %v5014_v57 = vor.u32 %v1056_v44, %v771_v26  ;;  %v1162_v0 = vshrl.u32 %v5008_v53, 16  ;;  %v1158_v8 = vshrl.u32 %v1035_v60, 16  ;;  %v1696_v25 = vld [vmem:[#allocation2 + $0x30] sm:$0x80]  ;;  %4777 = vmatpush3.bf16.msra.mxu0 %v4850_v4 }
  0x28   : > { %v858_v50 = vor.u32 %v857_v43, %v853_v33  ;;  %v5018_v62 = vor.u32 %v869_v49, %v865_v48  ;;  %v5025_v6 = vor.u32 %v1069_v59, %v1068_v58  ;;  %v5029_v10 = vor.u32 %v1152_v63, %v867_v39  ;;  %4812 = vmatprep.subr.bf16.mxu1 %v4850_v4 }
  0x29   : > { %v779_v56 = vsel %vm755_vm1, %v4999_v42, %v778_v38  ;;  %v1060_v3 = vsel %vm401_vm2, %v1052_v51, %v5014_v57  ;;  %v1164_v11 = vrot.slane %v1162_v0, 7  ;;  %v1165_v12 = vshll.u32 %v5008_v53, 16  ;;  %4814 = vmatpush3.bf16.msra.mxu1 %v4850_v4 }
  0x2a   : > { %674 = vrot.lane.b32.xlu0 %v4986_v27, %s4863_s18  ;;  %v863_v61 = vsel %vm755_vm1, %v858_v50, %v862_v47  ;;  %v875_v9 = vsel %vm755_vm1, %v5018_v62, %v874_v52  ;;  %v1072_v14 = vsel %vm401_vm2, %v1064_v1, %v5025_v6  ;;  %v1156_v17 = vsel %vm401_vm2, %v1148_v7, %v5029_v10 }
  0x2b   : > { %1354 = vrot.lane.b32.xlu1 %v635_v28, %s4865_s20  ;;  %v1160_v18 = vrot.slane %v1158_v8, 7  ;;  %v1167_v19 = vor.u32 %v1165_v12, %v1164_v11  ;;  %v1539_v28 = vshll.u32 %v1420_v21, 16  ;;  %v1457_v32 = vrot.slane %v1455_v23, 1  ;;  %v2085_v21 = vld [vmem:[#allocation2 + $0x58] sm:$0x1] }
  0x2c   : > { %v1729_v35 = vshrl.u32 %v1696_v25, 16  ;;  %v1446_v38 = vsel %vm755_vm1, %v4999_v42, %v1445_v24  ;;  %v1548_v39 = vrot.slane %v1165_v12, 1  ;;  %v1745_v43 = vshrl.u32 %v5043_v30, 16  ;;  %v4849_v42 = vld [vmem:[%s4953_s17 + $0x70] sm:$0xff]   ;;  %v2083_v12 = vld [vmem:[#allocation2 + $0x40] sm:$0x1] }
  0x2d   : > { %v1168_v26 = vsel %vm401_vm2, %v1160_v18, %v1167_v19  ;;  %v1541_v44 = vrot.slane %v1539_v28, 1  ;;  %v1741_v49 = vshrl.u32 %v1698_v41, 16  ;;  %v1553_v51 = vrot.slane %v1551_v40, 1  ;;  %359 = vst.msk [vmem:[#allocation2 + $0x170] sm:$0xff] %vm172_vm0, %v4849_v42 }
  0x2e   : > { %1338 = vrot.lane.b32.xlu0 %v627_v22, %s4865_s20  ;;  %v1452_v22 = vrot.slane %v1069_v59, 1  ;;  %v1731_v48 = vrot.slane %v1729_v35, 7  ;;  %v5063_v50 = vor.u32 %v1548_v39, %v1162_v0  ;;  %v1747_v52 = vrot.slane %v1745_v43, 7  ;;  %v1714_v59 = vld [vmem:[#allocation2 + $0x108] sm:$0x80] }
  0x2f   : > { %964 = vrot.lane.b32.xlu1 %v863_v61, %s4864_s19  ;;  %v1748_v54 = vshll.u32 %v5043_v30, 16  ;;  %v1542_v55 = vsel %vm755_vm1, %v5018_v62, %v1541_v44  ;;  %v1743_v63 = vrot.slane %v1741_v49, 7  ;;  %v1837_v1 = vshrl.u32 %v1714_v59, 16  ;;  %v744_v59 = vld [vmem:[#allocation2 + $0x100] sm:$0x1] }
  0x30   : > { %v5047_v31 = vor.u32 %v1452_v22, %v1066_v45  ;;  %v5055_v45 = vld [vmem:[#allocation2 + $0x110] sm:$0xff]  ;;  %v1739_v60 = vsel %vm401_vm2, %v1731_v48, %v5025_v6  ;;  %v1554_v61 = vsel %vm755_vm1, %v5063_v50, %v1553_v51  ;;  %v403_v18 = vshrl.u32 %v369_v13, 16  ;;  %v1037_v13 = vld [vmem:[#allocation2 + $0x108] sm:$0x80] }
  0x31   : > { %v1841_v58 = vshrl.u32 %v5055_v45, 16  ;;  %v5078_v0 = vor.u32 %v1748_v54, %v1747_v52  ;;  %v1844_v7 = vshll.u32 %v5055_v45, 16  ;;  %v415_v23 = vshrl.u32 %v371_v15, 16  ;;  %v728_v52 = vld [vmem:[#allocation2 + $0x40] sm:$0x1] }
  0x32   : > { %950 = vrot.lane.b32.xlu0 %v779_v56, %s4864_s19  ;;  %v1458_v47 = vsel %vm755_vm1, %v5047_v31, %v1457_v32  ;;  %v1825_v56 = vshrl.u32 %v1712_v46, 16  ;;  %v405_v22 = vrot.slane %v403_v18, 7  ;;  %v412_v25 = vor.u32 %v759_v5, %v409_v20  ;;  %v4852_v20 = vld [vmem:[%s4953_s17 + $0x78] sm:$0xff]  }
  0x33   : > { %966 = vrot.lane.b32.xlu1 %v875_v9, %s4864_s19  ;;  %v1751_v6 = vsel %vm401_vm2, %v1743_v63, %v5078_v0  ;;  %v1839_v9 = vrot.slane %v1837_v1, 7  ;;  %v417_v29 = vrot.slane %v415_v23, 7  ;;  %v505_v37 = vrot.slane %v853_v33, 7  ;;  %v5145_v63 = vld [vmem:[#allocation2 + $0x68] sm:$0xff]  ;;  %v373_v23 = vld [vmem:[#allocation2 + $0x30] sm:$0x80] }
  0x34   : > { %v1827_v62 = vrot.slane %v1825_v56, 7  ;;  %v413_v35 = vsel %vm401_vm2, %v405_v22, %v412_v25  ;;  %v2134_v41 = vshll.u32 %v2085_v21, 16  ;;  %v2227_v42 = vrot.slane %v1844_v7, 1  ;;  %v730_v56 = vld [vmem:[#allocation2 + $0x58] sm:$0x1]  ;;  %360 = vst.msk [vmem:[#allocation2 + $0x188] sm:$0xff] %vm172_vm0, %v4852_v20 }
  0x35   : > { %610 = vst.msk [vmem:[#allocation3] sm:$0xff] %vm172_vm0, %v413_v35  ;;  %v425_v2 = vsel %vm401_vm2, %v417_v29, %v5014_v57  ;;  %v508_v33 = vor.u32 %v855_v34, %v505_v37  ;;  %v2101_v57 = vld [vmem:[#allocation2 + $0x118] sm:$0x1]  ;;  %v884_v1 = vshll.u32 %v744_v59, 16  ;;  %v1093_v18 = vshll.u32 %v5145_v63, 16 }
  0x36   : > { %1241 = vrot.lane.b32.xlu0 %v1060_v3, %s4866_s21  ;;  %v1843_v3 = vrot.slane %v1841_v58, 7  ;;  %v1835_v8 = vsel %vm401_vm2, %v1827_v62, %v1167_v19  ;;  %v385_v19 = vld [vmem:[#allocation2 + $0xc0] sm:$0x80]  ;;  %611 = vst.msk [vmem:[#allocation3 + $0x8] sm:$0xff] %vm172_vm0, %v425_v2  ;;  %v2136_v34 = vrot.slane %v2134_v41, 1  ;;  %v2230_v51 = vshll.u32 %v2101_v57, 16 }
  0x37   : > { %1257 = vrot.lane.b32.xlu1 %v1156_v17, %s4866_s21  ;;  %v2099_v17 = vld [vmem:[#allocation2 + $0x100] sm:$0x1]  ;;  %v499_v32 = vshrl.u32 %v385_v19, 16  ;;  %v1170_v19 = vshrl.u32 %v1037_v13, 16  ;;  %v1039_v21 = vld [vmem:[#allocation2 + $0x120] sm:$0x80] }
  0x38   : > { %v5088_v11 = vor.u32 %v1844_v7, %v1843_v3  ;;  %v2218_v28 = vshll.u32 %v2099_v17, 16  ;;  %v1023_v7 = vld [vmem:[#allocation2 + $0x60] sm:$0x80]  ;;  %v1182_v4 = vshrl.u32 %v1039_v21, 16  ;;  %v427_v37 = vshrl.u32 %v373_v23, 16  ;;  %v376_v57 = vld [vmem:[#allocation2 + $0x50] sm:$0xff] }
  0x39   : > { %v501_v5 = vrot.slane %v499_v32, 7  ;;  %v443_v59 = vshrl.u32 %v376_v57, 16  ;;  %v4871_v13 = vmov 65535   ;;  %v1476_v20 = vrot.slane %v1093_v18, 1 }
  0x3a   : > { %1243 = vrot.lane.b32.xlu0 %v1072_v14, %s4866_s21  ;;  %v2122_v14 = vshll.u32 %v2083_v12, 16  ;;  %v1847_v16 = vsel %vm401_vm2, %v1839_v9, %v5088_v11  ;;  %v2220_v44 = vrot.slane %v2218_v28, 1  ;;  %v886_v9 = vrot.slane %v884_v1, 1 }
  0x3b   : > { %1259 = vrot.lane.b32.xlu1 %v1168_v26, %s4866_s21  ;;  %v387_v26 = vld [vmem:[#allocation2 + $0xd8] sm:$0x80]  ;;  %v429_v41 = vrot.slane %v427_v37, 7  ;;  %v5212_v37 = vld [vmem:[#allocation2 + $0x80] sm:$0xff] }
  0x3c   : > { %v2124_v24 = vrot.slane %v2122_v14, 1  ;;  %v511_v39 = vshrl.u32 %v387_v26, 16  ;;  %v2221_v49 = vsel %vm755_vm1, %v5063_v50, %v2220_v44  ;;  %v5155_v14 = vld [vmem:[#allocation2 + $0x128] sm:$0xff]  ;;  %v374_v26 = vld [vmem:[#allocation2 + $0x38] sm:$0xff] }
  0x3d   : > { %v1186_v22 = vshrl.u32 %v5155_v14, 16  ;;  %v1189_v35 = vshll.u32 %v5155_v14, 16 }
  0x3e   : > { %1340 = vrot.lane.b32.xlu0 %v4991_v36, %s4865_s20  ;;  %v2125_v40 = vsel %vm755_vm1, %v5047_v31, %v2124_v24  ;;  %v513_v46 = vrot.slane %v511_v39, 7  ;;  %v887_v24 = vsel %vm755_vm1, %v5063_v50, %v886_v9  ;;  %v1172_v50 = vrot.slane %v1170_v19, 7  ;;  %v390_v39 = vld [vmem:[#allocation2 + $0xf8] sm:$0xff] }
  0x3f   : > { %1356 = vrot.lane.b32.xlu1 %v5008_v53, %s4865_s20  ;;  %v1188_v2 = vrot.slane %v1186_v22, 7 }
  0x40   : > { %v521_v48 = vsel %vm401_vm2, %v513_v46, %v5029_v10  ;;  %v5140_v10 = vor.u32 %v2227_v42, %v1841_v58  ;;  %v746_v58 = vld [vmem:[#allocation2 + $0x118] sm:$0x1]  ;;  %v375_v46 = vld [vmem:[#allocation2 + $0x48] sm:$0x80]  ;;  %v1180_v42 = vsel %vm401_vm2, %v1172_v50, %v5088_v11 }
  0x41   : > { %619 = vst.msk [vmem:[#allocation3 + $0x48] sm:$0xff] %vm172_vm0, %v521_v48  ;;  %v896_v12 = vshll.u32 %v746_v58, 16  ;;  %v1408_v48 = vld [vmem:[#allocation2 + $0x58] sm:$0x1]  ;;  %v4851_v58 = vld [vmem:[%s5924_s1 + $0x8] sm:$0x3f]  }
  0x42   : > { %1627 = vrot.lane.b32.xlu0 %v1446_v38, %s4867_s22  ;;  %v2131_v38 = vrot.slane %v1748_v54, 1  ;;  %v788_v54 = vshll.u32 %v728_v52, 16 }
  0x43   : > { %1643 = vrot.lane.b32.xlu1 %v1542_v55, %s4867_s22  ;;  %v2232_v55 = vrot.slane %v2230_v51, 1  ;;  %v898_v25 = vrot.slane %v896_v12, 1  ;;  %v5191_v51 = vor.u32 %v1189_v35, %v1188_v2 }
  0x44   : > { %v5126_v27 = vor.u32 %v2131_v38, %v1745_v43  ;;  %v389_v38 = vld [vmem:[#allocation2 + $0xf0] sm:$0x80] }
  0x45   : > { %v2233_v62 = vsel %vm755_vm1, %v5140_v10, %v2232_v55  ;;  %v523_v44 = vshrl.u32 %v389_v38, 16  ;;  %v1426_v38 = vld [vmem:[#allocation2 + $0x130] sm:$0x1] }
  0x46   : > { %1629 = vrot.lane.b32.xlu0 %v1458_v47, %s4867_s22  ;;  %v509_v47 = vsel %vm401_vm2, %v501_v5, %v508_v33  ;;  %v2137_v43 = vsel %vm755_vm1, %v5126_v27, %v2136_v34  ;;  %v431_v5 = vshrl.u32 %v374_v26, 16  ;;  %v1184_v34 = vrot.slane %v1182_v4, 7  ;;  %v1700_v4 = vld [vmem:[#allocation2 + $0x60] sm:$0x80] }
  0x47   : > { %1645 = vrot.lane.b32.xlu1 %v1554_v61, %s4867_s22  ;;  %618 = vst.msk [vmem:[#allocation3 + $0x40] sm:$0xff] %vm172_vm0, %v509_v47  ;;  %v800_v61 = vshll.u32 %v730_v56, 16  ;;  %v439_v56 = vshrl.u32 %v375_v46, 16  ;;  %v1575_v46 = vshll.u32 %v1426_v38, 16 }
  0x48   : > { %v433_v33 = vrot.slane %v431_v5, 7 }
  0x49   : > { %v441_v1 = vrot.slane %v439_v56, 7 }
  0x4a   : > { %1920 = vrot.lane.b32.xlu0 %v1739_v60, %s4868_s23  ;;  %v1021_v60 = vld [vmem:[#allocation2 + $0x48] sm:$0x80] }
  0x4b   : > { %1936 = vrot.lane.b32.xlu1 %v1835_v8, %s4868_s23  ;;  %v1074_v3 = vshrl.u32 %v1021_v60, 16  ;;  %v802_v8 = vrot.slane %v800_v61, 1  ;;  %v1467_v60 = vshll.u32 %v1408_v48, 16  ;;  %v446_v61 = vshll.u32 %v376_v57, 16 }
  0x4c   : > { %v1772_v48 = vshll.u32 %v5212_v37, 16 }
  0x4d   : > { %v1076_v15 = vrot.slane %v1074_v3, 7  ;;  %v445_v3 = vrot.slane %v443_v59, 7 }
  0x4e   : > { %1922 = vrot.lane.b32.xlu0 %v1751_v6, %s4868_s23  ;;  %v1090_v6 = vshrl.u32 %v5145_v63, 16 }
  0x4f   : > { %1938 = vrot.lane.b32.xlu1 %v1847_v16, %s4868_s23  ;;  %v1086_v16 = vshrl.u32 %v1023_v7, 16  ;;  %v1084_v28 = vsel %vm401_vm2, %v1076_v15, %v5078_v0  ;;  %v434_v0 = vshll.u32 %v374_v26, 16  ;;  %v392_v7 = vld [vmem:[#allocation2 + $0x110] sm:$0xff]  ;;  %v448_v12 = vor.u32 %v446_v61, %v445_v3 }
  0x50   : > { %v1092_v17 = vrot.slane %v1090_v6, 7  ;;  %v2455_v15 = vsel %vm2453_vm3, 4294967295, %v4871_v13  ;;  %v539_v21 = vshrl.u32 %v392_v7, 16  ;;  %v542_v26 = vshll.u32 %v392_v7, 16  ;;  %v378_v7 = vld [vmem:[#allocation2 + $0x68] sm:$0xff] }
  0x51   : > { %v1088_v29 = vrot.slane %v1086_v16, 7  ;;  %v436_v52 = vor.u32 %v434_v0, %v433_v33  ;;  %v2456_v19 = vsel %vm2454_vm4, %v2455_v15, 0  ;;  %v5220_v2 = vor.u32 %v1476_v20, %v1090_v6  ;;  %v5229_v6 = vld [vmem:[#allocation2 + $0x140] sm:$0xff]  ;;  %v2103_v15 = vld [vmem:[#allocation2 + $0x130] sm:$0x1]  ;;  %v394_v20 = vld [vmem:[#allocation2 + $0x128] sm:$0xff] }
  0x52   : > { %2017 = vrot.lane.b32.xlu0 %v4991_v36, %s4869_s24  ;;  %v5175_v32 = vor.u32 %v1093_v18, %v1092_v17  ;;  %v1469_v17 = vrot.slane %v1467_v60, 1  ;;  %v1753_v0 = vshrl.u32 %v1700_v4, 16  ;;  %v1868_v61 = vshll.u32 %v5229_v6, 16 }
  0x53   : > { %2033 = vrot.lane.b32.xlu1 %v5008_v53, %s4869_s24  ;;  %v2155_v4 = vrot.slane %v1772_v48, 1  ;;  %vm4269_vm3 = vcmask 1046534   ;;  %vm4272_vm4 = vcmask 1047559  }
  0x54   : > { %v1096_v47 = vsel %vm401_vm2, %v1088_v29, %v5175_v32  ;;  %v541_v29 = vrot.slane %v539_v21, 7  ;;  %v1470_v50 = vsel %vm755_vm1, %v5126_v27, %v1469_v17  ;;  %v458_v17 = vshll.u32 %v378_v7, 16 }
  0x56   : > { %2019 = vrot.lane.b32.xlu0 %v5043_v30, %s4869_s24 }
  0x57   : > { %2035 = vrot.lane.b32.xlu1 %v5055_v45, %s4869_s24 }
  0x5a   : > { %2306 = vrot.lane.b32.xlu0 %v2125_v40, %s4870_s27  ;;  %v899_v40 = vsel %vm755_vm1, %v5140_v10, %v898_v25  ;;  %v2458_v25 = vand.u32 %v4851_v58, %v2456_v19 }
  0x5b   : > { %2322 = vrot.lane.b32.xlu1 %v2221_v49, %s4870_s27  ;;  %v527_v49 = vshrl.u32 %v390_v39, 16 }
  0x5c   : > { %4778 = vmatprep.subr.bf16.mxu0 %v2458_v25  ;;  %4813 = vmatprep.subr.bf16.mxu1 %v2458_v25 }
  0x5d   : > { %v529_v55 = vrot.slane %v527_v49, 7  ;;  %4779 = vmatpush3.bf16.msra.mxu0 %v2458_v25  ;;  %4815 = vmatpush3.bf16.msra.mxu1 %v2458_v25  ;;  %v551_v25 = vshrl.u32 %v394_v20, 16 }
  0x5e   : > { %662 = vrot.lane.b32.xlu0 %v4991_v36, %s4863_s18  ;;  %v790_v36 = vrot.slane %v788_v54, 1  ;;  %v525_v54 = vrot.slane %v523_v44, 7 }
  0x5f   : > { %678 = vrot.lane.b32.xlu1 %v5008_v53, %s4863_s18 }
  0x60   : > { %v791_v53 = vsel %vm755_vm1, %v5047_v31, %v790_v36  ;;  %v803_v31 = vsel %vm755_vm1, %v5126_v27, %v802_v8  ;;  %v437_v36 = vsel %vm401_vm2, %v429_v41, %v436_v52  ;;  %v1410_v8 = vld [vmem:[#allocation2 + $0x70] sm:$0x1]  ;;  %v1769_v41 = vshrl.u32 %v5212_v37, 16  ;;  %v1716_v27 = vld [vmem:[#allocation2 + $0x120] sm:$0x80] }
  0x61   : > { %612 = vst.msk [vmem:[#allocation3 + $0x10] sm:$0xff] %vm172_vm0, %v437_v36  ;;  %v1479_v23 = vshll.u32 %v1410_v8, 16  ;;  %v1849_v52 = vshrl.u32 %v1716_v27, 16 }
  0x62   : > { %2308 = vrot.lane.b32.xlu0 %v2137_v43, %s4870_s27  ;;  %v530_v43 = vshll.u32 %v390_v39, 16  ;;  %v1572_v39 = vrot.slane %v1189_v35, 1  ;;  %v1755_v35 = vrot.slane %v1753_v0, 7 }
  0x63   : > { %2324 = vrot.lane.b32.xlu1 %v2233_v62, %s4870_s27  ;;  %v391_v62 = vld [vmem:[#allocation2 + $0x108] sm:$0x80]  ;;  %v1481_v5 = vrot.slane %v1479_v23, 1  ;;  %v2242_v23 = vshll.u32 %v2103_v15, 16 }
  0x64   : > { %v532_v11 = vor.u32 %v530_v43, %v529_v55  ;;  %v535_v16 = vshrl.u32 %v391_v62, 16  ;;  %v1718_v43 = vld [vmem:[#allocation2 + $0x138] sm:$0x80]  ;;  %v2087_v62 = vld [vmem:[#allocation2 + $0x70] sm:$0x1] }
  0x65   : > { %v1861_v59 = vshrl.u32 %v1718_v43, 16  ;;  %v2146_v58 = vshll.u32 %v2087_v62, 16  ;;  %v2244_v27 = vrot.slane %v2242_v23, 1 }
  0x66   : > { %664 = vrot.lane.b32.xlu0 %v5043_v30, %s4863_s18  ;;  %v533_v9 = vsel %vm401_vm2, %v525_v54, %v532_v11  ;;  %v1865_v54 = vshrl.u32 %v5229_v6, 16 }
  0x67   : > { %680 = vrot.lane.b32.xlu1 %v5055_v45, %s4863_s18  ;;  %620 = vst.msk [vmem:[#allocation3 + $0x50] sm:$0xff] %vm172_vm0, %v533_v9 }
  0x68   : > { %v1867_v36 = vrot.slane %v1865_v54, 7 }
  0x6a   : > { %952 = vrot.lane.b32.xlu0 %v791_v53, %s4864_s19  ;;  %v1192_v53 = vsel %vm401_vm2, %v1184_v34, %v5191_v51  ;;  %v1771_v34 = vrot.slane %v1769_v41, 7  ;;  %v5265_v3 = vor.u32 %v1868_v61, %v1867_v36 }
  0x6b   : > { %968 = vrot.lane.b32.xlu1 %v887_v24, %s4864_s19  ;;  %v449_v24 = vsel %vm401_vm2, %v441_v1, %v448_v12  ;;  %v1863_v1 = vrot.slane %v1861_v59, 7  ;;  %v393_v12 = vld [vmem:[#allocation2 + $0x120] sm:$0x80]  ;;  %v5291_v59 = vor.u32 %v2155_v4, %v1769_v41 }
  0x6c   : > { %613 = vst.msk [vmem:[#allocation3 + $0x18] sm:$0xff] %vm172_vm0, %v449_v24  ;;  %v5250_v56 = vor.u32 %v1772_v48, %v1771_v34  ;;  %v547_v21 = vshrl.u32 %v393_v12, 16  ;;  %v2089_v24 = vld [vmem:[#allocation2 + $0x88] sm:$0x1] }
  0x6d   : > { %v1871_v8 = vsel %vm401_vm2, %v1863_v1, %v5265_v3  ;;  %v2158_v0 = vshll.u32 %v2089_v24, 16  ;;  %v2105_v48 = vld [vmem:[#allocation2 + $0x148] sm:$0x1]  ;;  %v5318_v24 = vld [vmem:[#allocation2 + $0x98] sm:$0xff] }
  0x6e   : > { %954 = vrot.lane.b32.xlu0 %v803_v31, %s4864_s19  ;;  %v1424_v31 = vld [vmem:[#allocation2 + $0x118] sm:$0x1]  ;;  %v549_v38 = vrot.slane %v547_v21, 7  ;;  %v2254_v1 = vshll.u32 %v2105_v48, 16  ;;  %v1114_v4 = vshrl.u32 %v5318_v24, 16 }
  0x6f   : > { %970 = vrot.lane.b32.xlu1 %v899_v40, %s4864_s19  ;;  %v1563_v18 = vshll.u32 %v1424_v31, 16  ;;  %v1702_v40 = vld [vmem:[#allocation2 + $0x78] sm:$0x80]  ;;  %v1043_v48 = vld [vmem:[#allocation2 + $0x150] sm:$0x80] }
  0x70   : > { %v1765_v57 = vshrl.u32 %v1702_v40, 16  ;;  %v379_v40 = vld [vmem:[#allocation2 + $0x78] sm:$0x80]  ;;  %v2256_v15 = vrot.slane %v2254_v1, 1 }
  0x71   : > { %v1565_v44 = vrot.slane %v1563_v18, 1  ;;  %v380_v18 = vld [vmem:[#allocation2 + $0x80] sm:$0xff] }
  0x72   : > { %1245 = vrot.lane.b32.xlu0 %v1084_v28, %s4866_s21  ;;  %v537_v28 = vrot.slane %v535_v16, 7  ;;  %v1767_v55 = vrot.slane %v1765_v57, 7  ;;  %v455_v16 = vshrl.u32 %v378_v7, 16  ;;  %v463_v57 = vshrl.u32 %v379_v40, 16 }
  0x73   : > { %1261 = vrot.lane.b32.xlu1 %v1180_v42, %s4866_s21  ;;  %v1566_v49 = vsel %vm755_vm1, %v5140_v10, %v1565_v44  ;;  %v1577_v42 = vrot.slane %v1575_v46, 1  ;;  %v1851_v10 = vrot.slane %v1849_v52, 7  ;;  %v395_v44 = vld [vmem:[#allocation2 + $0x138] sm:$0x80] }
  0x74   : > { %v457_v19 = vrot.slane %v455_v16, 7  ;;  %v465_v43 = vrot.slane %v463_v57, 7 }
  0x75   : > { %v1859_v11 = vsel %vm401_vm2, %v1851_v10, %v5191_v51  ;;  %v2148_v51 = vrot.slane %v2146_v58, 1  ;;  %v732_v58 = vld [vmem:[#allocation2 + $0x70] sm:$0x1] }
  0x76   : > { %1247 = vrot.lane.b32.xlu0 %v1096_v47, %s4866_s21  ;;  %v5238_v47 = vor.u32 %v1572_v39, %v1186_v22  ;;  %v1763_v22 = vsel %vm401_vm2, %v1755_v35, %v5175_v32  ;;  %v1775_v32 = vsel %vm401_vm2, %v1767_v55, %v5250_v56 }
  0x77   : > { %1263 = vrot.lane.b32.xlu1 %v1192_v53, %s4866_s21  ;;  %v377_v53 = vld [vmem:[#allocation2 + $0x60] sm:$0x80] }
  0x78   : > { %v1578_v60 = vsel %vm755_vm1, %v5238_v47, %v1577_v42  ;;  %v451_v9 = vshrl.u32 %v377_v53, 16 }
  0x7a   : > { %1342 = vrot.lane.b32.xlu0 %v5043_v30, %s4865_s20  ;;  %v544_v30 = vor.u32 %v542_v26, %v541_v29  ;;  %v453_v31 = vrot.slane %v451_v9, 7  ;;  %v2149_v26 = vsel %vm755_vm1, %v5220_v2, %v2148_v51  ;;  %v554_v29 = vshll.u32 %v394_v20, 16  ;;  %v734_v9 = vld [vmem:[#allocation2 + $0x88] sm:$0x1] }
  0x7b   : > { %1358 = vrot.lane.b32.xlu1 %v5055_v45, %s4865_s20  ;;  %v1482_v45 = vsel %vm755_vm1, %v5220_v2, %v1481_v5  ;;  %v396_v5 = vld [vmem:[#allocation2 + $0x140] sm:$0xff] }
  0x7c   : > { %v545_v33 = vsel %vm401_vm2, %v537_v28, %v544_v30  ;;  %v460_v28 = vor.u32 %v458_v17, %v457_v19  ;;  %v553_v30 = vrot.slane %v551_v25, 7  ;;  %v563_v42 = vshrl.u32 %v396_v5, 16  ;;  %v748_v17 = vld [vmem:[#allocation2 + $0x130] sm:$0x1] }
  0x7d   : > { %621 = vst.msk [vmem:[#allocation3 + $0x58] sm:$0xff] %vm172_vm0, %v545_v33  ;;  %v470_v33 = vshll.u32 %v380_v18, 16  ;;  %v566_v55 = vshll.u32 %v396_v5, 16  ;;  %v908_v23 = vshll.u32 %v748_v17, 16  ;;  %v1041_v5 = vld [vmem:[#allocation2 + $0x138] sm:$0x80] }
  0x7e   : > { %1344 = vrot.lane.b32.xlu0 %v5145_v63, %s4865_s20  ;;  %v461_v39 = vsel %vm401_vm2, %v453_v31, %v460_v28  ;;  %v565_v36 = vrot.slane %v563_v42, 7  ;;  %v1025_v31 = vld [vmem:[#allocation2 + $0x78] sm:$0x80]  ;;  %v1194_v57 = vshrl.u32 %v1041_v5, 16 }
  0x7f   : > { %1360 = vrot.lane.b32.xlu1 %v5155_v14, %s4865_s20  ;;  %614 = vst.msk [vmem:[#allocation3 + $0x20] sm:$0xff] %vm172_vm0, %v461_v39 }
  0x80   : > { %v659_v13 = vpop.permute.xlu0 %658  ;;  %v568_v53 = vor.u32 %v566_v55, %v565_v36  ;;  %v1206_v55 = vshrl.u32 %v1043_v48, 16 }
  0x81   : > { %707 = vst.msk [vmem:[#allocation3] sm:$0xff] %vm706_vm5, %v659_v13 }
  0x82   : > { %1631 = vrot.lane.b32.xlu0 %v1470_v50, %s4867_s22  ;;  %v467_v50 = vshrl.u32 %v380_v18, 16  ;;  %v1027_v18 = vld [vmem:[#allocation2 + $0x90] sm:$0x80] }
  0x83   : > { %1647 = vrot.lane.b32.xlu1 %v1566_v49, %s4867_s22  ;;  %v559_v49 = vshrl.u32 %v395_v44, 16  ;;  %v1110_v40 = vshrl.u32 %v1027_v18, 16  ;;  %v1116_v44 = vrot.slane %v1114_v4, 7 }
  0x84   : > { %v469_v35 = vrot.slane %v467_v50, 7 }
  0x85   : > { %v561_v10 = vrot.slane %v559_v49, 7  ;;  %v1112_v42 = vrot.slane %v1110_v40, 7 }
  0x86   : > { %1633 = vrot.lane.b32.xlu0 %v1482_v45, %s4867_s22  ;;  %v556_v45 = vor.u32 %v554_v29, %v553_v30  ;;  %v910_v30 = vrot.slane %v908_v23, 1 }
  0x87   : > { %1649 = vrot.lane.b32.xlu1 %v1578_v60, %s4867_s22  ;;  %v2160_v60 = vrot.slane %v2158_v0, 1  ;;  %v569_v12 = vsel %vm401_vm2, %v561_v10, %v568_v53  ;;  %v5329_v0 = vld [vmem:[#allocation2 + $0x158] sm:$0xff] }
  0x88   : > { %v557_v52 = vsel %vm401_vm2, %v549_v38, %v556_v45  ;;  %623 = vst.msk [vmem:[#allocation3 + $0x68] sm:$0xff] %vm172_vm0, %v569_v12  ;;  %v911_v45 = vsel %vm755_vm1, %v5238_v47, %v910_v30  ;;  %v1213_v10 = vshll.u32 %v5329_v0, 16  ;;  %v1720_v30 = vld [vmem:[#allocation2 + $0x150] sm:$0x80] }
  0x89   : > { %622 = vst.msk [vmem:[#allocation3 + $0x60] sm:$0xff] %vm172_vm0, %v557_v52 }
  0x8a   : > { %1924 = vrot.lane.b32.xlu0 %v1763_v22, %s4868_s23  ;;  %v472_v22 = vor.u32 %v470_v33, %v469_v35  ;;  %v1210_v35 = vshrl.u32 %v5329_v0, 16 }
  0x8b   : > { %1940 = vrot.lane.b32.xlu1 %v1859_v11, %s4868_s23  ;;  %v2251_v11 = vrot.slane %v1868_v61, 1  ;;  %v2161_v61 = vsel %vm755_vm1, %v5291_v59, %v2160_v60 }
  0x8c   : > { %v473_v7 = vsel %vm401_vm2, %v465_v43, %v472_v22  ;;  %v1196_v22 = vrot.slane %v1194_v57, 7  ;;  %v1212_v60 = vrot.slane %v1210_v35, 7 }
  0x8d   : > { %615 = vst.msk [vmem:[#allocation3 + $0x28] sm:$0xff] %vm172_vm0, %v473_v7  ;;  %v5310_v51 = vor.u32 %v2251_v11, %v1865_v54  ;;  %v750_v54 = vld [vmem:[#allocation2 + $0x148] sm:$0x1]  ;;  %v1208_v11 = vrot.slane %v1206_v55, 7  ;;  %v2091_v55 = vld [vmem:[#allocation2 + $0xa0] sm:$0x1] }
  0x8e   : > { %1926 = vrot.lane.b32.xlu0 %v1775_v32, %s4868_s23  ;;  %v2245_v32 = vsel %vm755_vm1, %v5238_v47, %v2244_v27  ;;  %v920_v29 = vshll.u32 %v750_v54, 16  ;;  %v5366_v1 = vor.u32 %v1213_v10, %v1212_v60 }
  0x8f   : > { %1942 = vrot.lane.b32.xlu1 %v1871_v8, %s4868_s23  ;;  %v812_v8 = vshll.u32 %v732_v58, 16  ;;  %v2257_v21 = vsel %vm755_vm1, %v5310_v51, %v2256_v15  ;;  %v1412_v58 = vld [vmem:[#allocation2 + $0x88] sm:$0x1] }
  0x90   : > { %v922_v33 = vrot.slane %v920_v29, 1  ;;  %v1596_v29 = vrot.slane %v1213_v10, 1 }
  0x91   : > { %v814_v20 = vrot.slane %v812_v8, 1  ;;  %v1414_v8 = vld [vmem:[#allocation2 + $0xa0] sm:$0x1] }
  0x92   : > { %2021 = vrot.lane.b32.xlu0 %v5145_v63, %s4869_s24  ;;  %v923_v47 = vsel %vm755_vm1, %v5310_v51, %v922_v33  ;;  %v1503_v15 = vshll.u32 %v1414_v8, 16 }
  0x93   : > { %2037 = vrot.lane.b32.xlu1 %v5155_v14, %s4869_s24  ;;  %v815_v28 = vsel %vm755_vm1, %v5220_v2, %v814_v20  ;;  %v5379_v20 = vld [vmem:[#allocation2 + $0xb0] sm:$0xff] }
  0x94   : > { %v1505_v54 = vrot.slane %v1503_v15, 1 }
  0x95   : > { %v661_v34 = vpop.permute.xlu1 %660 }
  0x96   : > { %2023 = vrot.lane.b32.xlu0 %v5212_v37, %s4869_s24  ;;  %708 = vst.msk [vmem:[#allocation3 + $0x8] sm:$0xff] %vm706_vm5, %v661_v34 }
  0x97   : > { %2039 = vrot.lane.b32.xlu1 %v5229_v6, %s4869_s24 }
  0x98   : > { %v949_v46 = vpop.permute.xlu0 %948 }
  0x99   : > { %997 = vst.msk [vmem:[#allocation3] sm:$0xff] %vm996_vm6, %v949_v46  ;;  %v677_v41 = vpop.permute.xlu1 %676  ;;  %v1117_v46 = vshll.u32 %v5318_v24, 16 }
  0x9a   : > { %2310 = vrot.lane.b32.xlu0 %v2149_v26, %s4870_s27  ;;  %716 = vst.msk [vmem:[#allocation3 + $0x48] sm:$0xff] %vm706_vm5, %v677_v41  ;;  %v1098_v26 = vshrl.u32 %v1025_v31, 16  ;;  %v1491_v41 = vshll.u32 %v1412_v58, 16  ;;  %v382_v58 = vld [vmem:[#allocation2 + $0x98] sm:$0xff] }
  0x9b   : > { %2326 = vrot.lane.b32.xlu1 %v2245_v32, %s4870_s27  ;;  %v5353_v52 = vor.u32 %v1117_v46, %v1116_v44  ;;  %v1204_v32 = vsel %vm401_vm2, %v1196_v22, %v5265_v3  ;;  %v5411_v44 = vor.u32 %v1596_v29, %v1210_v35 }
  0x9c   : > { %v675_v62 = vpop.permute.xlu0 %674  ;;  %v1100_v2 = vrot.slane %v1098_v26, 7  ;;  %v1493_v12 = vrot.slane %v1491_v41, 1  ;;  %v381_v41 = vld [vmem:[#allocation2 + $0x90] sm:$0x80] }
  0x9d   : > { %715 = vst.msk [vmem:[#allocation3 + $0x40] sm:$0xff] %vm706_vm5, %v675_v62  ;;  %v1355_v16 = vpop.permute.xlu1 %1354 }
  0x9e   : > { %666 = vrot.lane.b32.xlu0 %v5145_v63, %s4863_s18  ;;  %v824_v63 = vshll.u32 %v734_v9, 16  ;;  %v1108_v49 = vsel %vm401_vm2, %v1100_v2, %v5250_v56  ;;  %v1120_v56 = vsel %vm401_vm2, %v1112_v42, %v5353_v52  ;;  %v1428_v9 = vld [vmem:[#allocation2 + $0x148] sm:$0x1] }
  0x9f   : > { %682 = vrot.lane.b32.xlu1 %v5155_v14, %s4863_s18 }
  0xa0   : > { %v1339_v13 = vpop.permute.xlu0 %1338  ;;  %v826_v14 = vrot.slane %v824_v63, 1  ;;  %v1587_v63 = vshll.u32 %v1428_v9, 16  ;;  %v397_v9 = vld [vmem:[#allocation2 + $0x150] sm:$0x80] }
  0xa1   : > { %v965_v25 = vpop.permute.xlu1 %964 }
  0xa2   : > { %2312 = vrot.lane.b32.xlu0 %v2161_v61, %s4870_s27  ;;  %1005 = vst.msk [vmem:[#allocation3 + $0x40] sm:$0xff] %vm996_vm6, %v965_v25  ;;  %v827_v39 = vsel %vm755_vm1, %v5291_v59, %v826_v14  ;;  %v1216_v61 = vsel %vm401_vm2, %v1208_v11, %v5366_v1  ;;  %v1706_v25 = vld [vmem:[#allocation2 + $0xa8] sm:$0x80]  ;;  %v1793_v14 = vshrl.u32 %v5379_v20, 16  ;;  %v2170_v11 = vshll.u32 %v2091_v55, 16 }
  0xa3   : > { %2328 = vrot.lane.b32.xlu1 %v2257_v21, %s4870_s27  ;;  %v1494_v21 = vsel %vm755_vm1, %v5291_v59, %v1493_v12 }
  0xa4   : > { %v951_v19 = vpop.permute.xlu0 %950  ;;  %v1795_v5 = vrot.slane %v1793_v14, 7 }
  0xa5   : > { %998 = vst.msk [vmem:[#allocation3 + $0x8] sm:$0xff] %vm996_vm6, %v951_v19  ;;  %v967_v50 = vpop.permute.xlu1 %966  ;;  %v1430_v19 = vld [vmem:[#allocation2 + $0x160] sm:$0x1] }
  0xa6   : > { %668 = vrot.lane.b32.xlu0 %v5212_v37, %s4863_s18  ;;  %1006 = vst.msk [vmem:[#allocation3 + $0x48] sm:$0xff] %vm996_vm6, %v967_v50  ;;  %v1599_v18 = vshll.u32 %v1430_v19, 16  ;;  %v2172_v19 = vrot.slane %v2170_v11, 1 }
  0xa7   : > { %684 = vrot.lane.b32.xlu1 %v5229_v6, %s4863_s18 }
  0xa8   : > { %v1242_v38 = vpop.permute.xlu0 %1241 }
  0xa9   : > { %1290 = vst.msk [vmem:[#allocation3] sm:$0xff] %vm1289_vm7, %v1242_v38  ;;  %v1258_v34 = vpop.permute.xlu1 %1257  ;;  %v5394_v38 = vld [vmem:[#allocation2 + $0x170] sm:$0xff] }
  0xaa   : > { %956 = vrot.lane.b32.xlu0 %v815_v28, %s4864_s19  ;;  %1387 = vst.msk [vmem:[#allocation3] sm:$0xff] %vm1386_vm8, %v1339_v13  ;;  %v1500_v13 = vrot.slane %v1117_v46, 1  ;;  %v1589_v28 = vrot.slane %v1587_v63, 1  ;;  %v1889_v2 = vshrl.u32 %v5394_v38, 16  ;;  %v1601_v46 = vrot.slane %v1599_v18, 1 }
  0xab   : > { %1298 = vst.msk [vmem:[#allocation3 + $0x40] sm:$0xff] %vm1289_vm7, %v1258_v34  ;;  %972 = vrot.lane.b32.xlu1 %v911_v45, %s4864_s19  ;;  %v1722_v45 = vld [vmem:[#allocation2 + $0x168] sm:$0x80]  ;;  %v2093_v18 = vld [vmem:[#allocation2 + $0xb8] sm:$0x1] }
  0xac   : > { %v1244_v27 = vpop.permute.xlu0 %1243  ;;  %1395 = vst.msk [vmem:[#allocation3 + $0x40] sm:$0xff] %vm1386_vm8, %v1355_v16  ;;  %v1704_v16 = vld [vmem:[#allocation2 + $0x90] sm:$0x80]  ;;  %v5391_v23 = vor.u32 %v1500_v13, %v1114_v4  ;;  %v1789_v4 = vshrl.u32 %v1706_v25, 16  ;;  %v1590_v33 = vsel %vm755_vm1, %v5310_v51, %v1589_v28  ;;  %v1885_v35 = vshrl.u32 %v1722_v45, 16 }
  0xad   : > { %1291 = vst.msk [vmem:[#allocation3 + $0x8] sm:$0xff] %vm1289_vm7, %v1244_v27  ;;  %v1260_v36 = vpop.permute.xlu1 %1259  ;;  %v1873_v27 = vshrl.u32 %v1720_v30, 16  ;;  %v2107_v13 = vld [vmem:[#allocation2 + $0x160] sm:$0x1] }
  0xae   : > { %958 = vrot.lane.b32.xlu0 %v827_v39, %s4864_s19  ;;  %1299 = vst.msk [vmem:[#allocation3 + $0x48] sm:$0xff] %vm1289_vm7, %v1260_v36  ;;  %v1506_v50 = vsel %vm755_vm1, %v5391_v23, %v1505_v54  ;;  %v1796_v39 = vshll.u32 %v5379_v20, 16  ;;  %v1791_v48 = vrot.slane %v1789_v4, 7  ;;  %v1887_v10 = vrot.slane %v1885_v35, 7  ;;  %v399_v35 = vld [vmem:[#allocation2 + $0x168] sm:$0x80] }
  0xaf   : > { %974 = vrot.lane.b32.xlu1 %v923_v47, %s4864_s19  ;;  %v1892_v47 = vshll.u32 %v5394_v38, 16  ;;  %v1875_v22 = vrot.slane %v1873_v27, 7  ;;  %v2173_v4 = vsel %vm755_vm1, %v5391_v23, %v2172_v19  ;;  %v752_v19 = vld [vmem:[#allocation2 + $0x160] sm:$0x1] }
  0xb0   : > { %v1341_v43 = vpop.permute.xlu0 %1340  ;;  %v5421_v51 = vor.u32 %v1796_v39, %v1795_v5  ;;  %v400_v5 = vld [vmem:[#allocation2 + $0x170] sm:$0xff] }
  0xb1   : > { %1388 = vst.msk [vmem:[#allocation3 + $0x8] sm:$0xff] %vm1386_vm8, %v1341_v43  ;;  %v1357_v7 = vpop.permute.xlu1 %1356  ;;  %v1602_v43 = vsel %vm755_vm1, %v5411_v44, %v1601_v46  ;;  %v587_v45 = vshrl.u32 %v400_v5, 16 }
  0xb2   : > { %1249 = vrot.lane.b32.xlu0 %v1108_v49, %s4866_s21  ;;  %1396 = vst.msk [vmem:[#allocation3 + $0x48] sm:$0xff] %vm1386_vm8, %v1357_v7  ;;  %v1891_v49 = vrot.slane %v1889_v2, 7  ;;  %v1799_v60 = vsel %vm401_vm2, %v1791_v48, %v5421_v51  ;;  %v398_v7 = vld [vmem:[#allocation2 + $0x158] sm:$0xff] }
  0xb3   : > { %1265 = vrot.lane.b32.xlu1 %v1204_v32, %s4866_s21  ;;  %v575_v8 = vshrl.u32 %v398_v7, 16  ;;  %v578_v63 = vshll.u32 %v398_v7, 16  ;;  %v2275_v7 = vrot.slane %v1892_v47, 1 }
  0xb4   : > { %v1628_v62 = vpop.permute.xlu0 %1627  ;;  %v5436_v36 = vor.u32 %v1892_v47, %v1891_v49 }
  0xb5   : > { %1676 = vst.msk [vmem:[#allocation3] sm:$0xff] %vm1675_vm9, %v1628_v62  ;;  %v1644_v3 = vpop.permute.xlu1 %1643  ;;  %v1883_v62 = vsel %vm401_vm2, %v1875_v22, %v5366_v1  ;;  %v475_v1 = vshrl.u32 %v381_v41, 16  ;;  %v589_v22 = vrot.slane %v587_v45, 7 }
  0xb6   : > { %1251 = vrot.lane.b32.xlu0 %v1120_v56, %s4866_s21  ;;  %1684 = vst.msk [vmem:[#allocation3 + $0x40] sm:$0xff] %vm1675_vm9, %v1644_v3  ;;  %v1895_v3 = vsel %vm401_vm2, %v1887_v10, %v5436_v36 }
  0xb7   : > { %1267 = vrot.lane.b32.xlu1 %v1216_v61, %s4866_s21  ;;  %v482_v61 = vshll.u32 %v382_v58, 16 }
  0xb8   : > { %v1630_v53 = vpop.permute.xlu0 %1629 }
  0xb9   : > { %1677 = vst.msk [vmem:[#allocation3 + $0x8] sm:$0xff] %vm1675_vm9, %v1630_v53  ;;  %v1646_v31 = vpop.permute.xlu1 %1645  ;;  %v479_v53 = vshrl.u32 %v382_v58, 16 }
  0xba   : > { %1346 = vrot.lane.b32.xlu0 %v5212_v37, %s4865_s20  ;;  %1685 = vst.msk [vmem:[#allocation3 + $0x48] sm:$0xff] %vm1675_vm9, %v1646_v31  ;;  %v1777_v37 = vshrl.u32 %v1704_v16, 16  ;;  %v571_v16 = vshrl.u32 %v397_v9, 16 }
  0xbb   : > { %1362 = vrot.lane.b32.xlu1 %v5229_v6, %s4865_s20  ;;  %v481_v15 = vrot.slane %v479_v53, 7 }
  0xbc   : > { %v1921_v17 = vpop.permute.xlu0 %1920  ;;  %v1779_v59 = vrot.slane %v1777_v37, 7  ;;  %v477_v37 = vrot.slane %v475_v1, 7  ;;  %v573_v54 = vrot.slane %v571_v16, 7  ;;  %v5494_v16 = vor.u32 %v2275_v7, %v1889_v2 }
  0xbd   : > { %1969 = vst.msk [vmem:[#allocation3] sm:$0xff] %vm1968_vm10, %v1921_v17  ;;  %v1937_v6 = vpop.permute.xlu1 %1936  ;;  %v577_v17 = vrot.slane %v575_v8, 7 }
  0xbe   : > { %1348 = vrot.lane.b32.xlu0 %v5318_v24, %s4865_s20  ;;  %1977 = vst.msk [vmem:[#allocation3 + $0x40] sm:$0xff] %vm1968_vm10, %v1937_v6  ;;  %v1787_v34 = vsel %vm401_vm2, %v1779_v59, %v5353_v52 }
  0xbf   : > { %1364 = vrot.lane.b32.xlu1 %v5329_v0, %s4865_s20  ;;  %v580_v25 = vor.u32 %v578_v63, %v577_v17 }
  0xc0   : > { %v1923_v26 = vpop.permute.xlu0 %1922 }
  0xc1   : > { %1970 = vst.msk [vmem:[#allocation3 + $0x8] sm:$0xff] %vm1968_vm10, %v1923_v26  ;;  %v1939_v57 = vpop.permute.xlu1 %1938  ;;  %v2266_v26 = vshll.u32 %v2107_v13, 16  ;;  %v581_v30 = vsel %vm401_vm2, %v573_v54, %v580_v25  ;;  %v738_v13 = vld [vmem:[#allocation2 + $0xb8] sm:$0x1]  ;;  %v932_v25 = vshll.u32 %v752_v19, 16 }
  0xc2   : > { %1635 = vrot.lane.b32.xlu0 %v1494_v21, %s4867_s22  ;;  %1978 = vst.msk [vmem:[#allocation3 + $0x48] sm:$0xff] %vm1968_vm10, %v1939_v57  ;;  %v484_v21 = vor.u32 %v482_v61, %v481_v15 }
  0xc3   : > { %1651 = vrot.lane.b32.xlu1 %v1590_v33, %s4867_s22  ;;  %624 = vst.msk [vmem:[#allocation3 + $0x70] sm:$0xff] %vm172_vm0, %v581_v30  ;;  %v383_v33 = vld [vmem:[#allocation2 + $0xa8] sm:$0x80]  ;;  %v2268_v57 = vrot.slane %v2266_v26, 1  ;;  %v754_v26 = vld [vmem:[#allocation2 + $0x178] sm:$0x1] }
  0xc4   : > { %v2018_v40 = vpop.permute.xlu0 %2017  ;;  %v485_v6 = vsel %vm401_vm2, %v477_v37, %v484_v21  ;;  %v487_v48 = vshrl.u32 %v383_v33, 16  ;;  %v1029_v21 = vld [vmem:[#allocation2 + $0xa8] sm:$0x80]  ;;  %v944_v30 = vshll.u32 %v754_v26, 16 }
  0xc5   : > { %2066 = vst.msk [vmem:[#allocation3] sm:$0xff] %vm2065_vm11, %v2018_v40  ;;  %v2034_v52 = vpop.permute.xlu1 %2033  ;;  %v2179_v40 = vrot.slane %v1796_v39, 1  ;;  %v2269_v61 = vsel %vm755_vm1, %v5411_v44, %v2268_v57  ;;  %v1045_v33 = vld [vmem:[#allocation2 + $0x168] sm:$0x80] }
  0xc6   : > { %1637 = vrot.lane.b32.xlu0 %v1506_v50, %s4867_s22  ;;  %2074 = vst.msk [vmem:[#allocation3 + $0x40] sm:$0xff] %vm2065_vm11, %v2034_v52  ;;  %v384_v50 = vld [vmem:[#allocation2 + $0xb0] sm:$0xff]  ;;  %v590_v52 = vshll.u32 %v400_v5, 16  ;;  %v489_v10 = vrot.slane %v487_v48, 7  ;;  %v1031_v5 = vld [vmem:[#allocation2 + $0xc0] sm:$0x80] }
  0xc7   : > { %1653 = vrot.lane.b32.xlu1 %v1602_v43, %s4867_s22  ;;  %616 = vst.msk [vmem:[#allocation3 + $0x30] sm:$0xff] %vm172_vm0, %v485_v6  ;;  %v491_v46 = vshrl.u32 %v384_v50, 16  ;;  %v494_v27 = vshll.u32 %v384_v50, 16  ;;  %v583_v43 = vshrl.u32 %v399_v35, 16  ;;  %v5474_v11 = vor.u32 %v2179_v40, %v1793_v14 }
  0xc8   : > { %v2020_v42 = vpop.permute.xlu0 %2019  ;;  %v934_v50 = vrot.slane %v932_v25, 1  ;;  %v946_v45 = vrot.slane %v944_v30, 1  ;;  %v1134_v57 = vshrl.u32 %v1031_v5, 16  ;;  %v5579_v5 = vld [vmem:[#allocation2 + $0x1a0] sm:$0xff] }
  0xc9   : > { %2067 = vst.msk [vmem:[#allocation3 + $0x8] sm:$0xff] %vm2065_vm11, %v2020_v42  ;;  %v2036_v32 = vpop.permute.xlu1 %2035  ;;  %v493_v42 = vrot.slane %v491_v46, 7  ;;  %v5515_v46 = vld [vmem:[#allocation2 + $0x188] sm:$0xff] }
  0xca   : > { %1928 = vrot.lane.b32.xlu0 %v1787_v34, %s4868_s23  ;;  %2075 = vst.msk [vmem:[#allocation3 + $0x48] sm:$0xff] %vm2065_vm11, %v2036_v32  ;;  %v2182_v34 = vshll.u32 %v2093_v18, 16  ;;  %v592_v32 = vor.u32 %v590_v52, %v589_v22  ;;  %v1047_v52 = vld [vmem:[#allocation2 + $0x180] sm:$0x80] }
  0xcb   : > { %1944 = vrot.lane.b32.xlu1 %v1883_v62, %s4868_s23  ;;  %v585_v62 = vrot.slane %v583_v43, 7  ;;  %v1234_v43 = vshrl.u32 %v5515_v46, 16 }
  0xcc   : > { %v2307_v56 = vpop.permute.xlu0 %2306  ;;  %v2184_v58 = vrot.slane %v2182_v34, 1 }
  0xcd   : > { %2355 = vst.msk [vmem:[#allocation3] sm:$0xff] %vm2354_vm12, %v2307_v56  ;;  %v2323_v31 = vpop.permute.xlu1 %2322  ;;  %v496_v56 = vor.u32 %v494_v27, %v493_v42  ;;  %v593_v9 = vsel %vm401_vm2, %v585_v62, %v592_v32  ;;  %v1218_v42 = vshrl.u32 %v1045_v33, 16  ;;  %v1230_v62 = vshrl.u32 %v1047_v52, 16 }
  0xce   : > { %1930 = vrot.lane.b32.xlu0 %v1799_v60, %s4868_s23  ;;  %2363 = vst.msk [vmem:[#allocation3 + $0x40] sm:$0xff] %vm2354_vm12, %v2323_v31  ;;  %v2109_v60 = vld [vmem:[#allocation2 + $0x178] sm:$0x1]  ;;  %v2185_v14 = vsel %vm755_vm1, %v5474_v11, %v2184_v58  ;;  %v1236_v32 = vrot.slane %v1234_v43, 7  ;;  %v1237_v58 = vshll.u32 %v5515_v46, 16 }
  0xcf   : > { %1946 = vrot.lane.b32.xlu1 %v1895_v3, %s4868_s23  ;;  %v2278_v8 = vshll.u32 %v2109_v60, 16  ;;  %v736_v3 = vld [vmem:[#allocation2 + $0xa0] sm:$0x1]  ;;  %v497_v1 = vsel %vm401_vm2, %v489_v10, %v496_v56  ;;  %625 = vst.msk [vmem:[#allocation3 + $0x78] sm:$0xff] %vm172_vm0, %v593_v9  ;;  %v1220_v56 = vrot.slane %v1218_v42, 7 }
  0xd0   : > { %v663_v12 = vpop.permute.xlu0 %662  ;;  %617 = vst.msk [vmem:[#allocation3 + $0x38] sm:$0xff] %vm172_vm0, %v497_v1  ;;  %v836_v47 = vshll.u32 %v736_v3, 16  ;;  %v1416_v3 = vld [vmem:[#allocation2 + $0xb8] sm:$0x1]  ;;  %v1620_v26 = vrot.slane %v1237_v58, 1  ;;  %vm4260_vm0 = vcmask 1043459  }
  0xd1   : > { %709 = vst.msk [vmem:[#allocation3 + $0x10] sm:$0xff] %vm706_vm5, %v663_v12  ;;  %v679_v59 = vpop.permute.xlu1 %678  ;;  %v2280_v17 = vrot.slane %v2278_v8, 1  ;;  %v5550_v8 = vor.u32 %v1237_v58, %v1236_v32  ;;  %v1515_v9 = vshll.u32 %v1416_v3, 16  ;;  %v1726_v42 = vld [vmem:[#allocation2 + $0x198] sm:$0x80] }
  0xd2   : > { %2025 = vrot.lane.b32.xlu0 %v5318_v24, %s4869_s24  ;;  %717 = vst.msk [vmem:[#allocation3 + $0x50] sm:$0xff] %vm706_vm5, %v679_v59  ;;  %v838_v37 = vrot.slane %v836_v47, 1 }
  0xd3   : > { %2041 = vrot.lane.b32.xlu1 %v5329_v0, %s4869_s24  ;;  %v2281_v54 = vsel %vm755_vm1, %v5494_v16, %v2280_v17 }
  0xd4   : > { %v2309_v28 = vpop.permute.xlu0 %2308  ;;  %v2371_v29 = vld [vmem:[#allocation3] sm:$0xff]  ;;  %v839_v6 = vsel %vm755_vm1, %v5391_v23, %v838_v37 }
  0xd5   : > { %2356 = vst.msk [vmem:[#allocation3 + $0x8] sm:$0xff] %vm2354_vm12, %v2309_v28  ;;  %4780 = vmatprep.mubr.msk.bf16.mxu0 %vm2404_vm13, %v2371_v29  ;;  %v2325_v55 = vpop.permute.xlu1 %2324  ;;  %v2379_v39 = vld [vmem:[#allocation3 + $0x40] sm:$0xff]  ;;  %v5504_v28 = vld [vmem:[#allocation2 + $0xc8] sm:$0xff] }
  0xd6   : > { %2027 = vrot.lane.b32.xlu0 %v5379_v20, %s4869_s24  ;;  %2364 = vst.msk [vmem:[#allocation3 + $0x48] sm:$0xff] %vm2354_vm12, %v2325_v55  ;;  %4796 = vmatprep.mubr.msk.bf16.mxu1 %vm2404_vm13, %v2379_v39  ;;  %v1138_v59 = vshrl.u32 %v5504_v28, 16  ;;  %v1141_v48 = vshll.u32 %v5504_v28, 16  ;;  %v947_v39 = vsel %vm755_vm1, %v5494_v16, %v946_v45  ;;  %v1434_v37 = vld [vmem:[#allocation2 + $0x190] sm:$0x1] }
  0xd7   : > { %2043 = vrot.lane.b32.xlu1 %v5394_v38, %s4869_s24 }
  0xd8   : > { %v665_v49 = vpop.permute.xlu0 %664  ;;  %v1140_v34 = vrot.slane %v1138_v59, 7 }
  0xd9   : > { %710 = vst.msk [vmem:[#allocation3 + $0x18] sm:$0xff] %vm706_vm5, %v665_v49  ;;  %v681_v12 = vpop.permute.xlu1 %680  ;;  %v935_v49 = vsel %vm755_vm1, %v5411_v44, %v934_v50  ;;  %v1136_v44 = vrot.slane %v1134_v57, 7 }
  0xda   : > { %2314 = vrot.lane.b32.xlu0 %v2173_v4, %s4870_s27  ;;  %718 = vst.msk [vmem:[#allocation3 + $0x58] sm:$0xff] %vm706_vm5, %v681_v12  ;;  %v5537_v60 = vor.u32 %v1141_v48, %v1140_v34  ;;  %v1418_v12 = vld [vmem:[#allocation2 + $0xd0] sm:$0x1] }
  0xdb   : > { %2330 = vrot.lane.b32.xlu1 %v2269_v61, %s4870_s27  ;;  %v1232_v61 = vrot.slane %v1230_v62, 7  ;;  %v1527_v17 = vshll.u32 %v1418_v12, 16  ;;  %v2111_v12 = vld [vmem:[#allocation2 + $0x190] sm:$0x1] }
  0xdc   : > { %v953_v41 = vpop.permute.xlu0 %952  ;;  %v2372_v53 = vld [vmem:[#allocation3 + $0x8] sm:$0xff] }
  0xdd   : > { %999 = vst.msk [vmem:[#allocation3 + $0x10] sm:$0xff] %vm996_vm6, %v953_v41  ;;  %4781 = vmatmul.mubr.msk.bf16.vlgmr.msra.gmra.mrb[0].mxu0 %vm2404_vm13, %v2372_v53  ;;  %v969_v63 = vpop.permute.xlu1 %968  ;;  %v2380_v31 = vld [vmem:[#allocation3 + $0x48] sm:$0xff]  ;;  %v1228_v53 = vsel %vm401_vm2, %v1220_v56, %v5436_v36  ;;  %v1240_v47 = vsel %vm401_vm2, %v1232_v61, %v5550_v8  ;;  %v1916_v56 = vshll.u32 %v5579_v5, 16 }
  0xde   : > { %670 = vrot.lane.b32.xlu0 %v5318_v24, %s4863_s18  ;;  %1007 = vst.msk [vmem:[#allocation3 + $0x50] sm:$0xff] %vm996_vm6, %v969_v63  ;;  %4797 = vmatmul.mubr.msk.bf16.vlgmr.msra.gmra.mrb[0].mxu1 %vm2404_vm13, %v2380_v31  ;;  %v848_v24 = vshll.u32 %v738_v13, 16  ;;  %v1432_v13 = vld [vmem:[#allocation2 + $0x178] sm:$0x1]  ;;  %v1517_v63 = vrot.slane %v1515_v9, 1 }
  0xdf   : > { %686 = vrot.lane.b32.xlu1 %v5329_v0, %s4863_s18  ;;  %v1122_v0 = vshrl.u32 %v1029_v21, 16  ;;  %v1708_v31 = vld [vmem:[#allocation2 + $0xc0] sm:$0x80]  ;;  %v2097_v9 = vld [vmem:[#allocation2 + $0xe8] sm:$0x1] }
  0xe0   : > { %v955_v15 = vpop.permute.xlu0 %954  ;;  %v850_v18 = vrot.slane %v848_v24, 1  ;;  %v1611_v24 = vshll.u32 %v1432_v13, 16  ;;  %v5563_v21 = vld [vmem:[#allocation2 + $0xe0] sm:$0xff]  ;;  %v1801_v25 = vshrl.u32 %v1708_v31, 16  ;;  %v2113_v31 = vld [vmem:[#allocation2 + $0x1a8] sm:$0x1] }
  0xe1   : > { %1000 = vst.msk [vmem:[#allocation3 + $0x18] sm:$0xff] %vm996_vm6, %v955_v15  ;;  %v971_v29 = vpop.permute.xlu1 %970  ;;  %v1124_v23 = vrot.slane %v1122_v0, 7  ;;  %v1524_v15 = vrot.slane %v1141_v48, 1  ;;  %v1817_v0 = vshrl.u32 %v5563_v21, 16  ;;  %v1820_v45 = vshll.u32 %v5563_v21, 16 }
  0xe2   : > { %2316 = vrot.lane.b32.xlu0 %v2185_v14, %s4870_s27  ;;  %1008 = vst.msk [vmem:[#allocation3 + $0x58] sm:$0xff] %vm996_vm6, %v971_v29  ;;  %v851_v27 = vsel %vm755_vm1, %v5474_v11, %v850_v18  ;;  %v1518_v29 = vsel %vm755_vm1, %v5474_v11, %v1517_v63  ;;  %v1623_v18 = vshll.u32 %v1434_v37, 16  ;;  %v1613_v30 = vrot.slane %v1611_v24, 1 }
  0xe3   : > { %2332 = vrot.lane.b32.xlu1 %v2281_v54, %s4870_s27  ;;  %v1132_v55 = vsel %vm401_vm2, %v1124_v23, %v5421_v51  ;;  %v1144_v51 = vsel %vm401_vm2, %v1136_v44, %v5537_v60  ;;  %v1529_v54 = vrot.slane %v1527_v17, 1  ;;  %v1803_v11 = vrot.slane %v1801_v25, 7 }
  0xe4   : > { %v1246_v2 = vpop.permute.xlu0 %1245  ;;  %v1625_v33 = vrot.slane %v1623_v18, 1  ;;  %v1819_v23 = vrot.slane %v1817_v0, 7  ;;  %v1614_v34 = vsel %vm755_vm1, %v5494_v16, %v1613_v30  ;;  %v1909_v44 = vshrl.u32 %v1726_v42, 16 }
  0xe5   : > { %1292 = vst.msk [vmem:[#allocation3 + $0x10] sm:$0xff] %vm1289_vm7, %v1246_v2  ;;  %v1262_v40 = vpop.permute.xlu1 %1261  ;;  %v2290_v17 = vshll.u32 %v2111_v12, 16  ;;  %v2302_v25 = vshll.u32 %v2113_v31, 16 }
  0xe6   : > { %672 = vrot.lane.b32.xlu0 %v5379_v20, %s4863_s18  ;;  %1300 = vst.msk [vmem:[#allocation3 + $0x50] sm:$0xff] %vm1289_vm7, %v1262_v40  ;;  %v5587_v40 = vor.u32 %v1620_v26, %v1234_v43  ;;  %v1811_v43 = vsel %vm401_vm2, %v1803_v11, %v5537_v60  ;;  %v1822_v52 = vor.u32 %v1820_v45, %v1819_v23 }
  0xe7   : > { %688 = vrot.lane.b32.xlu1 %v5394_v38, %s4863_s18 }
  0xe8   : > { %v1248_v4 = vpop.permute.xlu0 %1247 }
  0xe9   : > { %1293 = vst.msk [vmem:[#allocation3 + $0x18] sm:$0xff] %vm1289_vm7, %v1248_v4  ;;  %v1264_v22 = vpop.permute.xlu1 %1263  ;;  %v1710_v4 = vld [vmem:[#allocation2 + $0xd8] sm:$0x80] }
  0xea   : > { %960 = vrot.lane.b32.xlu0 %v839_v6, %s4864_s19  ;;  %1301 = vst.msk [vmem:[#allocation3 + $0x58] sm:$0xff] %vm1289_vm7, %v1264_v22  ;;  %v1626_v22 = vsel %vm755_vm1, %v5587_v40, %v1625_v33 }
  0xeb   : > { %976 = vrot.lane.b32.xlu1 %v935_v49, %s4864_s19 }
  0xec   : > { %v1343_v35 = vpop.permute.xlu0 %1342 }
  0xed   : > { %1389 = vst.msk [vmem:[#allocation3 + $0x10] sm:$0xff] %vm1386_vm8, %v1343_v35  ;;  %v1359_v7 = vpop.permute.xlu1 %1358  ;;  %v1913_v35 = vshrl.u32 %v5579_v5, 16 }
  0xee   : > { %962 = vrot.lane.b32.xlu0 %v851_v27, %s4864_s19  ;;  %1397 = vst.msk [vmem:[#allocation3 + $0x50] sm:$0xff] %vm1386_vm8, %v1359_v7  ;;  %v1813_v27 = vshrl.u32 %v1710_v4, 16  ;;  %v1911_v7 = vrot.slane %v1909_v44, 7 }
  0xef   : > { %978 = vrot.lane.b32.xlu1 %v947_v39, %s4864_s19 }
  0xf0   : > { %v1345_v10 = vpop.permute.xlu0 %1344  ;;  %v1815_v16 = vrot.slane %v1813_v27, 7 }
  0xf1   : > { %1390 = vst.msk [vmem:[#allocation3 + $0x18] sm:$0xff] %vm1386_vm8, %v1345_v10  ;;  %v1361_v1 = vpop.permute.xlu1 %1360  ;;  %v1915_v10 = vrot.slane %v1913_v35, 7 }
  0xf2   : > { %1253 = vrot.lane.b32.xlu0 %v1132_v55, %s4866_s21  ;;  %1398 = vst.msk [vmem:[#allocation3 + $0x58] sm:$0xff] %vm1386_vm8, %v1361_v1  ;;  %v1823_v60 = vsel %vm401_vm2, %v1815_v16, %v1822_v52 }
  0xf3   : > { %1269 = vrot.lane.b32.xlu1 %v1228_v53, %s4866_s21 }
  0xf4   : > { %v1632_v41 = vpop.permute.xlu0 %1631 }
  0xf5   : > { %1678 = vst.msk [vmem:[#allocation3 + $0x10] sm:$0xff] %vm1675_vm9, %v1632_v41  ;;  %v1648_v36 = vpop.permute.xlu1 %1647  ;;  %v2095_v41 = vld [vmem:[#allocation2 + $0xd0] sm:$0x1] }
  0xf6   : > { %1255 = vrot.lane.b32.xlu0 %v1144_v51, %s4866_s21  ;;  %1686 = vst.msk [vmem:[#allocation3 + $0x50] sm:$0xff] %vm1675_vm9, %v1648_v36  ;;  %v1918_v51 = vor.u32 %v1916_v56, %v1915_v10  ;;  %v2194_v61 = vshll.u32 %v2095_v41, 16  ;;  %v2206_v36 = vshll.u32 %v2097_v9, 16 }
  0xf7   : > { %1271 = vrot.lane.b32.xlu1 %v1240_v47, %s4866_s21  ;;  %v2203_v47 = vrot.slane %v1820_v45, 1 }
  0xf8   : > { %v1634_v14 = vpop.permute.xlu0 %1633  ;;  %v1919_v1 = vsel %vm401_vm2, %v1911_v7, %v1918_v51  ;;  %v2208_v24 = vrot.slane %v2206_v36, 1 }
  0xf9   : > { %1679 = vst.msk [vmem:[#allocation3 + $0x18] sm:$0xff] %vm1675_vm9, %v1634_v14  ;;  %v1650_v2 = vpop.permute.xlu1 %1649  ;;  %v2196_v14 = vrot.slane %v2194_v61, 1 }
  0xfa   : > { %1350 = vrot.lane.b32.xlu0 %v5379_v20, %s4865_s20  ;;  %1687 = vst.msk [vmem:[#allocation3 + $0x58] sm:$0xff] %vm1675_vm9, %v1650_v2  ;;  %v5571_v20 = vor.u32 %v1524_v15, %v1138_v59  ;;  %v1724_v59 = vld [vmem:[#allocation2 + $0x180] sm:$0x80]  ;;  %v2292_v2 = vrot.slane %v2290_v17, 1 }
  0xfb   : > { %1366 = vrot.lane.b32.xlu1 %v5394_v38, %s4865_s20  ;;  %v1897_v48 = vshrl.u32 %v1724_v59, 16 }
  0xfc   : > { %v1925_v19 = vpop.permute.xlu0 %1924  ;;  %v1530_v38 = vsel %vm755_vm1, %v5571_v20, %v1529_v54  ;;  %v2299_v54 = vrot.slane %v1916_v56, 1  ;;  %v2293_v18 = vsel %vm755_vm1, %v5587_v40, %v2292_v2 }
  0xfd   : > { %1971 = vst.msk [vmem:[#allocation3 + $0x10] sm:$0xff] %vm1968_vm10, %v1925_v19  ;;  %v1941_v50 = vpop.permute.xlu1 %1940  ;;  %v1899_v39 = vrot.slane %v1897_v48, 7  ;;  %v2204_v19 = vor.u32 %v2203_v47, %v1817_v0 }
  0xfe   : > { %1352 = vrot.lane.b32.xlu0 %v5504_v28, %s4865_s20  ;;  %1979 = vst.msk [vmem:[#allocation3 + $0x50] sm:$0xff] %vm1968_vm10, %v1941_v50  ;;  %v2300_v0 = vor.u32 %v2299_v54, %v1913_v35 }
  0xff   : > { %1368 = vrot.lane.b32.xlu1 %v5515_v46, %s4865_s20  ;;  %v1907_v58 = vsel %vm401_vm2, %v1899_v39, %v5550_v8  ;;  %vm4266_vm2 = vcmask 1045509  }
 0x100   : > { %v1927_v6 = vpop.permute.xlu0 %1926 }
 0x101   : > { %1972 = vst.msk [vmem:[#allocation3 + $0x18] sm:$0xff] %vm1968_vm10, %v1927_v6  ;;  %v1943_v49 = vpop.permute.xlu1 %1942  ;;  %v2304_v6 = vrot.slane %v2302_v25, 1 }
 0x102   : > { %1639 = vrot.lane.b32.xlu0 %v1518_v29, %s4867_s22  ;;  %1980 = vst.msk [vmem:[#allocation3 + $0x58] sm:$0xff] %vm1968_vm10, %v1943_v49 }
 0x103   : > { %1655 = vrot.lane.b32.xlu1 %v1614_v34, %s4867_s22  ;;  %v2305_v50 = vsel %vm755_vm1, %v2300_v0, %v2304_v6 }
 0x104   : > { %v2022_v57 = vpop.permute.xlu0 %2021 }
 0x105   : > { %2068 = vst.msk [vmem:[#allocation3 + $0x10] sm:$0xff] %vm2065_vm11, %v2022_v57  ;;  %v2038_v62 = vpop.permute.xlu1 %2037 }
 0x106   : > { %1641 = vrot.lane.b32.xlu0 %v1530_v38, %s4867_s22  ;;  %2076 = vst.msk [vmem:[#allocation3 + $0x50] sm:$0xff] %vm2065_vm11, %v2038_v62 }
 0x107   : > { %1657 = vrot.lane.b32.xlu1 %v1626_v22, %s4867_s22 }
 0x108   : > { %v2024_v55 = vpop.permute.xlu0 %2023 }
 0x109   : > { %2069 = vst.msk [vmem:[#allocation3 + $0x18] sm:$0xff] %vm2065_vm11, %v2024_v55  ;;  %v2040_v53 = vpop.permute.xlu1 %2039 }
 0x10a   : > { %1932 = vrot.lane.b32.xlu0 %v1811_v43, %s4868_s23  ;;  %2077 = vst.msk [vmem:[#allocation3 + $0x58] sm:$0xff] %vm2065_vm11, %v2040_v53 }
 0x10b   : > { %1948 = vrot.lane.b32.xlu1 %v1907_v58, %s4868_s23 }
 0x10c   : > { %v2311_v32 = vpop.permute.xlu0 %2310 }
 0x10d   : > { %2357 = vst.msk [vmem:[#allocation3 + $0x10] sm:$0xff] %vm2354_vm12, %v2311_v32  ;;  %v2327_v8 = vpop.permute.xlu1 %2326 }
 0x10e   : > { %1934 = vrot.lane.b32.xlu0 %v1823_v60, %s4868_s23  ;;  %2365 = vst.msk [vmem:[#allocation3 + $0x50] sm:$0xff] %vm2354_vm12, %v2327_v8 }
 0x10f   : > { %1950 = vrot.lane.b32.xlu1 %v1919_v1, %s4868_s23 }
 0x110   : > { %v667_v3 = vpop.permute.xlu0 %666 }
 0x111   : > { %711 = vst.msk [vmem:[#allocation3 + $0x20] sm:$0xff] %vm706_vm5, %v667_v3  ;;  %v683_v63 = vpop.permute.xlu1 %682 }
 0x112   : > { %2029 = vrot.lane.b32.xlu0 %v5504_v28, %s4869_s24  ;;  %719 = vst.msk [vmem:[#allocation3 + $0x60] sm:$0xff] %vm706_vm5, %v683_v63  ;;  %v2197_v28 = vsel %vm755_vm1, %v5571_v20, %v2196_v14 }
 0x113   : > { %2045 = vrot.lane.b32.xlu1 %v5515_v46, %s4869_s24  ;;  %v2209_v46 = vsel %vm755_vm1, %v2204_v19, %v2208_v24  ;;  %vm4263_vm1 = vcmask 1044484  }
 0x114   : > { %v2313_v13 = vpop.permute.xlu0 %2312  ;;  %v2373_v15 = vld [vmem:[#allocation3 + $0x10] sm:$0xff] }
 0x115   : > { %2358 = vst.msk [vmem:[#allocation3 + $0x18] sm:$0xff] %vm2354_vm12, %v2313_v13  ;;  %4784 = vmatprep.mubr.msk.bf16.mxu0 %vm2404_vm13, %v2373_v15  ;;  %v2329_v26 = vpop.permute.xlu1 %2328  ;;  %v2381_v29 = vld [vmem:[#allocation3 + $0x50] sm:$0xff] }
 0x116   : > { %2031 = vrot.lane.b32.xlu0 %v5563_v21, %s4869_s24  ;;  %2366 = vst.msk [vmem:[#allocation3 + $0x58] sm:$0xff] %vm2354_vm12, %v2329_v26  ;;  %4800 = vmatprep.mubr.msk.bf16.mxu1 %vm2404_vm13, %v2381_v29 }
 0x117   : > { %2047 = vrot.lane.b32.xlu1 %v5579_v5, %s4869_s24 }
 0x118   : > { %v669_v37 = vpop.permute.xlu0 %668 }
 0x119   : > { %712 = vst.msk [vmem:[#allocation3 + $0x28] sm:$0xff] %vm706_vm5, %v669_v37  ;;  %v685_v30 = vpop.permute.xlu1 %684 }
 0x11a   : > { %2318 = vrot.lane.b32.xlu0 %v2197_v28, %s4870_s27  ;;  %720 = vst.msk [vmem:[#allocation3 + $0x68] sm:$0xff] %vm706_vm5, %v685_v30 }
 0x11b   : > { %2334 = vrot.lane.b32.xlu1 %v2293_v18, %s4870_s27 }
 0x11c   : > { %v957_v21 = vpop.permute.xlu0 %956  ;;  %v2374_v20 = vld [vmem:[#allocation3 + $0x18] sm:$0xff] }
 0x11d   : > { %1001 = vst.msk [vmem:[#allocation3 + $0x20] sm:$0xff] %vm996_vm6, %v957_v21  ;;  %4785 = vmatmul.mubr.msk.bf16.gmra.mrb[4].mxu0 %vm2404_vm13, %v2374_v20  ;;  %v973_v59 = vpop.permute.xlu1 %972  ;;  %v2382_v5 = vld [vmem:[#allocation3 + $0x58] sm:$0xff] }
 0x11e   : > { %2320 = vrot.lane.b32.xlu0 %v2209_v46, %s4870_s27  ;;  %1009 = vst.msk [vmem:[#allocation3 + $0x60] sm:$0xff] %vm996_vm6, %v973_v59  ;;  %4801 = vmatmul.mubr.msk.bf16.gmra.mrb[4].mxu1 %vm2404_vm13, %v2382_v5 }
 0x11f   : > { %2336 = vrot.lane.b32.xlu1 %v2305_v50, %s4870_s27 }
 0x120   : > { %v959_v4 = vpop.permute.xlu0 %958 }
 0x121   : > { %1002 = vst.msk [vmem:[#allocation3 + $0x28] sm:$0xff] %vm996_vm6, %v959_v4  ;;  %v975_v11 = vpop.permute.xlu1 %974 }
 0x122   : > { %1010 = vst.msk [vmem:[#allocation3 + $0x68] sm:$0xff] %vm996_vm6, %v975_v11  ;;  %v4872_v11 = vmov 1983009808  }
 0x124   : > { %v1250_v38 = vpop.permute.xlu0 %1249 }
 0x125   : > { %1294 = vst.msk [vmem:[#allocation3 + $0x20] sm:$0xff] %vm1289_vm7, %v1250_v38  ;;  %v1266_v33 = vpop.permute.xlu1 %1265 }
 0x126   : > { %1302 = vst.msk [vmem:[#allocation3 + $0x60] sm:$0xff] %vm1289_vm7, %v1266_v33  ;;  %v2689_v33 = vlaneseq }
 0x128   : > { %v1252_v40 = vpop.permute.xlu0 %1251 }
 0x129   : > { %1295 = vst.msk [vmem:[#allocation3 + $0x28] sm:$0xff] %vm1289_vm7, %v1252_v40  ;;  %v1268_v23 = vpop.permute.xlu1 %1267  ;;  %v2687_v40 = vunpack.c.l.s4 %v4872_v11 }
 0x12a   : > { %1303 = vst.msk [vmem:[#allocation3 + $0x68] sm:$0xff] %vm1289_vm7, %v1268_v23  ;;  %v2690_v23 = vshrl.u32 %v2689_v33, 7 }
 0x12c   : > { %v1347_v27 = vpop.permute.xlu0 %1346 }
 0x12d   : > { %1391 = vst.msk [vmem:[#allocation3 + $0x20] sm:$0xff] %vm1386_vm8, %v1347_v27  ;;  %v1363_v57 = vpop.permute.xlu1 %1362  ;;  %v2688_v27 = vunpack.c.0.s8 %v2687_v40 }
 0x12e   : > { %1399 = vst.msk [vmem:[#allocation3 + $0x60] sm:$0xff] %vm1386_vm8, %v1363_v57 }
 0x130   : > { %v1349_v45 = vpop.permute.xlu0 %1348 }
 0x131   : > { %1392 = vst.msk [vmem:[#allocation3 + $0x28] sm:$0xff] %vm1386_vm8, %v1349_v45  ;;  %v1365_v48 = vpop.permute.xlu1 %1364  ;;  %v5725_v45 = vld [vmem:[%s5925_s2] ss:$0 sm:$0xff] }
 0x132   : > { %1400 = vst.msk [vmem:[#allocation3 + $0x68] sm:$0xff] %vm1386_vm8, %v1365_v48  ;;  %v5728_v48 = vsub.s32 %v2688_v27, %v2690_v23 }
 0x134   : > { %v1636_v34 = vpop.permute.xlu0 %1635 }
 0x135   : > { %1680 = vst.msk [vmem:[#allocation3 + $0x20] sm:$0xff] %vm1675_vm9, %v1636_v34  ;;  %v1652_v49 = vpop.permute.xlu1 %1651 }
 0x136   : > { %1688 = vst.msk [vmem:[#allocation3 + $0x60] sm:$0xff] %vm1675_vm9, %v1652_v49 }
 0x138   : > { %v1638_v35 = vpop.permute.xlu0 %1637 }
 0x139   : > { %1681 = vst.msk [vmem:[#allocation3 + $0x28] sm:$0xff] %vm1675_vm9, %v1638_v35  ;;  %v1654_v43 = vpop.permute.xlu1 %1653 }
 0x13a   : > { %1689 = vst.msk [vmem:[#allocation3 + $0x68] sm:$0xff] %vm1675_vm9, %v1654_v43 }
 0x13c   : > { %v1929_v42 = vpop.permute.xlu0 %1928 }
 0x13d   : > { %1973 = vst.msk [vmem:[#allocation3 + $0x20] sm:$0xff] %vm1968_vm10, %v1929_v42  ;;  %v1945_v16 = vpop.permute.xlu1 %1944 }
 0x13e   : > { %1981 = vst.msk [vmem:[#allocation3 + $0x60] sm:$0xff] %vm1968_vm10, %v1945_v16 }
 0x140   : > { %v1931_v22 = vpop.permute.xlu0 %1930 }
 0x141   : > { %1974 = vst.msk [vmem:[#allocation3 + $0x28] sm:$0xff] %vm1968_vm10, %v1931_v22  ;;  %v1947_v55 = vpop.permute.xlu1 %1946 }
 0x142   : > { %1982 = vst.msk [vmem:[#allocation3 + $0x68] sm:$0xff] %vm1968_vm10, %v1947_v55 }
 0x144   : > { %v2026_v52 = vpop.permute.xlu0 %2025 }
 0x145   : > { %2070 = vst.msk [vmem:[#allocation3 + $0x20] sm:$0xff] %vm2065_vm11, %v2026_v52  ;;  %v2042_v44 = vpop.permute.xlu1 %2041 }
 0x146   : > { %2078 = vst.msk [vmem:[#allocation3 + $0x60] sm:$0xff] %vm2065_vm11, %v2042_v44 }
 0x148   : > { %v2028_v39 = vpop.permute.xlu0 %2027 }
 0x149   : > { %2071 = vst.msk [vmem:[#allocation3 + $0x28] sm:$0xff] %vm2065_vm11, %v2028_v39  ;;  %v2044_v56 = vpop.permute.xlu1 %2043 }
 0x14a   : > { %2079 = vst.msk [vmem:[#allocation3 + $0x68] sm:$0xff] %vm2065_vm11, %v2044_v56 }
 0x14c   : > { %v2315_v10 = vpop.permute.xlu0 %2314 }
 0x14d   : > { %2359 = vst.msk [vmem:[#allocation3 + $0x20] sm:$0xff] %vm2354_vm12, %v2315_v10  ;;  %v2331_v60 = vpop.permute.xlu1 %2330 }
 0x14e   : > { %2367 = vst.msk [vmem:[#allocation3 + $0x60] sm:$0xff] %vm2354_vm12, %v2331_v60 }
 0x150   : > { %v671_v62 = vpop.permute.xlu0 %670 }
 0x151   : > { %713 = vst.msk [vmem:[#allocation3 + $0x30] sm:$0xff] %vm706_vm5, %v671_v62  ;;  %v687_v7 = vpop.permute.xlu1 %686 }
 0x152   : > { %721 = vst.msk [vmem:[#allocation3 + $0x70] sm:$0xff] %vm706_vm5, %v687_v7 }
 0x154   : > { %v2317_v32 = vpop.permute.xlu0 %2316  ;;  %v2375_v58 = vld [vmem:[#allocation3 + $0x20] sm:$0xff] }
 0x155   : > { %2360 = vst.msk [vmem:[#allocation3 + $0x28] sm:$0xff] %vm2354_vm12, %v2317_v32  ;;  %4788 = vmatprep.mubr.msk.bf16.mxu0 %vm2404_vm13, %v2375_v58  ;;  %v2333_v41 = vpop.permute.xlu1 %2332  ;;  %v2383_v53 = vld [vmem:[#allocation3 + $0x60] sm:$0xff] }
 0x156   : > { %2368 = vst.msk [vmem:[#allocation3 + $0x68] sm:$0xff] %vm2354_vm12, %v2333_v41  ;;  %4804 = vmatprep.mubr.msk.bf16.mxu1 %vm2404_vm13, %v2383_v53 }
 0x158   : > { %v673_v51 = vpop.permute.xlu0 %672 }
 0x159   : > { %714 = vst.msk [vmem:[#allocation3 + $0x38] sm:$0xff] %vm706_vm5, %v673_v51  ;;  %v689_v1 = vpop.permute.xlu1 %688 }
 0x15a   : > { %722 = vst.msk [vmem:[#allocation3 + $0x78] sm:$0xff] %vm706_vm5, %v689_v1  ;;  %vm4388_vm5 = vcmask 257024  }
 0x15c   : > { %v961_v61 = vpop.permute.xlu0 %960  ;;  %v2376_v3 = vld [vmem:[#allocation3 + $0x28] sm:$0xff] }
 0x15d   : > { %1003 = vst.msk [vmem:[#allocation3 + $0x30] sm:$0xff] %vm996_vm6, %v961_v61  ;;  %4789 = vmatmul.mubr.msk.bf16.gmra.mrb[8].mxu0 %vm2404_vm13, %v2376_v3  ;;  %v977_v8 = vpop.permute.xlu1 %976  ;;  %v2384_v12 = vld [vmem:[#allocation3 + $0x68] sm:$0xff] }
 0x15e   : > { %1011 = vst.msk [vmem:[#allocation3 + $0x70] sm:$0xff] %vm996_vm6, %v977_v8  ;;  %4805 = vmatmul.mubr.msk.bf16.gmra.mrb[8].mxu1 %vm2404_vm13, %v2384_v12 }
 0x160   : > { %v963_v9 = vpop.permute.xlu0 %962 }
 0x161   : > { %1004 = vst.msk [vmem:[#allocation3 + $0x38] sm:$0xff] %vm996_vm6, %v963_v9  ;;  %v979_v47 = vpop.permute.xlu1 %978 }
 0x162   : > { %1012 = vst.msk [vmem:[#allocation3 + $0x78] sm:$0xff] %vm996_vm6, %v979_v47 }
 0x164   : > { %v1254_v14 = vpop.permute.xlu0 %1253 }
 0x165   : > { %1296 = vst.msk [vmem:[#allocation3 + $0x30] sm:$0xff] %vm1289_vm7, %v1254_v14  ;;  %v1270_v13 = vpop.permute.xlu1 %1269 }
 0x166   : > { %1304 = vst.msk [vmem:[#allocation3 + $0x70] sm:$0xff] %vm1289_vm7, %v1270_v13 }
 0x168   : > { %v1256_v36 = vpop.permute.xlu0 %1255 }
 0x169   : > { %1297 = vst.msk [vmem:[#allocation3 + $0x38] sm:$0xff] %vm1289_vm7, %v1256_v36  ;;  %v1272_v17 = vpop.permute.xlu1 %1271 }
 0x16a   : > { %1305 = vst.msk [vmem:[#allocation3 + $0x78] sm:$0xff] %vm1289_vm7, %v1272_v17 }
 0x16c   : > { %v1351_v15 = vpop.permute.xlu0 %1350 }
 0x16d   : > { %1393 = vst.msk [vmem:[#allocation3 + $0x30] sm:$0xff] %vm1386_vm8, %v1351_v15  ;;  %v1367_v31 = vpop.permute.xlu1 %1366 }
 0x16e   : > { %1401 = vst.msk [vmem:[#allocation3 + $0x70] sm:$0xff] %vm1386_vm8, %v1367_v31 }
 0x170   : > { %v1353_v63 = vpop.permute.xlu0 %1352 }
 0x171   : > { %1394 = vst.msk [vmem:[#allocation3 + $0x38] sm:$0xff] %vm1386_vm8, %v1353_v63  ;;  %v1369_v19 = vpop.permute.xlu1 %1368 }
 0x172   : > { %1402 = vst.msk [vmem:[#allocation3 + $0x78] sm:$0xff] %vm1386_vm8, %v1369_v19 }
 0x174   : > { %v1640_v28 = vpop.permute.xlu0 %1639 }
 0x175   : > { %1682 = vst.msk [vmem:[#allocation3 + $0x30] sm:$0xff] %vm1675_vm9, %v1640_v28  ;;  %v1656_v37 = vpop.permute.xlu1 %1655 }
 0x176   : > { %1690 = vst.msk [vmem:[#allocation3 + $0x70] sm:$0xff] %vm1675_vm9, %v1656_v37 }
 0x178   : > { %v1642_v24 = vpop.permute.xlu0 %1641 }
 0x179   : > { %1683 = vst.msk [vmem:[#allocation3 + $0x38] sm:$0xff] %vm1675_vm9, %v1642_v24  ;;  %v1658_v54 = vpop.permute.xlu1 %1657 }
 0x17a   : > { %1691 = vst.msk [vmem:[#allocation3 + $0x78] sm:$0xff] %vm1675_vm9, %v1658_v54 }
 0x17c   : > { %v1933_v2 = vpop.permute.xlu0 %1932 }
 0x17d   : > { %1975 = vst.msk [vmem:[#allocation3 + $0x30] sm:$0xff] %vm1968_vm10, %v1933_v2  ;;  %v1949_v26 = vpop.permute.xlu1 %1948 }
 0x17e   : > { %1983 = vst.msk [vmem:[#allocation3 + $0x70] sm:$0xff] %vm1968_vm10, %v1949_v26 }
 0x180   : > { %v1935_v25 = vpop.permute.xlu0 %1934 }
 0x181   : > { %1976 = vst.msk [vmem:[#allocation3 + $0x38] sm:$0xff] %vm1968_vm10, %v1935_v25  ;;  %v1951_v46 = vpop.permute.xlu1 %1950 }
 0x182   : > { %1984 = vst.msk [vmem:[#allocation3 + $0x78] sm:$0xff] %vm1968_vm10, %v1951_v46 }
 0x184   : > { %v2030_v29 = vpop.permute.xlu0 %2029 }
 0x185   : > { %2072 = vst.msk [vmem:[#allocation3 + $0x30] sm:$0xff] %vm2065_vm11, %v2030_v29  ;;  %v2046_v20 = vpop.permute.xlu1 %2045 }
 0x186   : > { %2080 = vst.msk [vmem:[#allocation3 + $0x70] sm:$0xff] %vm2065_vm11, %v2046_v20 }
 0x188   : > { %v2032_v21 = vpop.permute.xlu0 %2031 }
 0x189   : > { %2073 = vst.msk [vmem:[#allocation3 + $0x38] sm:$0xff] %vm2065_vm11, %v2032_v21  ;;  %v2048_v0 = vpop.permute.xlu1 %2047 }
 0x18a   : > { %2081 = vst.msk [vmem:[#allocation3 + $0x78] sm:$0xff] %vm2065_vm11, %v2048_v0 }
 0x18c   : > { %v2319_v18 = vpop.permute.xlu0 %2318 }
 0x18d   : > { %2361 = vst.msk [vmem:[#allocation3 + $0x30] sm:$0xff] %vm2354_vm12, %v2319_v18  ;;  %v2335_v30 = vpop.permute.xlu1 %2334 }
 0x18e   : > { %2369 = vst.msk [vmem:[#allocation3 + $0x70] sm:$0xff] %vm2354_vm12, %v2335_v30 }
 0x190   : > { %v2321_v6 = vpop.permute.xlu0 %2320 }
 0x191   : > { %2362 = vst.msk [vmem:[#allocation3 + $0x38] sm:$0xff] %vm2354_vm12, %v2321_v6  ;;  %v2337_v50 = vpop.permute.xlu1 %2336 }
 0x192   : > { %2370 = vst.msk [vmem:[#allocation3 + $0x78] sm:$0xff] %vm2354_vm12, %v2337_v50 }
 0x194   : > { %v2377_v4 = vld [vmem:[#allocation3 + $0x30] sm:$0xff] }
 0x195   : > { %4792 = vmatprep.mubr.msk.bf16.mxu0 %vm2404_vm13, %v2377_v4  ;;  %v2385_v5 = vld [vmem:[#allocation3 + $0x70] sm:$0xff] }
 0x196   : > { %4808 = vmatprep.mubr.msk.bf16.mxu1 %vm2404_vm13, %v2385_v5 }
 0x198   : > { %v2378_v59 = vld [vmem:[#allocation3 + $0x38] sm:$0xff] }
 0x199   : > { %4793 = vmatmul.mubr.msk.bf16.gmra.mrb[12].mxu0 %vm2404_vm13, %v2378_v59  ;;  %v2386_v38 = vld [vmem:[#allocation3 + $0x78] sm:$0xff] }
 0x19a   : > { %4809 = vmatmul.mubr.msk.bf16.gmra.mrb[12].mxu1 %vm2404_vm13, %v2386_v38 }
 0x1b0   : > { %v4782_v57 = vpop.f32.mrb[0].mxu0 }
 0x1b1   : > { %v2503_v34 = vadd.f32 %v4782_v57, %v5725_v45  ;;  %v2494_v35 = vpop.f32.mrb[1].mxu0  ;;  %v4798_v56 = vpop.f32.mrb[0].mxu1 }
 0x1b2   : > { %v2495_v49 = vadd.f32 %v5725_v45, %v2494_v35  ;;  %v4783_v42 = vpop.f32.mrb[2].mxu0  ;;  %v2567_v58 = vadd.f32 %v4798_v56, %v5725_v45  ;;  %v2558_v7 = vpop.f32.mrb[1].mxu1 }
 0x1b3   : > { %v2623_v43 = vmax.f32 %v2503_v34, 0.0  ;;  %v2506_v22 = vadd.f32 %v4783_v42, %v5725_v45  ;;  %v2497_v16 = vpop.f32.mrb[3].mxu0  ;;  %v4799_v3 = vpop.f32.mrb[2].mxu1 }
 0x1b4   : > { %v2621_v52 = vmax.f32 %v2495_v49, 0.0  ;;  %v2498_v55 = vadd.f32 %v5725_v45, %v2497_v16  ;;  %v5739_v14 = vpop.f32.mrb[3].mxu1 }
 0x1b5   : > { %v2719_v39 = vcombine.high %v2623_v43, %v2623_v43  ;;  %v2726_v44 = vrot.slane %v2623_v43, %v5728_v48  ;;  %v2624_v10 = vmax.f32 %v2506_v22, 0.0 }
 0x1b6   : > { %v2685_v62 = vcombine.high %v2621_v52, %v2621_v52  ;;  %v2692_v60 = vrot.slane %v2621_v52, %v5728_v48  ;;  %v2622_v32 = vmax.f32 %v2498_v55, 0.0  ;;  %v2639_v52 = vmax.f32 %v2567_v58, 0.0 }
 0x1b7   : > { %v2733_v51 = vrot.slane %v2719_v39, %v5728_v48  ;;  %v2734_v41 = vcombine.high %v2726_v44, %v2726_v44  ;;  %v4506_v53 = vrot.slane %v2726_v44, 9  ;;  %v2736_v61 = vcombine.high %v2624_v10, %v2624_v10 }
 0x1b8   : > { %v2699_v1 = vrot.slane %v2685_v62, %v5728_v48  ;;  %v2700_v9 = vcombine.high %v2692_v60, %v2692_v60  ;;  %v4498_v8 = vrot.slane %v2692_v60, 9  ;;  %v2743_v12 = vrot.slane %v2624_v10, %v5728_v48 }
 0x1b9   : > { %v2735_v47 = vcombine.high %v2733_v51, %v2733_v51  ;;  %v4507_v36 = vrot.slane %v2734_v41, 9  ;;  %v4508_v13 = vrot.slane %v2733_v51, 9  ;;  %v3749_v15 = vmax.f32 %v2726_v44, %v4506_v53 }
 0x1ba   : > { %v2701_v17 = vcombine.high %v2699_v1, %v2699_v1  ;;  %v4499_v63 = vrot.slane %v2700_v9, 9  ;;  %v4500_v31 = vrot.slane %v2699_v1, 9  ;;  %v3741_v28 = vmax.f32 %v2692_v60, %v4498_v8 }
 0x1bb   : > { %v4509_v19 = vrot.slane %v2735_v47, 9  ;;  %v3750_v24 = vmax.f32 %v2734_v41, %v4507_v36  ;;  %v3751_v37 = vmax.f32 %v2733_v51, %v4508_v13  ;;  %v2750_v2 = vrot.slane %v2736_v61, %v5728_v48 }
 0x1bc   : > { %v4501_v54 = vrot.slane %v2701_v17, 9  ;;  %v3742_v25 = vmax.f32 %v2700_v9, %v4499_v63  ;;  %v3743_v26 = vmax.f32 %v2699_v1, %v4500_v31  ;;  %v3869_v29 = vmax.f32 %v3741_v28, %v3749_v15 }
 0x1bd   : > { %v3752_v46 = vmax.f32 %v2735_v47, %v4509_v19  ;;  %v2751_v21 = vcombine.high %v2743_v12, %v2743_v12  ;;  %v2752_v20 = vcombine.high %v2750_v2, %v2750_v2  ;;  %v4510_v18 = vrot.slane %v2743_v12, 9 }
 0x1be   : > { %v3744_v0 = vmax.f32 %v2701_v17, %v4501_v54  ;;  %v3870_v6 = vmax.f32 %v3742_v25, %v3750_v24  ;;  %v3871_v30 = vmax.f32 %v3743_v26, %v3751_v37  ;;  %v4694_v4 = vpack.c.bf16 %v3869_v29, %v3869_v29 }
 0x1bf   : > { %v4511_v50 = vrot.slane %v2751_v21, 9  ;;  %v4512_v59 = vrot.slane %v2750_v2, 9  ;;  %v4513_v5 = vrot.slane %v2752_v20, 9  ;;  %v3753_v38 = vmax.f32 %v2743_v12, %v4510_v18 }
 0x1c0   : > { %v3872_v11 = vmax.f32 %v3744_v0, %v3752_v46  ;;  %v4695_v40 = vpack.c.bf16 %v3870_v6, %v3870_v6  ;;  %v4696_v33 = vpack.c.bf16 %v3871_v30, %v3871_v30  ;;  %v4189_v27 = vunpack.c.l.b16 %v4694_v4 }
 0x1c1   : > { %v3754_v23 = vmax.f32 %v2751_v21, %v4511_v50  ;;  %v3755_v57 = vmax.f32 %v2750_v2, %v4512_v59  ;;  %v3756_v34 = vmax.f32 %v2752_v20, %v4513_v5  ;;  %v2702_v35 = vcombine.high %v2622_v32, %v2622_v32 }
 0x1c2   : > { %v4697_v49 = vpack.c.bf16 %v3872_v11, %v3872_v11  ;;  %v4190_v42 = vunpack.c.l.b16 %v4695_v40  ;;  %v4191_v43 = vunpack.c.l.b16 %v4696_v33  ;;  %v2709_v22 = vrot.slane %v2622_v32, %v5728_v48 }
 0x1c3   : > { %v2716_v16 = vrot.slane %v2702_v35, %v5728_v48  ;;  %v2559_v55 = vadd.f32 %v5725_v45, %v2558_v7  ;;  %v2570_v39 = vadd.f32 %v4799_v3, %v5725_v45  ;;  %v2991_v53 = vcombine.high %v2639_v52, %v2639_v52 }
 0x1c4   : > { %v4192_v44 = vunpack.c.l.b16 %v4697_v49  ;;  %v4253_v10 = vrot.slane %v4190_v42, 7  ;;  %v4256_v56 = vrot.slane %v4191_v43, 6  ;;  %v2717_v62 = vcombine.high %v2709_v22, %v2709_v22 }
 0x1c5   : > { %v2718_v60 = vcombine.high %v2716_v16, %v2716_v16  ;;  %v4502_v51 = vrot.slane %v2709_v22, 9  ;;  %v4504_v41 = vrot.slane %v2716_v16, 9  ;;  %v2998_v32 = vrot.slane %v2639_v52, %v5728_v48 }
 0x1c6   : > { %v4255_v61 = vsel %vm4254_vm14, %v4253_v10, %v4189_v27  ;;  %v4259_v1 = vrot.slane %v4192_v44, 5  ;;  %v4503_v9 = vrot.slane %v2717_v62, 9  ;;  %v3005_v36 = vrot.slane %v2991_v53, %v5728_v48 }
 0x1c7   : > { %v4258_v58 = vsel %vm4257_vm15, %v4256_v56, %v4255_v61  ;;  %v4505_v7 = vrot.slane %v2718_v60, 9  ;;  %v3745_v8 = vmax.f32 %v2709_v22, %v4502_v51  ;;  %v3747_v3 = vmax.f32 %v2716_v16, %v4504_v41 }
 0x1c8   : > { %v3746_v12 = vmax.f32 %v2717_v62, %v4503_v9  ;;  %v4261_v47 = vsel %vm4260_vm0, %v4259_v1, %v4258_v58  ;;  %v3006_v13 = vcombine.high %v2998_v32, %v2998_v32  ;;  %v4570_v31 = vrot.slane %v2998_v32, 9 }
 0x1c9   : > { %v3748_v15 = vmax.f32 %v2718_v60, %v4505_v7  ;;  %v3873_v17 = vmax.f32 %v3745_v8, %v3753_v38  ;;  %v3875_v63 = vmax.f32 %v3747_v3, %v3755_v57  ;;  %v3007_v19 = vcombine.high %v3005_v36, %v3005_v36 }
 0x1ca   : > { %v3874_v28 = vmax.f32 %v3746_v12, %v3754_v23  ;;  %v4571_v24 = vrot.slane %v3006_v13, 9  ;;  %v4572_v37 = vrot.slane %v3005_v36, 9  ;;  %v3813_v46 = vmax.f32 %v2998_v32, %v4570_v31 }
 0x1cb   : > { %v3876_v2 = vmax.f32 %v3748_v15, %v3756_v34  ;;  %v4698_v54 = vpack.c.bf16 %v3873_v17, %v3873_v17  ;;  %v4700_v25 = vpack.c.bf16 %v3875_v63, %v3875_v63  ;;  %v4573_v29 = vrot.slane %v3007_v19, 9 }
 0x1cc   : > { %v4699_v26 = vpack.c.bf16 %v3874_v28, %v3874_v28  ;;  %v3814_v21 = vmax.f32 %v3006_v13, %v4571_v24  ;;  %v2637_v6 = vmax.f32 %v2559_v55, 0.0  ;;  %v3815_v4 = vmax.f32 %v3005_v36, %v4572_v37 }
 0x1cd   : > { %v4701_v20 = vpack.c.bf16 %v3876_v2, %v3876_v2  ;;  %v4193_v18 = vunpack.c.l.b16 %v4698_v54  ;;  %v4195_v0 = vunpack.c.l.b16 %v4700_v25  ;;  %v3816_v50 = vmax.f32 %v3007_v19, %v4573_v29 }
 0x1ce   : > { %v4194_v30 = vunpack.c.l.b16 %v4699_v26  ;;  %v2640_v59 = vmax.f32 %v2570_v39, 0.0  ;;  %v2957_v11 = vcombine.high %v2637_v6, %v2637_v6  ;;  %v2562_v40 = vadd.f32 %v5725_v45, %v5739_v14 }
 0x1cf   : > { %v4196_v5 = vunpack.c.l.b16 %v4701_v20  ;;  %v4262_v38 = vrot.slane %v4193_v18, 4  ;;  %v2964_v27 = vrot.slane %v2637_v6, %v5728_v48  ;;  %v4268_v35 = vrot.slane %v4195_v0, 2 }
 0x1d0   : > { %v4265_v33 = vrot.slane %v4194_v30, 3  ;;  %v3008_v23 = vcombine.high %v2640_v59, %v2640_v59  ;;  %v3015_v57 = vrot.slane %v2640_v59, %v5728_v48  ;;  %v2971_v42 = vrot.slane %v2957_v11, %v5728_v48 }
 0x1d1   : > { %v4264_v34 = vsel %vm4263_vm1, %v4262_v38, %v4261_v47  ;;  %v4271_v49 = vrot.slane %v4196_v5, 1  ;;  %v2972_v22 = vcombine.high %v2964_v27, %v2964_v27  ;;  %v4562_v16 = vrot.slane %v2964_v27, 9 }
 0x1d2   : > { %v4267_v43 = vsel %vm4266_vm2, %v4265_v33, %v4264_v34  ;;  %v3022_v52 = vrot.slane %v3008_v23, %v5728_v48  ;;  %v2973_v55 = vcombine.high %v2971_v42, %v2971_v42  ;;  %v4564_v39 = vrot.slane %v2971_v42, 9 }
 0x1d3   : > { %v4270_v14 = vsel %vm4269_vm3, %v4268_v35, %v4267_v43  ;;  %v3023_v44 = vcombine.high %v3015_v57, %v3015_v57  ;;  %v4563_v56 = vrot.slane %v2972_v22, 9  ;;  %v3805_v62 = vmax.f32 %v2964_v27, %v4562_v16 }
 0x1d4   : > { %v4273_v10 = vsel %vm4272_vm4, %v4271_v49, %v4270_v14  ;;  %v2638_v60 = vmax.f32 %v2562_v40, 0.0  ;;  %v4565_v41 = vrot.slane %v2973_v55, 9  ;;  %v3807_v53 = vmax.f32 %v2971_v42, %v4564_v39 }
 0x1d5   : > { %v4372_v51 = vpack.c.b16 %v4273_v10, %v4273_v10  ;;  %v3024_v61 = vcombine.high %v3022_v52, %v3022_v52  ;;  %v3806_v1 = vmax.f32 %v2972_v22, %v4563_v56  ;;  %v3901_v9 = vmax.f32 %v3805_v62, %v3813_v46 }
 0x1d6   : > { %v4574_v32 = vrot.slane %v3015_v57, 9  ;;  %v3808_v58 = vmax.f32 %v2973_v55, %v4565_v41  ;;  %v3903_v7 = vmax.f32 %v3807_v53, %v3815_v4  ;;  %v4575_v8 = vrot.slane %v3023_v44, 9 }
 0x1d7   : > { %4389 = vst.msk [vmem:[%s5764_s8] sm:$0xf] %vm4388_vm5, %v4372_v51  ;;  %v3902_v3 = vmax.f32 %v3806_v1, %v3814_v21  ;;  %v4576_v12 = vrot.slane %v3022_v52, 9  ;;  %v4577_v13 = vrot.slane %v3024_v61, 9  ;;  %v2974_v15 = vcombine.high %v2638_v60, %v2638_v60 }
 0x1d8   : > { %v3904_v47 = vmax.f32 %v3808_v58, %v3816_v50  ;;  %v4728_v36 = vpack.c.bf16 %v3903_v7, %v3903_v7  ;;  %v4726_v17 = vpack.c.bf16 %v3901_v9, %v3901_v9  ;;  %v3817_v31 = vmax.f32 %v3015_v57, %v4574_v32 }
 0x1d9   : > { %v4727_v63 = vpack.c.bf16 %v3902_v3, %v3902_v3  ;;  %v2981_v28 = vrot.slane %v2638_v60, %v5728_v48  ;;  %v3818_v37 = vmax.f32 %v3023_v44, %v4575_v8  ;;  %v2988_v2 = vrot.slane %v2974_v15, %v5728_v48 }
 0x1da   : > { %v4729_v19 = vpack.c.bf16 %v3904_v47, %v3904_v47  ;;  %v4223_v24 = vunpack.c.l.b16 %v4728_v36  ;;  %v3819_v25 = vmax.f32 %v3022_v52, %v4576_v12  ;;  %v4221_v0 = vunpack.c.l.b16 %v4726_v17 }
 0x1db   : > { %v4222_v54 = vunpack.c.l.b16 %v4727_v63  ;;  %v2989_v26 = vcombine.high %v2981_v28, %v2981_v28  ;;  %v4566_v29 = vrot.slane %v2981_v28, 9  ;;  %v2990_v20 = vcombine.high %v2988_v2, %v2988_v2 }
 0x1dc   : > { %v4224_v46 = vunpack.c.l.b16 %v4729_v19  ;;  %v4318_v21 = vrot.slane %v4223_v24, 6  ;;  %v4568_v18 = vrot.slane %v2988_v2, 9  ;;  %v3820_v59 = vmax.f32 %v3024_v61, %v4577_v13 }
 0x1dd   : > { %v4316_v6 = vrot.slane %v4222_v54, 7  ;;  %v4567_v30 = vrot.slane %v2989_v26, 9  ;;  %v3809_v4 = vmax.f32 %v2981_v28, %v4566_v29  ;;  %v4569_v5 = vrot.slane %v2990_v20, 9 }
 0x1de   : > { %v4320_v50 = vrot.slane %v4224_v46, 5  ;;  %v3811_v38 = vmax.f32 %v2988_v2, %v4568_v18 }
 0x1df   : > { %v4317_v11 = vsel %vm4254_vm14, %v4316_v6, %v4221_v0  ;;  %v3810_v40 = vmax.f32 %v2989_v26, %v4567_v30  ;;  %v3905_v33 = vmax.f32 %v3809_v4, %v3817_v31  ;;  %v3812_v23 = vmax.f32 %v2990_v20, %v4569_v5 }
 0x1e0   : > { %v4319_v27 = vsel %vm4257_vm15, %v4318_v21, %v4317_v11  ;;  %v3907_v57 = vmax.f32 %v3811_v38, %v3819_v25 }
 0x1e1   : > { %v3906_v34 = vmax.f32 %v3810_v40, %v3818_v37  ;;  %v4730_v35 = vpack.c.bf16 %v3905_v33, %v3905_v33  ;;  %v4321_v49 = vsel %vm4260_vm0, %v4320_v50, %v4319_v27  ;;  %v3908_v42 = vmax.f32 %v3812_v23, %v3820_v59 }
 0x1e2   : > { %v4732_v43 = vpack.c.bf16 %v3907_v57, %v3907_v57 }
 0x1e3   : > { %v4731_v22 = vpack.c.bf16 %v3906_v34, %v3906_v34  ;;  %v4225_v16 = vunpack.c.l.b16 %v4730_v35  ;;  %v4733_v52 = vpack.c.bf16 %v3908_v42, %v3908_v42 }
 0x1e4   : > { %v4227_v14 = vunpack.c.l.b16 %v4732_v43 }
 0x1e5   : > { %v4226_v55 = vunpack.c.l.b16 %v4731_v22  ;;  %v4322_v39 = vrot.slane %v4225_v16, 4  ;;  %v4228_v44 = vunpack.c.l.b16 %v4733_v52 }
 0x1e6   : > { %v4326_v62 = vrot.slane %v4227_v14, 2 }
 0x1e7   : > { %v4323_v10 = vsel %vm4263_vm1, %v4322_v39, %v4321_v49  ;;  %v4324_v56 = vrot.slane %v4226_v55, 3  ;;  %v4328_v51 = vrot.slane %v4228_v44, 1 }
 0x1e9   : > { %v4325_v60 = vsel %vm4266_vm2, %v4324_v56, %v4323_v10 }
 0x1ea   : > { %v4327_v41 = vsel %vm4269_vm3, %v4326_v62, %v4325_v60 }
 0x1eb   : > { %v4329_v53 = vsel %vm4272_vm4, %v4328_v51, %v4327_v41 }
 0x1ec   : > { %v4376_v61 = vpack.c.b16 %v4329_v53, %v4329_v53 }
 0x1ee   : > { %4393 = vst.msk [vmem:[%s5764_s8 + $0x10] sm:$0xf] %vm4388_vm5, %v4376_v61 }
 0x1f0   : > { %v4786_v1 = vpop.f32.mrb[4].mxu0 }
 0x1f1   : > { %v2519_v9 = vadd.f32 %v4786_v1, %v5725_v45  ;;  %v2510_v32 = vpop.f32.mrb[5].mxu0  ;;  %v4802_v63 = vpop.f32.mrb[4].mxu1 }
 0x1f2   : > { %v2511_v58 = vadd.f32 %v5725_v45, %v2510_v32  ;;  %v4787_v7 = vpop.f32.mrb[6].mxu0  ;;  %v2583_v24 = vadd.f32 %v4802_v63, %v5725_v45  ;;  %v2574_v37 = vpop.f32.mrb[5].mxu1 }
 0x1f3   : > { %v2627_v8 = vmax.f32 %v2519_v9, 0.0  ;;  %v2522_v3 = vadd.f32 %v4787_v7, %v5725_v45  ;;  %v2513_v12 = vpop.f32.mrb[7].mxu0  ;;  %v4803_v29 = vpop.f32.mrb[6].mxu1 }
 0x1f4   : > { %v2625_v47 = vmax.f32 %v2511_v58, 0.0  ;;  %v2514_v36 = vadd.f32 %v5725_v45, %v2513_v12  ;;  %v5790_v0 = vpop.f32.mrb[7].mxu1 }
 0x1f5   : > { %v2787_v13 = vcombine.high %v2627_v8, %v2627_v8  ;;  %v2794_v15 = vrot.slane %v2627_v8, %v5728_v48  ;;  %v2628_v17 = vmax.f32 %v2522_v3, 0.0 }
 0x1f6   : > { %v2753_v31 = vcombine.high %v2625_v47, %v2625_v47  ;;  %v2760_v28 = vrot.slane %v2625_v47, %v5728_v48  ;;  %v2626_v19 = vmax.f32 %v2514_v36, 0.0  ;;  %v2643_v47 = vmax.f32 %v2583_v24, 0.0 }
 0x1f7   : > { %v2801_v2 = vrot.slane %v2787_v13, %v5728_v48  ;;  %v2802_v54 = vcombine.high %v2794_v15, %v2794_v15  ;;  %v4522_v25 = vrot.slane %v2794_v15, 9  ;;  %v2804_v26 = vcombine.high %v2628_v17, %v2628_v17 }
 0x1f8   : > { %v2767_v46 = vrot.slane %v2753_v31, %v5728_v48  ;;  %v2768_v21 = vcombine.high %v2760_v28, %v2760_v28  ;;  %v4514_v20 = vrot.slane %v2760_v28, 9  ;;  %v2811_v18 = vrot.slane %v2628_v17, %v5728_v48 }
 0x1f9   : > { %v2803_v6 = vcombine.high %v2801_v2, %v2801_v2  ;;  %v4523_v30 = vrot.slane %v2802_v54, 9  ;;  %v4524_v4 = vrot.slane %v2801_v2, 9  ;;  %v3765_v50 = vmax.f32 %v2794_v15, %v4522_v25 }
 0x1fa   : > { %v2769_v59 = vcombine.high %v2767_v46, %v2767_v46  ;;  %v4515_v5 = vrot.slane %v2768_v21, 9  ;;  %v4516_v38 = vrot.slane %v2767_v46, 9  ;;  %v3757_v11 = vmax.f32 %v2760_v28, %v4514_v20 }
 0x1fb   : > { %v4525_v40 = vrot.slane %v2803_v6, 9  ;;  %v3766_v33 = vmax.f32 %v2802_v54, %v4523_v30  ;;  %v3767_v27 = vmax.f32 %v2801_v2, %v4524_v4  ;;  %v2818_v23 = vrot.slane %v2804_v26, %v5728_v48 }
 0x1fc   : > { %v4517_v57 = vrot.slane %v2769_v59, 9  ;;  %v3758_v34 = vmax.f32 %v2768_v21, %v4515_v5  ;;  %v3759_v35 = vmax.f32 %v2767_v46, %v4516_v38  ;;  %v3877_v49 = vmax.f32 %v3757_v11, %v3765_v50 }
 0x1fd   : > { %v3768_v42 = vmax.f32 %v2803_v6, %v4525_v40  ;;  %v2819_v43 = vcombine.high %v2811_v18, %v2811_v18  ;;  %v2820_v22 = vcombine.high %v2818_v23, %v2818_v23  ;;  %v4526_v16 = vrot.slane %v2811_v18, 9 }
 0x1fe   : > { %v3760_v52 = vmax.f32 %v2769_v59, %v4517_v57  ;;  %v3878_v14 = vmax.f32 %v3758_v34, %v3766_v33  ;;  %v3879_v55 = vmax.f32 %v3759_v35, %v3767_v27  ;;  %v4702_v39 = vpack.c.bf16 %v3877_v49, %v3877_v49 }
 0x1ff   : > { %v4527_v44 = vrot.slane %v2819_v43, 9  ;;  %v4528_v10 = vrot.slane %v2818_v23, 9  ;;  %v4529_v56 = vrot.slane %v2820_v22, 9  ;;  %v3769_v62 = vmax.f32 %v2811_v18, %v4526_v16 }
 0x200   : > { %v3880_v60 = vmax.f32 %v3760_v52, %v3768_v42  ;;  %v4703_v51 = vpack.c.bf16 %v3878_v14, %v3878_v14  ;;  %v4704_v41 = vpack.c.bf16 %v3879_v55, %v3879_v55  ;;  %v4197_v53 = vunpack.c.l.b16 %v4702_v39 }
 0x201   : > { %v3770_v61 = vmax.f32 %v2819_v43, %v4527_v44  ;;  %v3771_v1 = vmax.f32 %v2818_v23, %v4528_v10  ;;  %v3772_v9 = vmax.f32 %v2820_v22, %v4529_v56  ;;  %v2770_v32 = vcombine.high %v2626_v19, %v2626_v19 }
 0x202   : > { %v4705_v58 = vpack.c.bf16 %v3880_v60, %v3880_v60  ;;  %v4198_v7 = vunpack.c.l.b16 %v4703_v51  ;;  %v4199_v8 = vunpack.c.l.b16 %v4704_v41  ;;  %v2777_v3 = vrot.slane %v2626_v19, %v5728_v48 }
 0x203   : > { %v2784_v12 = vrot.slane %v2770_v32, %v5728_v48  ;;  %v2575_v36 = vadd.f32 %v5725_v45, %v2574_v37  ;;  %v2586_v13 = vadd.f32 %v4803_v29, %v5725_v45  ;;  %v3059_v25 = vcombine.high %v2643_v47, %v2643_v47 }
 0x204   : > { %v4200_v15 = vunpack.c.l.b16 %v4705_v58  ;;  %v4274_v17 = vrot.slane %v4198_v7, 7  ;;  %v4276_v63 = vrot.slane %v4199_v8, 6  ;;  %v2785_v31 = vcombine.high %v2777_v3, %v2777_v3 }
 0x205   : > { %v2786_v28 = vcombine.high %v2784_v12, %v2784_v12  ;;  %v4518_v2 = vrot.slane %v2777_v3, 9  ;;  %v4520_v54 = vrot.slane %v2784_v12, 9  ;;  %v3066_v19 = vrot.slane %v2643_v47, %v5728_v48 }
 0x206   : > { %v4275_v26 = vsel %vm4254_vm14, %v4274_v17, %v4197_v53  ;;  %v4278_v46 = vrot.slane %v4200_v15, 5  ;;  %v4519_v21 = vrot.slane %v2785_v31, 9  ;;  %v3073_v30 = vrot.slane %v3059_v25, %v5728_v48 }
 0x207   : > { %v4277_v24 = vsel %vm4257_vm15, %v4276_v63, %v4275_v26  ;;  %v4521_v20 = vrot.slane %v2786_v28, 9  ;;  %v3761_v37 = vmax.f32 %v2777_v3, %v4518_v2  ;;  %v3763_v18 = vmax.f32 %v2784_v12, %v4520_v54 }
 0x208   : > { %v3762_v29 = vmax.f32 %v2785_v31, %v4519_v21  ;;  %v4279_v6 = vsel %vm4260_vm0, %v4278_v46, %v4277_v24  ;;  %v3074_v4 = vcombine.high %v3066_v19, %v3066_v19  ;;  %v4586_v38 = vrot.slane %v3066_v19, 9 }
 0x209   : > { %v3764_v50 = vmax.f32 %v2786_v28, %v4521_v20  ;;  %v3881_v59 = vmax.f32 %v3761_v37, %v3769_v62  ;;  %v3883_v5 = vmax.f32 %v3763_v18, %v3771_v1  ;;  %v3075_v40 = vcombine.high %v3073_v30, %v3073_v30 }
 0x20a   : > { %v3882_v11 = vmax.f32 %v3762_v29, %v3770_v61  ;;  %v4587_v33 = vrot.slane %v3074_v4, 9  ;;  %v4588_v27 = vrot.slane %v3073_v30, 9  ;;  %v3829_v42 = vmax.f32 %v3066_v19, %v4586_v38 }
 0x20b   : > { %v3884_v23 = vmax.f32 %v3764_v50, %v3772_v9  ;;  %v4706_v57 = vpack.c.bf16 %v3881_v59, %v3881_v59  ;;  %v4708_v34 = vpack.c.bf16 %v3883_v5, %v3883_v5  ;;  %v4589_v49 = vrot.slane %v3075_v40, 9 }
 0x20c   : > { %v4707_v35 = vpack.c.bf16 %v3882_v11, %v3882_v11  ;;  %v3830_v43 = vmax.f32 %v3074_v4, %v4587_v33  ;;  %v2641_v14 = vmax.f32 %v2575_v36, 0.0  ;;  %v3831_v39 = vmax.f32 %v3073_v30, %v4588_v27 }
 0x20d   : > { %v4709_v22 = vpack.c.bf16 %v3884_v23, %v3884_v23  ;;  %v4201_v16 = vunpack.c.l.b16 %v4706_v57  ;;  %v4203_v52 = vunpack.c.l.b16 %v4708_v34  ;;  %v3832_v44 = vmax.f32 %v3075_v40, %v4589_v49 }
 0x20e   : > { %v4202_v55 = vunpack.c.l.b16 %v4707_v35  ;;  %v2644_v10 = vmax.f32 %v2586_v13, 0.0  ;;  %v3025_v60 = vcombine.high %v2641_v14, %v2641_v14  ;;  %v2578_v51 = vadd.f32 %v5725_v45, %v5790_v0 }
 0x20f   : > { %v4204_v56 = vunpack.c.l.b16 %v4709_v22  ;;  %v4280_v62 = vrot.slane %v4201_v16, 4  ;;  %v3032_v53 = vrot.slane %v2641_v14, %v5728_v48  ;;  %v4284_v32 = vrot.slane %v4203_v52, 2 }
 0x210   : > { %v4282_v41 = vrot.slane %v4202_v55, 3  ;;  %v3076_v61 = vcombine.high %v2644_v10, %v2644_v10  ;;  %v3083_v1 = vrot.slane %v2644_v10, %v5728_v48  ;;  %v3039_v7 = vrot.slane %v3025_v60, %v5728_v48 }
 0x211   : > { %v4281_v9 = vsel %vm4263_vm1, %v4280_v62, %v4279_v6  ;;  %v4286_v58 = vrot.slane %v4204_v56, 1  ;;  %v3040_v3 = vcombine.high %v3032_v53, %v3032_v53  ;;  %v4578_v12 = vrot.slane %v3032_v53, 9 }
 0x212   : > { %v4283_v8 = vsel %vm4266_vm2, %v4282_v41, %v4281_v9  ;;  %v3090_v47 = vrot.slane %v3076_v61, %v5728_v48  ;;  %v3041_v36 = vcombine.high %v3039_v7, %v3039_v7  ;;  %v4580_v13 = vrot.slane %v3039_v7, 9 }
 0x213   : > { %v4285_v0 = vsel %vm4269_vm3, %v4284_v32, %v4283_v8  ;;  %v3091_v15 = vcombine.high %v3083_v1, %v3083_v1  ;;  %v4579_v63 = vrot.slane %v3040_v3, 9  ;;  %v3821_v31 = vmax.f32 %v3032_v53, %v4578_v12 }
 0x214   : > { %v4287_v17 = vsel %vm4272_vm4, %v4286_v58, %v4285_v0  ;;  %v2642_v28 = vmax.f32 %v2578_v51, 0.0  ;;  %v4581_v54 = vrot.slane %v3041_v36, 9  ;;  %v3823_v25 = vmax.f32 %v3039_v7, %v4580_v13 }
 0x215   : > { %v4373_v2 = vpack.c.b16 %v4287_v17, %v4287_v17  ;;  %v3092_v26 = vcombine.high %v3090_v47, %v3090_v47  ;;  %v3822_v46 = vmax.f32 %v3040_v3, %v4579_v63  ;;  %v3909_v21 = vmax.f32 %v3821_v31, %v3829_v42 }
 0x216   : > { %v4590_v19 = vrot.slane %v3083_v1, 9  ;;  %v3824_v24 = vmax.f32 %v3041_v36, %v4581_v54  ;;  %v3911_v20 = vmax.f32 %v3823_v25, %v3831_v39  ;;  %v4591_v37 = vrot.slane %v3091_v15, 9 }
 0x217   : > { %4390 = vst.msk [vmem:[%s5764_s8 + $0x4] sm:$0xf] %vm4388_vm5, %v4373_v2  ;;  %v3910_v18 = vmax.f32 %v3822_v46, %v3830_v43  ;;  %v4592_v29 = vrot.slane %v3090_v47, 9  ;;  %v4593_v4 = vrot.slane %v3092_v26, 9  ;;  %v3042_v50 = vcombine.high %v2642_v28, %v2642_v28 }
 0x218   : > { %v3912_v6 = vmax.f32 %v3824_v24, %v3832_v44  ;;  %v4736_v30 = vpack.c.bf16 %v3911_v20, %v3911_v20  ;;  %v4734_v59 = vpack.c.bf16 %v3909_v21, %v3909_v21  ;;  %v3833_v38 = vmax.f32 %v3083_v1, %v4590_v19 }
 0x219   : > { %v4735_v5 = vpack.c.bf16 %v3910_v18, %v3910_v18  ;;  %v3049_v11 = vrot.slane %v2642_v28, %v5728_v48  ;;  %v3834_v27 = vmax.f32 %v3091_v15, %v4591_v37  ;;  %v3056_v23 = vrot.slane %v3042_v50, %v5728_v48 }
 0x21a   : > { %v4737_v40 = vpack.c.bf16 %v3912_v6, %v3912_v6  ;;  %v4231_v33 = vunpack.c.l.b16 %v4736_v30  ;;  %v3835_v34 = vmax.f32 %v3090_v47, %v4592_v29  ;;  %v4229_v52 = vunpack.c.l.b16 %v4734_v59 }
 0x21b   : > { %v4230_v57 = vunpack.c.l.b16 %v4735_v5  ;;  %v3057_v35 = vcombine.high %v3049_v11, %v3049_v11  ;;  %v4582_v49 = vrot.slane %v3049_v11, 9  ;;  %v3058_v22 = vcombine.high %v3056_v23, %v3056_v23 }
 0x21c   : > { %v4232_v42 = vunpack.c.l.b16 %v4737_v40  ;;  %v4332_v43 = vrot.slane %v4231_v33, 6  ;;  %v4584_v16 = vrot.slane %v3056_v23, 9  ;;  %v3836_v10 = vmax.f32 %v3092_v26, %v4593_v4 }
 0x21d   : > { %v4330_v14 = vrot.slane %v4230_v57, 7  ;;  %v4583_v55 = vrot.slane %v3057_v35, 9  ;;  %v3825_v39 = vmax.f32 %v3049_v11, %v4582_v49  ;;  %v4585_v56 = vrot.slane %v3058_v22, 9 }
 0x21e   : > { %v4334_v44 = vrot.slane %v4232_v42, 5  ;;  %v3827_v62 = vmax.f32 %v3056_v23, %v4584_v16 }
 0x21f   : > { %v4331_v60 = vsel %vm4254_vm14, %v4330_v14, %v4229_v52  ;;  %v3826_v51 = vmax.f32 %v3057_v35, %v4583_v55  ;;  %v3913_v41 = vmax.f32 %v3825_v39, %v3833_v38  ;;  %v3828_v61 = vmax.f32 %v3058_v22, %v4585_v56 }
 0x220   : > { %v4333_v53 = vsel %vm4257_vm15, %v4332_v43, %v4331_v60  ;;  %v3915_v1 = vmax.f32 %v3827_v62, %v3835_v34 }
 0x221   : > { %v3914_v9 = vmax.f32 %v3826_v51, %v3834_v27  ;;  %v4738_v32 = vpack.c.bf16 %v3913_v41, %v3913_v41  ;;  %v4335_v58 = vsel %vm4260_vm0, %v4334_v44, %v4333_v53  ;;  %v3916_v7 = vmax.f32 %v3828_v61, %v3836_v10 }
 0x222   : > { %v4740_v8 = vpack.c.bf16 %v3915_v1, %v3915_v1 }
 0x223   : > { %v4739_v3 = vpack.c.bf16 %v3914_v9, %v3914_v9  ;;  %v4233_v12 = vunpack.c.l.b16 %v4738_v32  ;;  %v4741_v47 = vpack.c.bf16 %v3916_v7, %v3916_v7 }
 0x224   : > { %v4235_v0 = vunpack.c.l.b16 %v4740_v8 }
 0x225   : > { %v4234_v36 = vunpack.c.l.b16 %v4739_v3  ;;  %v4336_v13 = vrot.slane %v4233_v12, 4  ;;  %v4236_v15 = vunpack.c.l.b16 %v4741_v47 }
 0x226   : > { %v4340_v31 = vrot.slane %v4235_v0, 2 }
 0x227   : > { %v4337_v17 = vsel %vm4263_vm1, %v4336_v13, %v4335_v58  ;;  %v4338_v63 = vrot.slane %v4234_v36, 3  ;;  %v4342_v2 = vrot.slane %v4236_v15, 1 }
 0x229   : > { %v4339_v28 = vsel %vm4266_vm2, %v4338_v63, %v4337_v17 }
 0x22a   : > { %v4341_v54 = vsel %vm4269_vm3, %v4340_v31, %v4339_v28 }
 0x22b   : > { %v4343_v25 = vsel %vm4272_vm4, %v4342_v2, %v4341_v54 }
 0x22c   : > { %v4377_v26 = vpack.c.b16 %v4343_v25, %v4343_v25 }
 0x22e   : > { %4394 = vst.msk [vmem:[%s5764_s8 + $0x14] sm:$0xf] %vm4388_vm5, %v4377_v26 }
 0x230   : > { %v4790_v46 = vpop.f32.mrb[8].mxu0 }
 0x231   : > { %v2535_v21 = vadd.f32 %v4790_v46, %v5725_v45  ;;  %v2526_v19 = vpop.f32.mrb[9].mxu0  ;;  %v4806_v5 = vpop.f32.mrb[8].mxu1 }
 0x232   : > { %v2527_v24 = vadd.f32 %v5725_v45, %v2526_v19  ;;  %v4791_v20 = vpop.f32.mrb[10].mxu0  ;;  %v2599_v33 = vadd.f32 %v4806_v5, %v5725_v45  ;;  %v2590_v27 = vpop.f32.mrb[9].mxu1 }
 0x233   : > { %v2631_v37 = vmax.f32 %v2535_v21, 0.0  ;;  %v2538_v18 = vadd.f32 %v4791_v20, %v5725_v45  ;;  %v2529_v29 = vpop.f32.mrb[11].mxu0  ;;  %v4807_v49 = vpop.f32.mrb[10].mxu1 }
 0x234   : > { %v2629_v6 = vmax.f32 %v2527_v24, 0.0  ;;  %v2530_v30 = vadd.f32 %v5725_v45, %v2529_v29  ;;  %v5835_v52 = vpop.f32.mrb[11].mxu1 }
 0x235   : > { %v2855_v4 = vcombine.high %v2631_v37, %v2631_v37  ;;  %v2862_v50 = vrot.slane %v2631_v37, %v5728_v48  ;;  %v2632_v59 = vmax.f32 %v2538_v18, 0.0 }
 0x236   : > { %v2821_v38 = vcombine.high %v2629_v6, %v2629_v6  ;;  %v2828_v11 = vrot.slane %v2629_v6, %v5728_v48  ;;  %v2630_v40 = vmax.f32 %v2530_v30, 0.0  ;;  %v2647_v6 = vmax.f32 %v2599_v33, 0.0 }
 0x237   : > { %v2869_v23 = vrot.slane %v2855_v4, %v5728_v48  ;;  %v2870_v57 = vcombine.high %v2862_v50, %v2862_v50  ;;  %v4538_v34 = vrot.slane %v2862_v50, 9  ;;  %v2872_v35 = vcombine.high %v2632_v59, %v2632_v59 }
 0x238   : > { %v2835_v42 = vrot.slane %v2821_v38, %v5728_v48  ;;  %v2836_v43 = vcombine.high %v2828_v11, %v2828_v11  ;;  %v4530_v22 = vrot.slane %v2828_v11, 9  ;;  %v2879_v16 = vrot.slane %v2632_v59, %v5728_v48 }
 0x239   : > { %v2871_v14 = vcombine.high %v2869_v23, %v2869_v23  ;;  %v4539_v55 = vrot.slane %v2870_v57, 9  ;;  %v4540_v39 = vrot.slane %v2869_v23, 9  ;;  %v3781_v44 = vmax.f32 %v2862_v50, %v4538_v34 }
 0x23a   : > { %v2837_v10 = vcombine.high %v2835_v42, %v2835_v42  ;;  %v4531_v56 = vrot.slane %v2836_v43, 9  ;;  %v4532_v62 = vrot.slane %v2835_v42, 9  ;;  %v3773_v60 = vmax.f32 %v2828_v11, %v4530_v22 }
 0x23b   : > { %v4541_v51 = vrot.slane %v2871_v14, 9  ;;  %v3782_v41 = vmax.f32 %v2870_v57, %v4539_v55  ;;  %v3783_v53 = vmax.f32 %v2869_v23, %v4540_v39  ;;  %v2886_v61 = vrot.slane %v2872_v35, %v5728_v48 }
 0x23c   : > { %v4533_v1 = vrot.slane %v2837_v10, 9  ;;  %v3774_v9 = vmax.f32 %v2836_v43, %v4531_v56  ;;  %v3775_v32 = vmax.f32 %v2835_v42, %v4532_v62  ;;  %v3885_v58 = vmax.f32 %v3773_v60, %v3781_v44 }
 0x23d   : > { %v3784_v7 = vmax.f32 %v2871_v14, %v4541_v51  ;;  %v2887_v8 = vcombine.high %v2879_v16, %v2879_v16  ;;  %v2888_v3 = vcombine.high %v2886_v61, %v2886_v61  ;;  %v4542_v12 = vrot.slane %v2879_v16, 9 }
 0x23e   : > { %v3776_v47 = vmax.f32 %v2837_v10, %v4533_v1  ;;  %v3886_v0 = vmax.f32 %v3774_v9, %v3782_v41  ;;  %v3887_v36 = vmax.f32 %v3775_v32, %v3783_v53  ;;  %v4710_v13 = vpack.c.bf16 %v3885_v58, %v3885_v58 }
 0x23f   : > { %v4543_v15 = vrot.slane %v2887_v8, 9  ;;  %v4544_v17 = vrot.slane %v2886_v61, 9  ;;  %v4545_v63 = vrot.slane %v2888_v3, 9  ;;  %v3785_v31 = vmax.f32 %v2879_v16, %v4542_v12 }
 0x240   : > { %v3888_v28 = vmax.f32 %v3776_v47, %v3784_v7  ;;  %v4711_v2 = vpack.c.bf16 %v3886_v0, %v3886_v0  ;;  %v4712_v54 = vpack.c.bf16 %v3887_v36, %v3887_v36  ;;  %v4205_v25 = vunpack.c.l.b16 %v4710_v13 }
 0x241   : > { %v3786_v26 = vmax.f32 %v2887_v8, %v4543_v15  ;;  %v3787_v46 = vmax.f32 %v2886_v61, %v4544_v17  ;;  %v3788_v21 = vmax.f32 %v2888_v3, %v4545_v63  ;;  %v2838_v19 = vcombine.high %v2630_v40, %v2630_v40 }
 0x242   : > { %v4713_v24 = vpack.c.bf16 %v3888_v28, %v3888_v28  ;;  %v4206_v20 = vunpack.c.l.b16 %v4711_v2  ;;  %v4207_v37 = vunpack.c.l.b16 %v4712_v54  ;;  %v2845_v18 = vrot.slane %v2630_v40, %v5728_v48  ;;  %v5850_v28 = vld [vmem:[%s5925_s2] ss:$0 sm:$0xff] }
 0x243   : > { %v2852_v29 = vrot.slane %v2838_v19, %v5728_v48  ;;  %v2591_v30 = vadd.f32 %v5725_v45, %v2590_v27  ;;  %v2602_v4 = vadd.f32 %v4807_v49, %v5725_v45  ;;  %v3127_v34 = vcombine.high %v2647_v6, %v2647_v6 }
 0x244   : > { %v4208_v50 = vunpack.c.l.b16 %v4713_v24  ;;  %v4288_v59 = vrot.slane %v4206_v20, 7  ;;  %v4290_v5 = vrot.slane %v4207_v37, 6  ;;  %v2853_v38 = vcombine.high %v2845_v18, %v2845_v18 }
 0x245   : > { %v2854_v11 = vcombine.high %v2852_v29, %v2852_v29  ;;  %v4534_v23 = vrot.slane %v2845_v18, 9  ;;  %v4536_v57 = vrot.slane %v2852_v29, 9  ;;  %v3134_v40 = vrot.slane %v2647_v6, %v5728_v48 }
 0x246   : > { %v4289_v35 = vsel %vm4254_vm14, %v4288_v59, %v4205_v25  ;;  %v4292_v42 = vrot.slane %v4208_v50, 5  ;;  %v4535_v43 = vrot.slane %v2853_v38, 9  ;;  %v3141_v14 = vrot.slane %v3127_v34, %v5728_v48 }
 0x247   : > { %v4291_v33 = vsel %vm4257_vm15, %v4290_v5, %v4289_v35  ;;  %v4537_v22 = vrot.slane %v2854_v11, 9  ;;  %v3777_v27 = vmax.f32 %v2845_v18, %v4534_v23  ;;  %v3779_v16 = vmax.f32 %v2852_v29, %v4536_v57 }
 0x248   : > { %v3778_v45 = vmax.f32 %v2853_v38, %v4535_v43  ;;  %v4293_v49 = vsel %vm4260_vm0, %v4292_v42, %v4291_v33  ;;  %v3142_v55 = vcombine.high %v3134_v40, %v3134_v40  ;;  %v4602_v56 = vrot.slane %v3134_v40, 9 }
 0x249   : > { %v3780_v39 = vmax.f32 %v2854_v11, %v4537_v22  ;;  %v3889_v44 = vmax.f32 %v3777_v27, %v3785_v31  ;;  %v3891_v10 = vmax.f32 %v3779_v16, %v3787_v46  ;;  %v3143_v60 = vcombine.high %v3141_v14, %v3141_v14 }
 0x24a   : > { %v3890_v62 = vmax.f32 %v3778_v45, %v3786_v26  ;;  %v4603_v51 = vrot.slane %v3142_v55, 9  ;;  %v4604_v41 = vrot.slane %v3141_v14, 9  ;;  %v3845_v58 = vmax.f32 %v3134_v40, %v4602_v56 }
 0x24b   : > { %v3892_v53 = vmax.f32 %v3780_v39, %v3788_v21  ;;  %v4714_v61 = vpack.c.bf16 %v3889_v44, %v3889_v44  ;;  %v4716_v1 = vpack.c.bf16 %v3891_v10, %v3891_v10  ;;  %v4605_v32 = vrot.slane %v3143_v60, 9 }
 0x24c   : > { %v4715_v9 = vpack.c.bf16 %v3890_v62, %v3890_v62  ;;  %v3846_v7 = vmax.f32 %v3142_v55, %v4603_v51  ;;  %v2645_v47 = vmax.f32 %v2591_v30, 0.0  ;;  %v3847_v36 = vmax.f32 %v3141_v14, %v4604_v41 }
 0x24d   : > { %v4717_v8 = vpack.c.bf16 %v3892_v53, %v3892_v53  ;;  %v4209_v3 = vunpack.c.l.b16 %v4714_v61  ;;  %v4211_v12 = vunpack.c.l.b16 %v4716_v1  ;;  %v3848_v13 = vmax.f32 %v3143_v60, %v4605_v32 }
 0x24e   : > { %v4210_v0 = vunpack.c.l.b16 %v4715_v9  ;;  %v2648_v15 = vmax.f32 %v2602_v4, 0.0  ;;  %v3093_v31 = vcombine.high %v2645_v47, %v2645_v47  ;;  %v2594_v2 = vadd.f32 %v5850_v28, %v5835_v52 }
 0x24f   : > { %v4212_v17 = vunpack.c.l.b16 %v4717_v8  ;;  %v4294_v63 = vrot.slane %v4209_v3, 4  ;;  %v3100_v25 = vrot.slane %v2645_v47, %v5728_v48  ;;  %v4298_v19 = vrot.slane %v4211_v12, 2 }
 0x250   : > { %v4296_v54 = vrot.slane %v4210_v0, 3  ;;  %v3144_v26 = vcombine.high %v2648_v15, %v2648_v15  ;;  %v3151_v46 = vrot.slane %v2648_v15, %v5728_v48  ;;  %v3107_v20 = vrot.slane %v3093_v31, %v5728_v48 }
 0x251   : > { %v4295_v21 = vsel %vm4263_vm1, %v4294_v63, %v4293_v49  ;;  %v4300_v24 = vrot.slane %v4212_v17, 1  ;;  %v3108_v18 = vcombine.high %v3100_v25, %v3100_v25  ;;  %v4594_v29 = vrot.slane %v3100_v25, 9 }
 0x252   : > { %v4297_v37 = vsel %vm4266_vm2, %v4296_v54, %v4295_v21  ;;  %v3158_v6 = vrot.slane %v3144_v26, %v5728_v48  ;;  %v3109_v30 = vcombine.high %v3107_v20, %v3107_v20  ;;  %v4596_v4 = vrot.slane %v3107_v20, 9 }
 0x253   : > { %v4299_v52 = vsel %vm4269_vm3, %v4298_v19, %v4297_v37  ;;  %v3159_v50 = vcombine.high %v3151_v46, %v3151_v46  ;;  %v4595_v5 = vrot.slane %v3108_v18, 9  ;;  %v3837_v38 = vmax.f32 %v3100_v25, %v4594_v29 }
 0x254   : > { %v4301_v59 = vsel %vm4272_vm4, %v4300_v24, %v4299_v52  ;;  %v2646_v11 = vmax.f32 %v2594_v2, 0.0  ;;  %v4597_v57 = vrot.slane %v3109_v30, 9  ;;  %v3839_v34 = vmax.f32 %v3107_v20, %v4596_v4 }
 0x255   : > { %v4374_v23 = vpack.c.b16 %v4301_v59, %v4301_v59  ;;  %v3160_v35 = vcombine.high %v3158_v6, %v3158_v6  ;;  %v3838_v42 = vmax.f32 %v3108_v18, %v4595_v5  ;;  %v3917_v43 = vmax.f32 %v3837_v38, %v3845_v58 }
 0x256   : > { %v4606_v40 = vrot.slane %v3151_v46, 9  ;;  %v3840_v33 = vmax.f32 %v3109_v30, %v4597_v57  ;;  %v3919_v22 = vmax.f32 %v3839_v34, %v3847_v36  ;;  %v4607_v27 = vrot.slane %v3159_v50, 9 }
 0x257   : > { %4391 = vst.msk [vmem:[%s5764_s8 + $0x8] sm:$0xf] %vm4388_vm5, %v4374_v23  ;;  %v3918_v16 = vmax.f32 %v3838_v42, %v3846_v7  ;;  %v4608_v45 = vrot.slane %v3158_v6, 9  ;;  %v4609_v55 = vrot.slane %v3160_v35, 9  ;;  %v3110_v39 = vcombine.high %v2646_v11, %v2646_v11 }
 0x258   : > { %v3920_v49 = vmax.f32 %v3840_v33, %v3848_v13  ;;  %v4744_v14 = vpack.c.bf16 %v3919_v22, %v3919_v22  ;;  %v4742_v44 = vpack.c.bf16 %v3917_v43, %v3917_v43  ;;  %v3849_v56 = vmax.f32 %v3151_v46, %v4606_v40 }
 0x259   : > { %v4743_v10 = vpack.c.bf16 %v3918_v16, %v3918_v16  ;;  %v3117_v62 = vrot.slane %v2646_v11, %v5728_v48  ;;  %v3850_v41 = vmax.f32 %v3159_v50, %v4607_v27  ;;  %v3124_v53 = vrot.slane %v3110_v39, %v5728_v48 }
 0x25a   : > { %v4745_v60 = vpack.c.bf16 %v3920_v49, %v3920_v49  ;;  %v4239_v51 = vunpack.c.l.b16 %v4744_v14  ;;  %v3851_v1 = vmax.f32 %v3158_v6, %v4608_v45  ;;  %v4237_v12 = vunpack.c.l.b16 %v4742_v44 }
 0x25b   : > { %v4238_v61 = vunpack.c.l.b16 %v4743_v10  ;;  %v3125_v9 = vcombine.high %v3117_v62, %v3117_v62  ;;  %v4598_v32 = vrot.slane %v3117_v62, 9  ;;  %v3126_v8 = vcombine.high %v3124_v53, %v3124_v53 }
 0x25c   : > { %v4240_v58 = vunpack.c.l.b16 %v4745_v60  ;;  %v4346_v7 = vrot.slane %v4239_v51, 6  ;;  %v4600_v3 = vrot.slane %v3124_v53, 9  ;;  %v3852_v15 = vmax.f32 %v3160_v35, %v4609_v55 }
 0x25d   : > { %v4344_v47 = vrot.slane %v4238_v61, 7  ;;  %v4599_v0 = vrot.slane %v3125_v9, 9  ;;  %v3841_v36 = vmax.f32 %v3117_v62, %v4598_v32  ;;  %v4601_v17 = vrot.slane %v3126_v8, 9 }
 0x25e   : > { %v4348_v13 = vrot.slane %v4240_v58, 5  ;;  %v3843_v63 = vmax.f32 %v3124_v53, %v4600_v3 }
 0x25f   : > { %v4345_v31 = vsel %vm4254_vm14, %v4344_v47, %v4237_v12  ;;  %v3842_v2 = vmax.f32 %v3125_v9, %v4599_v0  ;;  %v3921_v54 = vmax.f32 %v3841_v36, %v3849_v56  ;;  %v3844_v26 = vmax.f32 %v3126_v8, %v4601_v17 }
 0x260   : > { %v4347_v25 = vsel %vm4257_vm15, %v4346_v7, %v4345_v31  ;;  %v3923_v46 = vmax.f32 %v3843_v63, %v3851_v1 }
 0x261   : > { %v3922_v21 = vmax.f32 %v3842_v2, %v3850_v41  ;;  %v4746_v19 = vpack.c.bf16 %v3921_v54, %v3921_v54  ;;  %v4349_v24 = vsel %vm4260_vm0, %v4348_v13, %v4347_v25  ;;  %v3924_v20 = vmax.f32 %v3844_v26, %v3852_v15 }
 0x262   : > { %v4748_v37 = vpack.c.bf16 %v3923_v46, %v3923_v46 }
 0x263   : > { %v4747_v18 = vpack.c.bf16 %v3922_v21, %v3922_v21  ;;  %v4241_v29 = vunpack.c.l.b16 %v4746_v19  ;;  %v4749_v6 = vpack.c.bf16 %v3924_v20, %v3924_v20 }
 0x264   : > { %v4243_v52 = vunpack.c.l.b16 %v4748_v37 }
 0x265   : > { %v4242_v30 = vunpack.c.l.b16 %v4747_v18  ;;  %v4350_v4 = vrot.slane %v4241_v29, 4  ;;  %v4244_v50 = vunpack.c.l.b16 %v4749_v6 }
 0x266   : > { %v4354_v38 = vrot.slane %v4243_v52, 2 }
 0x267   : > { %v4351_v59 = vsel %vm4263_vm1, %v4350_v4, %v4349_v24  ;;  %v4352_v5 = vrot.slane %v4242_v30, 3  ;;  %v4356_v23 = vrot.slane %v4244_v50, 1 }
 0x269   : > { %v4353_v11 = vsel %vm4266_vm2, %v4352_v5, %v4351_v59 }
 0x26a   : > { %v4355_v57 = vsel %vm4269_vm3, %v4354_v38, %v4353_v11 }
 0x26b   : > { %v4357_v34 = vsel %vm4272_vm4, %v4356_v23, %v4355_v57 }
 0x26c   : > { %v4794_v35 = vpop.f32.mrb[12].mxu0  ;;  %v4378_v42 = vpack.c.b16 %v4357_v34, %v4357_v34 }
 0x26d   : > { %v2551_v43 = vadd.f32 %v5850_v28, %v4794_v35  ;;  %v2542_v40 = vpop.f32.mrb[13].mxu0  ;;  %v4810_v10 = vpop.f32.mrb[12].mxu1 }
 0x26e   : > { %v2543_v33 = vadd.f32 %v5850_v28, %v2542_v40  ;;  %v4795_v22 = vpop.f32.mrb[14].mxu0  ;;  %4395 = vst.msk [vmem:[%s5764_s8 + $0x18] sm:$0xf] %vm4388_vm5, %v4378_v42  ;;  %v2615_v51 = vadd.f32 %v5850_v28, %v4810_v10  ;;  %v2606_v41 = vpop.f32.mrb[13].mxu1 }
 0x26f   : > { %v2635_v27 = vmax.f32 %v2551_v43, 0.0  ;;  %v2554_v16 = vadd.f32 %v5850_v28, %v4795_v22  ;;  %v2545_v45 = vpop.f32.mrb[15].mxu0  ;;  %v4811_v32 = vpop.f32.mrb[14].mxu1 }
 0x270   : > { %v2633_v49 = vmax.f32 %v2543_v33, 0.0  ;;  %v2546_v14 = vadd.f32 %v5850_v28, %v2545_v45  ;;  %v5885_v12 = vpop.f32.mrb[15].mxu1 }
 0x271   : > { %v2923_v55 = vcombine.high %v2635_v27, %v2635_v27  ;;  %v2930_v39 = vrot.slane %v2635_v27, %v5728_v48  ;;  %v2636_v44 = vmax.f32 %v2554_v16, 0.0 }
 0x272   : > { %v2889_v56 = vcombine.high %v2633_v49, %v2633_v49  ;;  %v2896_v62 = vrot.slane %v2633_v49, %v5728_v48  ;;  %v2634_v60 = vmax.f32 %v2546_v14, 0.0  ;;  %v2651_v49 = vmax.f32 %v2615_v51, 0.0 }
 0x273   : > { %v2937_v53 = vrot.slane %v2923_v55, %v5728_v48  ;;  %v2938_v61 = vcombine.high %v2930_v39, %v2930_v39  ;;  %v4554_v1 = vrot.slane %v2930_v39, 9  ;;  %v2940_v9 = vcombine.high %v2636_v44, %v2636_v44 }
 0x274   : > { %v2903_v58 = vrot.slane %v2889_v56, %v5728_v48  ;;  %v2904_v7 = vcombine.high %v2896_v62, %v2896_v62  ;;  %v4546_v8 = vrot.slane %v2896_v62, 9  ;;  %v2947_v3 = vrot.slane %v2636_v44, %v5728_v48 }
 0x275   : > { %v2939_v47 = vcombine.high %v2937_v53, %v2937_v53  ;;  %v4555_v0 = vrot.slane %v2938_v61, 9  ;;  %v4556_v36 = vrot.slane %v2937_v53, 9  ;;  %v3797_v13 = vmax.f32 %v2930_v39, %v4554_v1 }
 0x276   : > { %v2905_v15 = vcombine.high %v2903_v58, %v2903_v58  ;;  %v4547_v17 = vrot.slane %v2904_v7, 9  ;;  %v4548_v63 = vrot.slane %v2903_v58, 9  ;;  %v3789_v31 = vmax.f32 %v2896_v62, %v4546_v8 }
 0x277   : > { %v4557_v2 = vrot.slane %v2939_v47, 9  ;;  %v3798_v54 = vmax.f32 %v2938_v61, %v4555_v0  ;;  %v3799_v25 = vmax.f32 %v2937_v53, %v4556_v36  ;;  %v2954_v26 = vrot.slane %v2940_v9, %v5728_v48 }
 0x278   : > { %v4549_v46 = vrot.slane %v2905_v15, 9  ;;  %v3790_v21 = vmax.f32 %v2904_v7, %v4547_v17  ;;  %v3791_v19 = vmax.f32 %v2903_v58, %v4548_v63  ;;  %v3893_v24 = vmax.f32 %v3789_v31, %v3797_v13 }
 0x279   : > { %v3800_v20 = vmax.f32 %v2939_v47, %v4557_v2  ;;  %v2955_v37 = vcombine.high %v2947_v3, %v2947_v3  ;;  %v2956_v18 = vcombine.high %v2954_v26, %v2954_v26  ;;  %v4558_v29 = vrot.slane %v2947_v3, 9 }
 0x27a   : > { %v3792_v6 = vmax.f32 %v2905_v15, %v4549_v46  ;;  %v3894_v52 = vmax.f32 %v3790_v21, %v3798_v54  ;;  %v3895_v30 = vmax.f32 %v3791_v19, %v3799_v25  ;;  %v4718_v4 = vpack.c.bf16 %v3893_v24, %v3893_v24 }
 0x27b   : > { %v4559_v50 = vrot.slane %v2955_v37, 9  ;;  %v4560_v59 = vrot.slane %v2954_v26, 9  ;;  %v4561_v5 = vrot.slane %v2956_v18, 9  ;;  %v3801_v38 = vmax.f32 %v2947_v3, %v4558_v29 }
 0x27c   : > { %v3896_v11 = vmax.f32 %v3792_v6, %v3800_v20  ;;  %v4719_v23 = vpack.c.bf16 %v3894_v52, %v3894_v52  ;;  %v4720_v57 = vpack.c.bf16 %v3895_v30, %v3895_v30  ;;  %v4213_v34 = vunpack.c.l.b16 %v4718_v4 }
 0x27d   : > { %v3802_v35 = vmax.f32 %v2955_v37, %v4559_v50  ;;  %v3803_v42 = vmax.f32 %v2954_v26, %v4560_v59  ;;  %v3804_v43 = vmax.f32 %v2956_v18, %v4561_v5  ;;  %v2906_v40 = vcombine.high %v2634_v60, %v2634_v60 }
 0x27e   : > { %v4721_v33 = vpack.c.bf16 %v3896_v11, %v3896_v11  ;;  %v4214_v22 = vunpack.c.l.b16 %v4719_v23  ;;  %v4215_v27 = vunpack.c.l.b16 %v4720_v57  ;;  %v2913_v16 = vrot.slane %v2634_v60, %v5728_v48 }
 0x27f   : > { %v2920_v45 = vrot.slane %v2906_v40, %v5728_v48  ;;  %v2607_v14 = vadd.f32 %v5850_v28, %v2606_v41  ;;  %v2618_v55 = vadd.f32 %v5850_v28, %v4811_v32  ;;  %v3195_v1 = vcombine.high %v2651_v49, %v2651_v49 }
 0x280   : > { %v4216_v39 = vunpack.c.l.b16 %v4721_v33  ;;  %v4302_v44 = vrot.slane %v4214_v22, 7  ;;  %v4304_v10 = vrot.slane %v4215_v27, 6  ;;  %v2921_v56 = vcombine.high %v2913_v16, %v2913_v16 }
 0x281   : > { %v2922_v62 = vcombine.high %v2920_v45, %v2920_v45  ;;  %v4550_v53 = vrot.slane %v2913_v16, 9  ;;  %v4552_v61 = vrot.slane %v2920_v45, 9  ;;  %v3202_v60 = vrot.slane %v2651_v49, %v5728_v48 }
 0x282   : > { %v4303_v9 = vsel %vm4254_vm14, %v4302_v44, %v4213_v34  ;;  %v4306_v58 = vrot.slane %v4216_v39, 5  ;;  %v4551_v7 = vrot.slane %v2921_v56, 9  ;;  %v3209_v0 = vrot.slane %v3195_v1, %v5728_v48 }
 0x283   : > { %v4305_v51 = vsel %vm4257_vm15, %v4304_v10, %v4303_v9  ;;  %v4553_v8 = vrot.slane %v2922_v62, 9  ;;  %v3793_v41 = vmax.f32 %v2913_v16, %v4550_v53  ;;  %v3795_v3 = vmax.f32 %v2920_v45, %v4552_v61 }
 0x284   : > { %v3794_v32 = vmax.f32 %v2921_v56, %v4551_v7  ;;  %v4307_v47 = vsel %vm4260_vm0, %v4306_v58, %v4305_v51  ;;  %v3210_v36 = vcombine.high %v3202_v60, %v3202_v60  ;;  %v4618_v63 = vrot.slane %v3202_v60, 9 }
 0x285   : > { %v3796_v13 = vmax.f32 %v2922_v62, %v4553_v8  ;;  %v3897_v15 = vmax.f32 %v3793_v41, %v3801_v38  ;;  %v3899_v17 = vmax.f32 %v3795_v3, %v3803_v42  ;;  %v3211_v2 = vcombine.high %v3209_v0, %v3209_v0 }
 0x286   : > { %v3898_v31 = vmax.f32 %v3794_v32, %v3802_v35  ;;  %v4619_v54 = vrot.slane %v3210_v36, 9  ;;  %v4620_v25 = vrot.slane %v3209_v0, 9  ;;  %v3861_v20 = vmax.f32 %v3202_v60, %v4618_v63 }
 0x287   : > { %v3900_v26 = vmax.f32 %v3796_v13, %v3804_v43  ;;  %v4722_v46 = vpack.c.bf16 %v3897_v15, %v3897_v15  ;;  %v4724_v21 = vpack.c.bf16 %v3899_v17, %v3899_v17  ;;  %v4621_v24 = vrot.slane %v3211_v2, 9 }
 0x288   : > { %v4723_v19 = vpack.c.bf16 %v3898_v31, %v3898_v31  ;;  %v3862_v37 = vmax.f32 %v3210_v36, %v4619_v54  ;;  %v2649_v52 = vmax.f32 %v2607_v14, 0.0  ;;  %v3863_v4 = vmax.f32 %v3209_v0, %v4620_v25 }
 0x289   : > { %v4725_v18 = vpack.c.bf16 %v3900_v26, %v3900_v26  ;;  %v4217_v29 = vunpack.c.l.b16 %v4722_v46  ;;  %v4219_v6 = vunpack.c.l.b16 %v4724_v21  ;;  %v3864_v50 = vmax.f32 %v3211_v2, %v4621_v24 }
 0x28a   : > { %v4218_v30 = vunpack.c.l.b16 %v4723_v19  ;;  %v2652_v59 = vmax.f32 %v2618_v55, 0.0  ;;  %v3161_v11 = vcombine.high %v2649_v52, %v2649_v52  ;;  %v2610_v23 = vadd.f32 %v5850_v28, %v5885_v12 }
 0x28b   : > { %v4220_v5 = vunpack.c.l.b16 %v4725_v18  ;;  %v4308_v38 = vrot.slane %v4217_v29, 4  ;;  %v3168_v34 = vrot.slane %v2649_v52, %v5728_v48  ;;  %v4312_v40 = vrot.slane %v4219_v6, 2 }
 0x28c   : > { %v4310_v57 = vrot.slane %v4218_v30, 3  ;;  %v3212_v35 = vcombine.high %v2652_v59, %v2652_v59  ;;  %v3219_v42 = vrot.slane %v2652_v59, %v5728_v48  ;;  %v3175_v22 = vrot.slane %v3161_v11, %v5728_v48 }
 0x28d   : > { %v4309_v43 = vsel %vm4263_vm1, %v4308_v38, %v4307_v47  ;;  %v4314_v33 = vrot.slane %v4220_v5, 1  ;;  %v3176_v16 = vcombine.high %v3168_v34, %v3168_v34  ;;  %v4610_v45 = vrot.slane %v3168_v34, 9 }
 0x28e   : > { %v4311_v27 = vsel %vm4266_vm2, %v4310_v57, %v4309_v43  ;;  %v3226_v49 = vrot.slane %v3212_v35, %v5728_v48  ;;  %v3177_v12 = vcombine.high %v3175_v22, %v3175_v22  ;;  %v4612_v14 = vrot.slane %v3175_v22, 9 }
 0x28f   : > { %v4313_v28 = vsel %vm4269_vm3, %v4312_v40, %v4311_v27  ;;  %v3227_v55 = vcombine.high %v3219_v42, %v3219_v42  ;;  %v4611_v44 = vrot.slane %v3176_v16, 9  ;;  %v3853_v10 = vmax.f32 %v3168_v34, %v4610_v45 }
 0x290   : > { %v4315_v39 = vsel %vm4272_vm4, %v4314_v33, %v4313_v28  ;;  %v2650_v56 = vmax.f32 %v2610_v23, 0.0  ;;  %v4613_v53 = vrot.slane %v3177_v12, 9  ;;  %v3855_v61 = vmax.f32 %v3175_v22, %v4612_v14 }
 0x291   : > { %v4375_v62 = vpack.c.b16 %v4315_v39, %v4315_v39  ;;  %v3228_v1 = vcombine.high %v3226_v49, %v3226_v49  ;;  %v3854_v9 = vmax.f32 %v3176_v16, %v4611_v44  ;;  %v3925_v58 = vmax.f32 %v3853_v10, %v3861_v20 }
 0x292   : > { %v4622_v7 = vrot.slane %v3219_v42, 9  ;;  %v3856_v60 = vmax.f32 %v3177_v12, %v4613_v53  ;;  %v3927_v51 = vmax.f32 %v3855_v61, %v3863_v4  ;;  %v4623_v8 = vrot.slane %v3227_v55, 9 }
 0x293   : > { %4392 = vst.msk [vmem:[%s5764_s8 + $0xc] sm:$0xf] %vm4388_vm5, %v4375_v62  ;;  %v3926_v41 = vmax.f32 %v3854_v9, %v3862_v37  ;;  %v4624_v3 = vrot.slane %v3226_v49, 9  ;;  %v4625_v0 = vrot.slane %v3228_v1, 9  ;;  %v3178_v36 = vcombine.high %v2650_v56, %v2650_v56 }
 0x294   : > { %v3928_v32 = vmax.f32 %v3856_v60, %v3864_v50  ;;  %v4752_v47 = vpack.c.bf16 %v3927_v51, %v3927_v51  ;;  %v4750_v13 = vpack.c.bf16 %v3925_v58, %v3925_v58  ;;  %v3865_v17 = vmax.f32 %v3219_v42, %v4622_v7 }
 0x295   : > { %v4751_v15 = vpack.c.bf16 %v3926_v41, %v3926_v41  ;;  %v3185_v63 = vrot.slane %v2650_v56, %v5728_v48  ;;  %v3866_v54 = vmax.f32 %v3227_v55, %v4623_v8  ;;  %v3192_v25 = vrot.slane %v3178_v36, %v5728_v48 }
 0x296   : > { %v4753_v31 = vpack.c.bf16 %v3928_v32, %v3928_v32  ;;  %v4247_v2 = vunpack.c.l.b16 %v4752_v47  ;;  %v3867_v46 = vmax.f32 %v3226_v49, %v4624_v3  ;;  %v4245_v29 = vunpack.c.l.b16 %v4750_v13 }
 0x297   : > { %v4246_v26 = vunpack.c.l.b16 %v4751_v15  ;;  %v3193_v21 = vcombine.high %v3185_v63, %v3185_v63  ;;  %v4614_v19 = vrot.slane %v3185_v63, 9  ;;  %v3194_v37 = vcombine.high %v3192_v25, %v3192_v25 }
 0x298   : > { %v4248_v24 = vunpack.c.l.b16 %v4753_v31  ;;  %v4360_v20 = vrot.slane %v4247_v2, 6  ;;  %v4616_v18 = vrot.slane %v3192_v25, 9  ;;  %v3868_v50 = vmax.f32 %v3228_v1, %v4625_v0 }
 0x299   : > { %v4358_v6 = vrot.slane %v4246_v26, 7  ;;  %v4615_v52 = vrot.slane %v3193_v21, 9  ;;  %v3857_v30 = vmax.f32 %v3185_v63, %v4614_v19  ;;  %v4617_v59 = vrot.slane %v3194_v37, 9 }
 0x29a   : > { %v4362_v4 = vrot.slane %v4248_v24, 5  ;;  %v3859_v5 = vmax.f32 %v3192_v25, %v4616_v18 }
 0x29b   : > { %v4359_v38 = vsel %vm4254_vm14, %v4358_v6, %v4245_v29  ;;  %v3858_v11 = vmax.f32 %v3193_v21, %v4615_v52  ;;  %v3929_v48 = vmax.f32 %v3857_v30, %v3865_v17  ;;  %v3860_v57 = vmax.f32 %v3194_v37, %v4617_v59 }
 0x29c   : > { %v4361_v23 = vsel %vm4257_vm15, %v4360_v20, %v4359_v38  ;;  %v3931_v34 = vmax.f32 %v3859_v5, %v3867_v46 }
 0x29d   : > { %v3930_v35 = vmax.f32 %v3858_v11, %v3866_v54  ;;  %v4754_v42 = vpack.c.bf16 %v3929_v48, %v3929_v48  ;;  %v4363_v43 = vsel %vm4260_vm0, %v4362_v4, %v4361_v23  ;;  %v3932_v40 = vmax.f32 %v3860_v57, %v3868_v50 }
 0x29e   : > { %v4756_v33 = vpack.c.bf16 %v3931_v34, %v3931_v34 }
 0x29f   : > { %v4755_v22 = vpack.c.bf16 %v3930_v35, %v3930_v35  ;;  %v4249_v27 = vunpack.c.l.b16 %v4754_v42  ;;  %v4757_v16 = vpack.c.bf16 %v3932_v40, %v3932_v40 }
 0x2a0   : > { %v4251_v45 = vunpack.c.l.b16 %v4756_v33 }
 0x2a1   : > { %v4250_v49 = vunpack.c.l.b16 %v4755_v22  ;;  %v4364_v28 = vrot.slane %v4249_v27, 4  ;;  %v4252_v12 = vunpack.c.l.b16 %v4757_v16 }
 0x2a2   : > { %v4368_v39 = vrot.slane %v4251_v45, 2 }
 0x2a3   : > { %v4365_v14 = vsel %vm4263_vm1, %v4364_v28, %v4363_v43  ;;  %v4366_v55 = vrot.slane %v4250_v49, 3  ;;  %v4370_v10 = vrot.slane %v4252_v12, 1 }
 0x2a5   : > { %v4367_v44 = vsel %vm4266_vm2, %v4366_v55, %v4365_v14 }
 0x2a6   : > { %v4369_v56 = vsel %vm4269_vm3, %v4368_v39, %v4367_v44 }
 0x2a7   : > { %v4371_v62 = vsel %vm4272_vm4, %v4370_v10, %v4369_v56 }
 0x2a8   : > { %v4379_v53 = vpack.c.b16 %v4371_v62, %v4371_v62 }
 0x2aa   : > { %4396 = vst.msk [vmem:[%s5764_s8 + $0x1c] sm:$0xf] %vm4388_vm5, %v4379_v53 }
 0x2ab PF: > { %s13_s12 = sadd.s32 1, %s4860_s12  }
 0x2ac   : > { %p10_p4 = scmp.ge.s32.totalorder %s13_s12, 4  }
 0x2ae   :  { %12 = sbr.rel (!%p10_p4) target bundleno = 1 (0x1), region = 67 }

</bundles_post_ra>
